<compile_context>
chip_gen: v7x
topology: tpu7x:2x2x1
jax: 0.10.0
libtpu: 0.0.40
codegen_flags: <defaults>
</compile_context>

<pallas_src>
import jax
import jax.numpy as jnp
from jax.experimental import pallas as pl
from jax.experimental.pallas import tpu as pltpu

LANE = 128


def _round_up(x, m):
    return ((x + m - 1) // m) * m


# ----------------------------- Pallas kernels ------------------------------

def _conv_relu_pool_kernel(a_ref, b_ref, c_ref, d_ref, w_ref, bias_ref, o_ref):
    """Fused im2col-matmul conv + bias + ReLU + 2x2 maxpool.

    a/b/c/d hold the patch rows of the four 2x2 pool-window corners for the
    same TM pooled output pixels; four bf16 matmuls (f32 accumulation) are
    max-reduced in the epilogue."""
    def branch(x_ref):
        acc = jnp.dot(x_ref[...], w_ref[...], preferred_element_type=jnp.float32)
        return jnp.maximum(acc + bias_ref[...], 0.0)

    pooled = jnp.maximum(jnp.maximum(branch(a_ref), branch(b_ref)),
                         jnp.maximum(branch(c_ref), branch(d_ref)))
    o_ref[...] = pooled.astype(o_ref.dtype)


def _fc_chain_kernel(x_ref, w1_ref, b1_ref, w2_ref, b2_ref, w3_ref, b3_ref, o_ref):
    """fc1 + ReLU + fc2 + ReLU + fc3, all widths padded to 128 lanes."""
    h = jnp.dot(x_ref[...], w1_ref[...], preferred_element_type=jnp.float32)
    h = jnp.maximum(h + b1_ref[...], 0.0)
    h = jnp.dot(h.astype(w2_ref.dtype), w2_ref[...], preferred_element_type=jnp.float32)
    h = jnp.maximum(h + b2_ref[...], 0.0)
    h = jnp.dot(h.astype(w3_ref.dtype), w3_ref[...], preferred_element_type=jnp.float32)
    o_ref[...] = (h + b3_ref[...]).astype(o_ref.dtype)


# ------------------------------ wrappers -----------------------------------

def _im2col_corner_nhwc(x, kh, kw, pr, pc, ohp, owp):
    """Patch rows for pool-window corner (pr, pc), i.e. conv output pixels
    (2*ph + pr, 2*pw + pc). K is flattened in (C_in, kh, kw) order to match
    the PyTorch Conv2d weight layout."""
    N, H, W, C = x.shape
    cols = []
    for di in range(kh):
        for dj in range(kw):
            r0, c0 = pr + di, pc + dj
            cols.append(x[:, r0:r0 + 2 * ohp:2, c0:c0 + 2 * owp:2, :])  # (N,ohp,owp,C)
    p = jnp.stack(cols, axis=0).reshape(kh, kw, N, ohp, owp, C)
    p = p.transpose(2, 3, 4, 5, 0, 1)                      # (N, ohp, owp, C, kh, kw)
    return p.reshape(N, ohp, owp, C * kh * kw)


def conv_relu_pool_pallas(x_nhwc, w_kc, b_1c, *, kh=5, kw=5, row_tile=512):
    """Valid conv (stride 1) + bias + ReLU + maxpool(2,2) fused.

    x_nhwc: (N, H, W, C) f32
    w_kc:   (K_pad, C_pad) bf16, PyTorch-layout rows, zero-padded
    b_1c:   (1, C_pad) f32, zero-padded
    returns (N, OH//2, OW//2, C_pad) f32 (padded output channels are zero)."""
    N, H, W, C = x_nhwc.shape
    oh, ow = H - kh + 1, W - kw + 1
    ohp, owp = oh // 2, ow // 2
    K = C * kh * kw
    K_pad, C_pad = w_kc.shape

    M = N * ohp * owp                       # pooled output pixels
    TM = min(row_tile, _round_up(M, 8))     # rows per grid step (x4 conv rows)
    Mp = _round_up(M, TM)

    corners = []
    for pr in range(2):
        for pc in range(2):
            p = _im2col_corner_nhwc(x_nhwc, kh, kw, pr, pc, ohp, owp)
            p = p.reshape(M, K)
            p = jnp.pad(p, ((0, Mp - M), (0, K_pad - K))).astype(jnp.bfloat16)
            corners.append(p)

    out = pl.pallas_call(
        _conv_relu_pool_kernel,
        out_shape=jax.ShapeDtypeStruct((Mp, C_pad), jnp.float32),
        grid=(Mp // TM,),
        in_specs=[pl.BlockSpec((TM, K_pad), lambda i: (i, 0))] * 4 + [
            pl.BlockSpec((K_pad, C_pad), lambda i: (0, 0)),
            pl.BlockSpec((1, C_pad), lambda i: (0, 0)),
        ],
        out_specs=pl.BlockSpec((TM, C_pad), lambda i: (i, 0)),
        compiler_params=pltpu.CompilerParams(dimension_semantics=("parallel",)),
    )(*corners, w_kc, b_1c)
    return out[:M].reshape(N, ohp, owp, C_pad)


def fc_chain_pallas(x, w1, b1, w2, b2, w3, b3, *, row_tile=512):
    """x: (M, K_pad) bf16; weights bf16 / biases f32, all padded to 128 lanes."""
    M, K = x.shape
    TM = min(row_tile, _round_up(M, 8))
    Mp = _round_up(M, TM)
    xp = jnp.pad(x, ((0, Mp - M), (0, 0)))
    C_out = w3.shape[1]
    out = pl.pallas_call(
        _fc_chain_kernel,
        out_shape=jax.ShapeDtypeStruct((Mp, C_out), jnp.float32),
        grid=(Mp // TM,),
        in_specs=[
            pl.BlockSpec((TM, K), lambda i: (i, 0)),
            pl.BlockSpec(w1.shape, lambda i: (0, 0)),
            pl.BlockSpec(b1.shape, lambda i: (0, 0)),
            pl.BlockSpec(w2.shape, lambda i: (0, 0)),
            pl.BlockSpec(b2.shape, lambda i: (0, 0)),
            pl.BlockSpec(w3.shape, lambda i: (0, 0)),
            pl.BlockSpec(b3.shape, lambda i: (0, 0)),
        ],
        out_specs=pl.BlockSpec((TM, C_out), lambda i: (i, 0)),
        compiler_params=pltpu.CompilerParams(dimension_semantics=("parallel",)),
    )(xp, w1, b1, w2, b2, w3, b3)
    return out[:M]


# ------------------------------ parameters ---------------------------------

def init_params(key):
    """PyTorch-layout parameters (same init scheme as nn.Conv2d / nn.Linear)."""
    ks = jax.random.split(key, 10)

    def u(k, shape, fan_in):
        bound = 1.0 / jnp.sqrt(jnp.asarray(fan_in, jnp.float32))
        return jax.random.uniform(k, shape, jnp.float32, -bound, bound)

    p = {}
    p["conv1_w"] = u(ks[0], (6, 3, 5, 5), 3 * 5 * 5)
    p["conv1_b"] = u(ks[1], (6,), 3 * 5 * 5)
    p["conv2_w"] = u(ks[2], (16, 6, 5, 5), 6 * 5 * 5)
    p["conv2_b"] = u(ks[3], (16,), 6 * 5 * 5)
    p["fc1_w"] = u(ks[4], (16 * 5 * 5, 120), 16 * 5 * 5)   # stored (in, out)
    p["fc1_b"] = u(ks[5], (120,), 16 * 5 * 5)
    p["fc2_w"] = u(ks[6], (120, 84), 120)
    p["fc2_b"] = u(ks[7], (84,), 120)
    p["fc3_w"] = u(ks[8], (84, 10), 84)
    p["fc3_b"] = u(ks[9], (10,), 84)
    return p


def prepare_params(p):
    """One-time layout prep: reshape conv weights to (K, C_out), fold the
    PyTorch (C,H,W) flatten order into fc1 rows, zero-pad K / widths to
    multiples of 128, cast matmul operands to bf16 (biases stay f32)."""
    def padwb(w, b, k_pad, c_pad):
        wpad = jnp.pad(w, ((0, k_pad - w.shape[0]), (0, c_pad - w.shape[1])))
        bpad = jnp.pad(b, (0, c_pad - b.shape[0])).reshape(1, c_pad)
        return wpad.astype(jnp.bfloat16), bpad.astype(jnp.float32)

    q = {}
    q["conv1_w"], q["conv1_b"] = padwb(
        p["conv1_w"].reshape(6, 3 * 5 * 5).T, p["conv1_b"], 128, LANE)
    q["conv2_w"], q["conv2_b"] = padwb(
        p["conv2_w"].reshape(16, 6 * 5 * 5).T, p["conv2_b"], 256, LANE)

    # PyTorch flattens (C,H,W); we feed the (H,W,C)-order flattened NHWC
    # activation, so permute fc1's rows once here.
    perm = jnp.arange(400).reshape(16, 5, 5).transpose(1, 2, 0).reshape(400)
    q["fc1_w"], q["fc1_b"] = padwb(p["fc1_w"][perm, :], p["fc1_b"], 512, LANE)
    q["fc2_w"], q["fc2_b"] = padwb(p["fc2_w"], p["fc2_b"], LANE, LANE)
    q["fc3_w"], q["fc3_b"] = padwb(p["fc3_w"], p["fc3_b"], LANE, LANE)
    return q


# ------------------------------ the network --------------------------------

@jax.jit
def net_forward(prep, x_nchw):
    x = jnp.transpose(x_nchw, (0, 2, 3, 1)).astype(jnp.float32)       # NHWC

    # conv1(3->6,5x5) + ReLU + maxpool 2x2  (one fused kernel)
    h = conv_relu_pool_pallas(x, prep["conv1_w"], prep["conv1_b"])     # (N,14,14,128)
    h = h[..., :6]

    # conv2(6->16,5x5) + ReLU + maxpool 2x2  (one fused kernel)
    h = conv_relu_pool_pallas(h, prep["conv2_w"], prep["conv2_b"])     # (N,5,5,128)
    h = h[..., :16]

    # flatten (NHWC order; fc1 weights were permuted to match PyTorch numerics)
    n = h.shape[0]
    flat = h.reshape(n, 5 * 5 * 16)
    flat = jnp.pad(flat, ((0, 0), (0, 512 - 400))).astype(jnp.bfloat16)

    # fc1 + ReLU + fc2 + ReLU + fc3  (one fused kernel)
    out = fc_chain_pallas(flat, prep["fc1_w"], prep["fc1_b"],
                          prep["fc2_w"], prep["fc2_b"],
                          prep["fc3_w"], prep["fc3_b"])                # (N,128)
    return out[:, :10]


if __name__ == "__main__":
    key = jax.random.PRNGKey(0)
    pkey, xkey = jax.random.split(key)
    params = init_params(pkey)
    prep = prepare_params(params)
    # CIFAR-sized input required by fc1 = Linear(16*5*5, 120).
    x = jax.random.normal(xkey, (2, 3, 32, 32), jnp.float32)
    out = net_forward(prep, x)
    out = jax.block_until_ready(out)
    assert out.shape == (2, 10) and out.dtype == jnp.float32
    print("KERNEL_OK")
</pallas_src>

<mosaic_0001>
module attributes {stable_mosaic.version = 11 : i64} {
  func.func @_conv_relu_pool_kernel(%arg0: i32, %arg1: memref<392x128xbf16, #tpu.memory_space<vmem>>, %arg2: memref<392x128xbf16, #tpu.memory_space<vmem>>, %arg3: memref<392x128xbf16, #tpu.memory_space<vmem>>, %arg4: memref<392x128xbf16, #tpu.memory_space<vmem>>, %arg5: memref<128x128xbf16, #tpu.memory_space<vmem>>, %arg6: memref<1x128xf32, #tpu.memory_space<vmem>>, %arg7: memref<392x128xf32, #tpu.memory_space<vmem>>) attributes {dimension_semantics = [#tpu.dimension_semantics<parallel>], iteration_bounds = array<i64: 1>, scalar_prefetch = 0 : i64, scratch_operands = 0 : i64, tpu.core_type = #tpu.core_type<tc>, window_params = [{transform_indices = @transform_0, window_bounds = array<i64: 392, 128>}, {transform_indices = @transform_1, window_bounds = array<i64: 392, 128>}, {transform_indices = @transform_2, window_bounds = array<i64: 392, 128>}, {transform_indices = @transform_3, window_bounds = array<i64: 392, 128>}, {pipeline_mode = #tpu.pipeline_mode<synchronous>, transform_indices = @transform_4, window_bounds = array<i64: 128, 128>}, {pipeline_mode = #tpu.pipeline_mode<synchronous>, transform_indices = @transform_5, window_bounds = array<i64: 1, 128>}, {transform_indices = @transform_6, window_bounds = array<i64: 392, 128>}]} {
    %c0 = arith.constant 0 : index
    %c0_0 = arith.constant 0 : index
    %0 = vector.load %arg1[%c0, %c0_0] : memref<392x128xbf16, #tpu.memory_space<vmem>>, vector<392x128xbf16>
    %c0_1 = arith.constant 0 : index
    %c0_2 = arith.constant 0 : index
    %1 = vector.load %arg5[%c0_1, %c0_2] : memref<128x128xbf16, #tpu.memory_space<vmem>>, vector<128x128xbf16>
    %cst = arith.constant dense<0.000000e+00> : vector<392x128xf32>
    %2 = tpu.matmul %0, %1, %cst {dimension_numbers = #tpu.dot_dimension_numbers<[1], [0], [0], [1], [0, 0, 1, 1], [], []>} : vector<392x128xbf16>, vector<128x128xbf16>, vector<392x128xf32> -> vector<392x128xf32>
    %c0_3 = arith.constant 0 : index
    %c0_4 = arith.constant 0 : index
    %3 = vector.load %arg6[%c0_3, %c0_4] : memref<1x128xf32, #tpu.memory_space<vmem>>, vector<1x128xf32>
    %4 = vector.broadcast %3 : vector<1x128xf32> to vector<392x128xf32>
    %5 = arith.addf %2, %4 : vector<392x128xf32>
    %cst_5 = arith.constant 0.000000e+00 : f32
    %6 = vector.broadcast %cst_5 : f32 to vector<392x128xf32>
    %7 = arith.maximumf %5, %6 : vector<392x128xf32>
    %c0_6 = arith.constant 0 : index
    %c0_7 = arith.constant 0 : index
    %8 = vector.load %arg2[%c0_6, %c0_7] : memref<392x128xbf16, #tpu.memory_space<vmem>>, vector<392x128xbf16>
    %c0_8 = arith.constant 0 : index
    %c0_9 = arith.constant 0 : index
    %9 = vector.load %arg5[%c0_8, %c0_9] : memref<128x128xbf16, #tpu.memory_space<vmem>>, vector<128x128xbf16>
    %cst_10 = arith.constant dense<0.000000e+00> : vector<392x128xf32>
    %10 = tpu.matmul %8, %9, %cst_10 {dimension_numbers = #tpu.dot_dimension_numbers<[1], [0], [0], [1], [0, 0, 1, 1], [], []>} : vector<392x128xbf16>, vector<128x128xbf16>, vector<392x128xf32> -> vector<392x128xf32>
    %c0_11 = arith.constant 0 : index
    %c0_12 = arith.constant 0 : index
    %11 = vector.load %arg6[%c0_11, %c0_12] : memref<1x128xf32, #tpu.memory_space<vmem>>, vector<1x128xf32>
    %12 = vector.broadcast %11 : vector<1x128xf32> to vector<392x128xf32>
    %13 = arith.addf %10, %12 : vector<392x128xf32>
    %cst_13 = arith.constant 0.000000e+00 : f32
    %14 = vector.broadcast %cst_13 : f32 to vector<392x128xf32>
    %15 = arith.maximumf %13, %14 : vector<392x128xf32>
    %16 = arith.maximumf %7, %15 : vector<392x128xf32>
    %c0_14 = arith.constant 0 : index
    %c0_15 = arith.constant 0 : index
    %17 = vector.load %arg3[%c0_14, %c0_15] : memref<392x128xbf16, #tpu.memory_space<vmem>>, vector<392x128xbf16>
    %c0_16 = arith.constant 0 : index
    %c0_17 = arith.constant 0 : index
    %18 = vector.load %arg5[%c0_16, %c0_17] : memref<128x128xbf16, #tpu.memory_space<vmem>>, vector<128x128xbf16>
    %cst_18 = arith.constant dense<0.000000e+00> : vector<392x128xf32>
    %19 = tpu.matmul %17, %18, %cst_18 {dimension_numbers = #tpu.dot_dimension_numbers<[1], [0], [0], [1], [0, 0, 1, 1], [], []>} : vector<392x128xbf16>, vector<128x128xbf16>, vector<392x128xf32> -> vector<392x128xf32>
    %c0_19 = arith.constant 0 : index
    %c0_20 = arith.constant 0 : index
    %20 = vector.load %arg6[%c0_19, %c0_20] : memref<1x128xf32, #tpu.memory_space<vmem>>, vector<1x128xf32>
    %21 = vector.broadcast %20 : vector<1x128xf32> to vector<392x128xf32>
    %22 = arith.addf %19, %21 : vector<392x128xf32>
    %cst_21 = arith.constant 0.000000e+00 : f32
    %23 = vector.broadcast %cst_21 : f32 to vector<392x128xf32>
    %24 = arith.maximumf %22, %23 : vector<392x128xf32>
    %c0_22 = arith.constant 0 : index
    %c0_23 = arith.constant 0 : index
    %25 = vector.load %arg4[%c0_22, %c0_23] : memref<392x128xbf16, #tpu.memory_space<vmem>>, vector<392x128xbf16>
    %c0_24 = arith.constant 0 : index
    %c0_25 = arith.constant 0 : index
    %26 = vector.load %arg5[%c0_24, %c0_25] : memref<128x128xbf16, #tpu.memory_space<vmem>>, vector<128x128xbf16>
    %cst_26 = arith.constant dense<0.000000e+00> : vector<392x128xf32>
    %27 = tpu.matmul %25, %26, %cst_26 {dimension_numbers = #tpu.dot_dimension_numbers<[1], [0], [0], [1], [0, 0, 1, 1], [], []>} : vector<392x128xbf16>, vector<128x128xbf16>, vector<392x128xf32> -> vector<392x128xf32>
    %c0_27 = arith.constant 0 : index
    %c0_28 = arith.constant 0 : index
    %28 = vector.load %arg6[%c0_27, %c0_28] : memref<1x128xf32, #tpu.memory_space<vmem>>, vector<1x128xf32>
    %29 = vector.broadcast %28 : vector<1x128xf32> to vector<392x128xf32>
    %30 = arith.addf %27, %29 : vector<392x128xf32>
    %cst_29 = arith.constant 0.000000e+00 : f32
    %31 = vector.broadcast %cst_29 : f32 to vector<392x128xf32>
    %32 = arith.maximumf %30, %31 : vector<392x128xf32>
    %33 = arith.maximumf %24, %32 : vector<392x128xf32>
    %34 = arith.maximumf %16, %33 : vector<392x128xf32>
    %c0_30 = arith.constant 0 : index
    %c0_31 = arith.constant 0 : index
    %35 = vector.load %arg7[%c0_30, %c0_31] : memref<392x128xf32, #tpu.memory_space<vmem>>, vector<392x128xf32>
    tpu.vector_store %arg7[%c0_30, %c0_31], %34 {strides = array<i32>} : memref<392x128xf32, #tpu.memory_space<vmem>>, vector<392x128xf32>,
    return
  }
  func.func @transform_0(%arg0: i32) -> (i32, i32) {
    %c0_i32 = arith.constant 0 : i32
    %c0_i32_0 = arith.constant 0 : i32
    return %arg0, %c0_i32 : i32, i32
  }
  func.func @transform_1(%arg0: i32) -> (i32, i32) {
    %c0_i32 = arith.constant 0 : i32
    %c0_i32_0 = arith.constant 0 : i32
    return %arg0, %c0_i32 : i32, i32
  }
  func.func @transform_2(%arg0: i32) -> (i32, i32) {
    %c0_i32 = arith.constant 0 : i32
    %c0_i32_0 = arith.constant 0 : i32
    return %arg0, %c0_i32 : i32, i32
  }
  func.func @transform_3(%arg0: i32) -> (i32, i32) {
    %c0_i32 = arith.constant 0 : i32
    %c0_i32_0 = arith.constant 0 : i32
    return %arg0, %c0_i32 : i32, i32
  }
  func.func @transform_4(%arg0: i32) -> (i32, i32) {
    %c0_i32 = arith.constant 0 : i32
    %c0_i32_0 = arith.constant 0 : i32
    %c0_i32_1 = arith.constant 0 : i32
    return %c0_i32, %c0_i32_0 : i32, i32
  }
  func.func @transform_5(%arg0: i32) -> (i32, i32) {
    %c0_i32 = arith.constant 0 : i32
    %c0_i32_0 = arith.constant 0 : i32
    %c0_i32_1 = arith.constant 0 : i32
    return %c0_i32, %c0_i32_0 : i32, i32
  }
  func.func @transform_6(%arg0: i32) -> (i32, i32) {
    %c0_i32 = arith.constant 0 : i32
    %c0_i32_0 = arith.constant 0 : i32
    return %arg0, %c0_i32 : i32, i32
  }
}

module attributes {stable_mosaic.version = 11 : i64} {
  func.func @_conv_relu_pool_kernel(%arg0: i32, %arg1: memref<56x256xbf16, #tpu.memory_space<vmem>>, %arg2: memref<56x256xbf16, #tpu.memory_space<vmem>>, %arg3: memref<56x256xbf16, #tpu.memory_space<vmem>>, %arg4: memref<56x256xbf16, #tpu.memory_space<vmem>>, %arg5: memref<256x128xbf16, #tpu.memory_space<vmem>>, %arg6: memref<1x128xf32, #tpu.memory_space<vmem>>, %arg7: memref<56x128xf32, #tpu.memory_space<vmem>>) attributes {dimension_semantics = [#tpu.dimension_semantics<parallel>], iteration_bounds = array<i64: 1>, scalar_prefetch = 0 : i64, scratch_operands = 0 : i64, tpu.core_type = #tpu.core_type<tc>, window_params = [{transform_indices = @transform_0, window_bounds = array<i64: 56, 256>}, {transform_indices = @transform_1, window_bounds = array<i64: 56, 256>}, {transform_indices = @transform_2, window_bounds = array<i64: 56, 256>}, {transform_indices = @transform_3, window_bounds = array<i64: 56, 256>}, {pipeline_mode = #tpu.pipeline_mode<synchronous>, transform_indices = @transform_4, window_bounds = array<i64: 256, 128>}, {pipeline_mode = #tpu.pipeline_mode<synchronous>, transform_indices = @transform_5, window_bounds = array<i64: 1, 128>}, {transform_indices = @transform_6, window_bounds = array<i64: 56, 128>}]} {
    %c0 = arith.constant 0 : index
    %c0_0 = arith.constant 0 : index
    %0 = vector.load %arg1[%c0, %c0_0] : memref<56x256xbf16, #tpu.memory_space<vmem>>, vector<56x256xbf16>
    %c0_1 = arith.constant 0 : index
    %c0_2 = arith.constant 0 : index
    %1 = vector.load %arg5[%c0_1, %c0_2] : memref<256x128xbf16, #tpu.memory_space<vmem>>, vector<256x128xbf16>
    %cst = arith.constant dense<0.000000e+00> : vector<56x128xf32>
    %2 = tpu.matmul %0, %1, %cst {dimension_numbers = #tpu.dot_dimension_numbers<[1], [0], [0], [1], [0, 0, 1, 1], [], []>} : vector<56x256xbf16>, vector<256x128xbf16>, vector<56x128xf32> -> vector<56x128xf32>
    %c0_3 = arith.constant 0 : index
    %c0_4 = arith.constant 0 : index
    %3 = vector.load %arg6[%c0_3, %c0_4] : memref<1x128xf32, #tpu.memory_space<vmem>>, vector<1x128xf32>
    %4 = vector.broadcast %3 : vector<1x128xf32> to vector<56x128xf32>
    %5 = arith.addf %2, %4 : vector<56x128xf32>
    %cst_5 = arith.constant 0.000000e+00 : f32
    %6 = vector.broadcast %cst_5 : f32 to vector<56x128xf32>
    %7 = arith.maximumf %5, %6 : vector<56x128xf32>
    %c0_6 = arith.constant 0 : index
    %c0_7 = arith.constant 0 : index
    %8 = vector.load %arg2[%c0_6, %c0_7] : memref<56x256xbf16, #tpu.memory_space<vmem>>, vector<56x256xbf16>
    %c0_8 = arith.constant 0 : index
    %c0_9 = arith.constant 0 : index
    %9 = vector.load %arg5[%c0_8, %c0_9] : memref<256x128xbf16, #tpu.memory_space<vmem>>, vector<256x128xbf16>
    %cst_10 = arith.constant dense<0.000000e+00> : vector<56x128xf32>
    %10 = tpu.matmul %8, %9, %cst_10 {dimension_numbers = #tpu.dot_dimension_numbers<[1], [0], [0], [1], [0, 0, 1, 1], [], []>} : vector<56x256xbf16>, vector<256x128xbf16>, vector<56x128xf32> -> vector<56x128xf32>
    %c0_11 = arith.constant 0 : index
    %c0_12 = arith.constant 0 : index
    %11 = vector.load %arg6[%c0_11, %c0_12] : memref<1x128xf32, #tpu.memory_space<vmem>>, vector<1x128xf32>
    %12 = vector.broadcast %11 : vector<1x128xf32> to vector<56x128xf32>
    %13 = arith.addf %10, %12 : vector<56x128xf32>
    %cst_13 = arith.constant 0.000000e+00 : f32
    %14 = vector.broadcast %cst_13 : f32 to vector<56x128xf32>
    %15 = arith.maximumf %13, %14 : vector<56x128xf32>
    %16 = arith.maximumf %7, %15 : vector<56x128xf32>
    %c0_14 = arith.constant 0 : index
    %c0_15 = arith.constant 0 : index
    %17 = vector.load %arg3[%c0_14, %c0_15] : memref<56x256xbf16, #tpu.memory_space<vmem>>, vector<56x256xbf16>
    %c0_16 = arith.constant 0 : index
    %c0_17 = arith.constant 0 : index
    %18 = vector.load %arg5[%c0_16, %c0_17] : memref<256x128xbf16, #tpu.memory_space<vmem>>, vector<256x128xbf16>
    %cst_18 = arith.constant dense<0.000000e+00> : vector<56x128xf32>
    %19 = tpu.matmul %17, %18, %cst_18 {dimension_numbers = #tpu.dot_dimension_numbers<[1], [0], [0], [1], [0, 0, 1, 1], [], []>} : vector<56x256xbf16>, vector<256x128xbf16>, vector<56x128xf32> -> vector<56x128xf32>
    %c0_19 = arith.constant 0 : index
    %c0_20 = arith.constant 0 : index
    %20 = vector.load %arg6[%c0_19, %c0_20] : memref<1x128xf32, #tpu.memory_space<vmem>>, vector<1x128xf32>
    %21 = vector.broadcast %20 : vector<1x128xf32> to vector<56x128xf32>
    %22 = arith.addf %19, %21 : vector<56x128xf32>
    %cst_21 = arith.constant 0.000000e+00 : f32
    %23 = vector.broadcast %cst_21 : f32 to vector<56x128xf32>
    %24 = arith.maximumf %22, %23 : vector<56x128xf32>
    %c0_22 = arith.constant 0 : index
    %c0_23 = arith.constant 0 : index
    %25 = vector.load %arg4[%c0_22, %c0_23] : memref<56x256xbf16, #tpu.memory_space<vmem>>, vector<56x256xbf16>
    %c0_24 = arith.constant 0 : index
    %c0_25 = arith.constant 0 : index
    %26 = vector.load %arg5[%c0_24, %c0_25] : memref<256x128xbf16, #tpu.memory_space<vmem>>, vector<256x128xbf16>
    %cst_26 = arith.constant dense<0.000000e+00> : vector<56x128xf32>
    %27 = tpu.matmul %25, %26, %cst_26 {dimension_numbers = #tpu.dot_dimension_numbers<[1], [0], [0], [1], [0, 0, 1, 1], [], []>} : vector<56x256xbf16>, vector<256x128xbf16>, vector<56x128xf32> -> vector<56x128xf32>
    %c0_27 = arith.constant 0 : index
    %c0_28 = arith.constant 0 : index
    %28 = vector.load %arg6[%c0_27, %c0_28] : memref<1x128xf32, #tpu.memory_space<vmem>>, vector<1x128xf32>
    %29 = vector.broadcast %28 : vector<1x128xf32> to vector<56x128xf32>
    %30 = arith.addf %27, %29 : vector<56x128xf32>
    %cst_29 = arith.constant 0.000000e+00 : f32
    %31 = vector.broadcast %cst_29 : f32 to vector<56x128xf32>
    %32 = arith.maximumf %30, %31 : vector<56x128xf32>
    %33 = arith.maximumf %24, %32 : vector<56x128xf32>
    %34 = arith.maximumf %16, %33 : vector<56x128xf32>
    %c0_30 = arith.constant 0 : index
    %c0_31 = arith.constant 0 : index
    %35 = vector.load %arg7[%c0_30, %c0_31] : memref<56x128xf32, #tpu.memory_space<vmem>>, vector<56x128xf32>
    tpu.vector_store %arg7[%c0_30, %c0_31], %34 {strides = array<i32>} : memref<56x128xf32, #tpu.memory_space<vmem>>, vector<56x128xf32>,
    return
  }
  func.func @transform_0(%arg0: i32) -> (i32, i32) {
    %c0_i32 = arith.constant 0 : i32
    %c0_i32_0 = arith.constant 0 : i32
    return %arg0, %c0_i32 : i32, i32
  }
  func.func @transform_1(%arg0: i32) -> (i32, i32) {
    %c0_i32 = arith.constant 0 : i32
    %c0_i32_0 = arith.constant 0 : i32
    return %arg0, %c0_i32 : i32, i32
  }
  func.func @transform_2(%arg0: i32) -> (i32, i32) {
    %c0_i32 = arith.constant 0 : i32
    %c0_i32_0 = arith.constant 0 : i32
    return %arg0, %c0_i32 : i32, i32
  }
  func.func @transform_3(%arg0: i32) -> (i32, i32) {
    %c0_i32 = arith.constant 0 : i32
    %c0_i32_0 = arith.constant 0 : i32
    return %arg0, %c0_i32 : i32, i32
  }
  func.func @transform_4(%arg0: i32) -> (i32, i32) {
    %c0_i32 = arith.constant 0 : i32
    %c0_i32_0 = arith.constant 0 : i32
    %c0_i32_1 = arith.constant 0 : i32
    return %c0_i32, %c0_i32_0 : i32, i32
  }
  func.func @transform_5(%arg0: i32) -> (i32, i32) {
    %c0_i32 = arith.constant 0 : i32
    %c0_i32_0 = arith.constant 0 : i32
    %c0_i32_1 = arith.constant 0 : i32
    return %c0_i32, %c0_i32_0 : i32, i32
  }
  func.func @transform_6(%arg0: i32) -> (i32, i32) {
    %c0_i32 = arith.constant 0 : i32
    %c0_i32_0 = arith.constant 0 : i32
    return %arg0, %c0_i32 : i32, i32
  }
}

module attributes {stable_mosaic.version = 11 : i64} {
  func.func @_fc_chain_kernel(%arg0: i32, %arg1: memref<8x512xbf16, #tpu.memory_space<vmem>>, %arg2: memref<512x128xbf16, #tpu.memory_space<vmem>>, %arg3: memref<1x128xf32, #tpu.memory_space<vmem>>, %arg4: memref<128x128xbf16, #tpu.memory_space<vmem>>, %arg5: memref<1x128xf32, #tpu.memory_space<vmem>>, %arg6: memref<128x128xbf16, #tpu.memory_space<vmem>>, %arg7: memref<1x128xf32, #tpu.memory_space<vmem>>, %arg8: memref<8x128xf32, #tpu.memory_space<vmem>>) attributes {dimension_semantics = [#tpu.dimension_semantics<parallel>], iteration_bounds = array<i64: 1>, scalar_prefetch = 0 : i64, scratch_operands = 0 : i64, tpu.core_type = #tpu.core_type<tc>, window_params = [{transform_indices = @transform_0, window_bounds = array<i64: 8, 512>}, {pipeline_mode = #tpu.pipeline_mode<synchronous>, transform_indices = @transform_1, window_bounds = array<i64: 512, 128>}, {pipeline_mode = #tpu.pipeline_mode<synchronous>, transform_indices = @transform_2, window_bounds = array<i64: 1, 128>}, {pipeline_mode = #tpu.pipeline_mode<synchronous>, transform_indices = @transform_3, window_bounds = array<i64: 128, 128>}, {pipeline_mode = #tpu.pipeline_mode<synchronous>, transform_indices = @transform_4, window_bounds = array<i64: 1, 128>}, {pipeline_mode = #tpu.pipeline_mode<synchronous>, transform_indices = @transform_5, window_bounds = array<i64: 128, 128>}, {pipeline_mode = #tpu.pipeline_mode<synchronous>, transform_indices = @transform_6, window_bounds = array<i64: 1, 128>}, {transform_indices = @transform_7, window_bounds = array<i64: 8, 128>}]} {
    %c0 = arith.constant 0 : index
    %c0_0 = arith.constant 0 : index
    %0 = vector.load %arg1[%c0, %c0_0] : memref<8x512xbf16, #tpu.memory_space<vmem>>, vector<8x512xbf16>
    %c0_1 = arith.constant 0 : index
    %c0_2 = arith.constant 0 : index
    %1 = vector.load %arg2[%c0_1, %c0_2] : memref<512x128xbf16, #tpu.memory_space<vmem>>, vector<512x128xbf16>
    %cst = arith.constant dense<0.000000e+00> : vector<8x128xf32>
    %2 = tpu.matmul %0, %1, %cst {dimension_numbers = #tpu.dot_dimension_numbers<[1], [0], [0], [1], [0, 0, 1, 1], [], []>} : vector<8x512xbf16>, vector<512x128xbf16>, vector<8x128xf32> -> vector<8x128xf32>
    %c0_3 = arith.constant 0 : index
    %c0_4 = arith.constant 0 : index
    %3 = vector.load %arg3[%c0_3, %c0_4] : memref<1x128xf32, #tpu.memory_space<vmem>>, vector<1x128xf32>
    %4 = vector.broadcast %3 : vector<1x128xf32> to vector<8x128xf32>
    %5 = arith.addf %2, %4 : vector<8x128xf32>
    %cst_5 = arith.constant 0.000000e+00 : f32
    %6 = vector.broadcast %cst_5 : f32 to vector<8x128xf32>
    %7 = arith.maximumf %5, %6 : vector<8x128xf32>
    %8 = arith.truncf %7 : vector<8x128xf32> to vector<8x128xbf16>
    %c0_6 = arith.constant 0 : index
    %c0_7 = arith.constant 0 : index
    %9 = vector.load %arg4[%c0_6, %c0_7] : memref<128x128xbf16, #tpu.memory_space<vmem>>, vector<128x128xbf16>
    %cst_8 = arith.constant dense<0.000000e+00> : vector<8x128xf32>
    %10 = tpu.matmul %8, %9, %cst_8 {dimension_numbers = #tpu.dot_dimension_numbers<[1], [0], [0], [1], [0, 0, 1, 1], [], []>} : vector<8x128xbf16>, vector<128x128xbf16>, vector<8x128xf32> -> vector<8x128xf32>
    %c0_9 = arith.constant 0 : index
    %c0_10 = arith.constant 0 : index
    %11 = vector.load %arg5[%c0_9, %c0_10] : memref<1x128xf32, #tpu.memory_space<vmem>>, vector<1x128xf32>
    %12 = vector.broadcast %11 : vector<1x128xf32> to vector<8x128xf32>
    %13 = arith.addf %10, %12 : vector<8x128xf32>
    %cst_11 = arith.constant 0.000000e+00 : f32
    %14 = vector.broadcast %cst_11 : f32 to vector<8x128xf32>
    %15 = arith.maximumf %13, %14 : vector<8x128xf32>
    %16 = arith.truncf %15 : vector<8x128xf32> to vector<8x128xbf16>
    %c0_12 = arith.constant 0 : index
    %c0_13 = arith.constant 0 : index
    %17 = vector.load %arg6[%c0_12, %c0_13] : memref<128x128xbf16, #tpu.memory_space<vmem>>, vector<128x128xbf16>
    %cst_14 = arith.constant dense<0.000000e+00> : vector<8x128xf32>
    %18 = tpu.matmul %16, %17, %cst_14 {dimension_numbers = #tpu.dot_dimension_numbers<[1], [0], [0], [1], [0, 0, 1, 1], [], []>} : vector<8x128xbf16>, vector<128x128xbf16>, vector<8x128xf32> -> vector<8x128xf32>
    %c0_15 = arith.constant 0 : index
    %c0_16 = arith.constant 0 : index
    %19 = vector.load %arg7[%c0_15, %c0_16] : memref<1x128xf32, #tpu.memory_space<vmem>>, vector<1x128xf32>
    %20 = vector.broadcast %19 : vector<1x128xf32> to vector<8x128xf32>
    %21 = arith.addf %18, %20 : vector<8x128xf32>
    %c0_17 = arith.constant 0 : index
    %c0_18 = arith.constant 0 : index
    %22 = vector.load %arg8[%c0_17, %c0_18] : memref<8x128xf32, #tpu.memory_space<vmem>>, vector<8x128xf32>
    tpu.vector_store %arg8[%c0_17, %c0_18], %21 {strides = array<i32>} : memref<8x128xf32, #tpu.memory_space<vmem>>, vector<8x128xf32>,
    return
  }
  func.func @transform_0(%arg0: i32) -> (i32, i32) {
    %c0_i32 = arith.constant 0 : i32
    %c0_i32_0 = arith.constant 0 : i32
    return %arg0, %c0_i32 : i32, i32
  }
  func.func @transform_1(%arg0: i32) -> (i32, i32) {
    %c0_i32 = arith.constant 0 : i32
    %c0_i32_0 = arith.constant 0 : i32
    %c0_i32_1 = arith.constant 0 : i32
    return %c0_i32, %c0_i32_0 : i32, i32
  }
  func.func @transform_2(%arg0: i32) -> (i32, i32) {
    %c0_i32 = arith.constant 0 : i32
    %c0_i32_0 = arith.constant 0 : i32
    %c0_i32_1 = arith.constant 0 : i32
    return %c0_i32, %c0_i32_0 : i32, i32
  }
  func.func @transform_3(%arg0: i32) -> (i32, i32) {
    %c0_i32 = arith.constant 0 : i32
    %c0_i32_0 = arith.constant 0 : i32
    %c0_i32_1 = arith.constant 0 : i32
    return %c0_i32, %c0_i32_0 : i32, i32
  }
  func.func @transform_4(%arg0: i32) -> (i32, i32) {
    %c0_i32 = arith.constant 0 : i32
    %c0_i32_0 = arith.constant 0 : i32
    %c0_i32_1 = arith.constant 0 : i32
    return %c0_i32, %c0_i32_0 : i32, i32
  }
  func.func @transform_5(%arg0: i32) -> (i32, i32) {
    %c0_i32 = arith.constant 0 : i32
    %c0_i32_0 = arith.constant 0 : i32
    %c0_i32_1 = arith.constant 0 : i32
    return %c0_i32, %c0_i32_0 : i32, i32
  }
  func.func @transform_6(%arg0: i32) -> (i32, i32) {
    %c0_i32 = arith.constant 0 : i32
    %c0_i32_0 = arith.constant 0 : i32
    %c0_i32_1 = arith.constant 0 : i32
    return %c0_i32, %c0_i32_0 : i32, i32
  }
  func.func @transform_7(%arg0: i32) -> (i32, i32) {
    %c0_i32 = arith.constant 0 : i32
    %c0_i32_0 = arith.constant 0 : i32
    return %arg0, %c0_i32 : i32, i32
  }
}

</mosaic_0001>

<bundles_post_ra>
// kernel: net_forward.3
= control target key start
LH: loop header
LB: loop body
LE: loop exit
PB: predicated region body
PF: predicated region fallthrough
CT: control target
= control target key end

     0   :  { %v3024_v0 = vmov 0.0   ;;  %vm3025_vm0 = vmmov 0   ;;  %s4122_s4 = inlined_call_operand.vmem [shape: bf16[128,128], index: 4, kind: input, shape index: {}]   ;;  %s4123_s0 = inlined_call_operand.vmem [shape: bf16[392,128], index: 0, kind: input, shape index: {}]   ;;  %s4124_s1 = inlined_call_operand.vmem [shape: bf16[392,128], index: 1, kind: input, shape index: {}]   ;;  %s4125_s2 = inlined_call_operand.vmem [shape: bf16[392,128], index: 2, kind: input, shape index: {}]   ;;  %s4126_s3 = inlined_call_operand.vmem [shape: bf16[392,128], index: 3, kind: input, shape index: {}]   ;;  %s4127_s5 = inlined_call_operand.vmem [shape: f32[1,128], index: 5, kind: input, shape index: {}]   ;;  %s4128_s6 = inlined_call_operand.vmem [shape: f32[392,128], index: 6, kind: output, shape index: {}]  }
   0x1   :  { %2448 = vmatprep.subr.bf16.mxu0 %v3024_v0  ;;  %2564 = vmatprep.subr.bf16.mxu1 %v3024_v0  ;;  %v2914_v1 = vld [vmem:[%s4122_s4] sm:$0xff]   ;;  %v2915_v2 = vld [vmem:[%s4122_s4 + $0x8] sm:$0xff]   ;;  %v2916_v3 = vld [vmem:[%s4122_s4 + $0x10] sm:$0xff]  }
   0x2   :  { %2464 = vmatprep.mubr.msk.bf16.mxu0 %vm3025_vm0, %v3024_v0  ;;  %2580 = vmatprep.mubr.msk.bf16.mxu1 %vm3025_vm0, %v3024_v0  ;;  %v2917_v4 = vld [vmem:[%s4122_s4 + $0x18] sm:$0xff]   ;;  %v2918_v5 = vld [vmem:[%s4122_s4 + $0x20] sm:$0xff]   ;;  %v2919_v6 = vld [vmem:[%s4122_s4 + $0x28] sm:$0xff]  }
   0x3   :  { %2449 = vmatpush3.bf16.msra.mxu0 %v2914_v1  ;;  %2565 = vmatpush3.bf16.msra.mxu1 %v2914_v1  ;;  %v2920_v7 = vld [vmem:[%s4122_s4 + $0x30] sm:$0xff]   ;;  %v2921_v8 = vld [vmem:[%s4122_s4 + $0x38] sm:$0xff]   ;;  %v2922_v9 = vld [vmem:[%s4123_s0] sm:$0xff]  }
   0x4   :  { %2450 = vmatprep.subr.bf16.mxu0 %v3024_v0  ;;  %2566 = vmatprep.subr.bf16.mxu1 %v3024_v0  ;;  %v2923_v10 = vld [vmem:[%s4124_s1] sm:$0xff]   ;;  %v2924_v11 = vld [vmem:[%s4123_s0 + $0x8] sm:$0xff]   ;;  %v2926_v13 = vld [vmem:[%s4123_s0 + $0x10] sm:$0xff]  }
   0x5   :  { %v2925_v12 = vld [vmem:[%s4124_s1 + $0x8] sm:$0xff]   ;;  %v2927_v14 = vld [vmem:[%s4124_s1 + $0x10] sm:$0xff]   ;;  %v2928_v15 = vld [vmem:[%s4123_s0 + $0x18] sm:$0xff]  }
   0x6   :  { %v2929_v16 = vld [vmem:[%s4124_s1 + $0x18] sm:$0xff]   ;;  %v2930_v17 = vld [vmem:[%s4123_s0 + $0x20] sm:$0xff]   ;;  %v2932_v19 = vld [vmem:[%s4123_s0 + $0x28] sm:$0xff]  }
   0x7   :  { %2451 = vmatpush3.bf16.msra.mxu0 %v2915_v2  ;;  %2567 = vmatpush3.bf16.msra.mxu1 %v2915_v2  ;;  %v2931_v18 = vld [vmem:[%s4124_s1 + $0x20] sm:$0xff]   ;;  %v2933_v20 = vld [vmem:[%s4124_s1 + $0x28] sm:$0xff]   ;;  %v2934_v21 = vld [vmem:[%s4123_s0 + $0x30] sm:$0xff]  }
   0x8   :  { %2452 = vmatprep.subr.bf16.mxu0 %v3024_v0  ;;  %2568 = vmatprep.subr.bf16.mxu1 %v3024_v0  ;;  %v2935_v22 = vld [vmem:[%s4124_s1 + $0x30] sm:$0xff]   ;;  %v2936_v23 = vld [vmem:[%s4123_s0 + $0x38] sm:$0xff]   ;;  %v2938_v25 = vld [vmem:[%s4123_s0 + $0x40] sm:$0xff]  }
   0x9   :  { %v2937_v24 = vld [vmem:[%s4124_s1 + $0x38] sm:$0xff]   ;;  %v2939_v26 = vld [vmem:[%s4124_s1 + $0x40] sm:$0xff]   ;;  %v2940_v27 = vld [vmem:[%s4123_s0 + $0x48] sm:$0xff]  }
   0xa   :  { %v2941_v28 = vld [vmem:[%s4124_s1 + $0x48] sm:$0xff]   ;;  %v2942_v29 = vld [vmem:[%s4123_s0 + $0x50] sm:$0xff]   ;;  %v2944_v31 = vld [vmem:[%s4123_s0 + $0x58] sm:$0xff]  }
   0xb   :  { %2453 = vmatpush3.bf16.msra.mxu0 %v2916_v3  ;;  %2569 = vmatpush3.bf16.msra.mxu1 %v2916_v3  ;;  %v2943_v30 = vld [vmem:[%s4124_s1 + $0x50] sm:$0xff]   ;;  %v2945_v32 = vld [vmem:[%s4124_s1 + $0x58] sm:$0xff]   ;;  %v2946_v33 = vld [vmem:[%s4123_s0 + $0x60] sm:$0xff]  }
   0xc   :  { %2454 = vmatprep.subr.bf16.mxu0 %v3024_v0  ;;  %2570 = vmatprep.subr.bf16.mxu1 %v3024_v0  ;;  %v2947_v34 = vld [vmem:[%s4124_s1 + $0x60] sm:$0xff]   ;;  %v2948_v35 = vld [vmem:[%s4123_s0 + $0x68] sm:$0xff]   ;;  %v2950_v37 = vld [vmem:[%s4123_s0 + $0x70] sm:$0xff]  }
   0xd   :  { %v2949_v36 = vld [vmem:[%s4124_s1 + $0x68] sm:$0xff]   ;;  %v2951_v38 = vld [vmem:[%s4124_s1 + $0x70] sm:$0xff]   ;;  %v2952_v39 = vld [vmem:[%s4123_s0 + $0x78] sm:$0xff]  }
   0xe   :  { %v2953_v40 = vld [vmem:[%s4124_s1 + $0x78] sm:$0xff]   ;;  %v2954_v41 = vld [vmem:[%s4123_s0 + $0x80] sm:$0xff]   ;;  %v2956_v43 = vld [vmem:[%s4123_s0 + $0x88] sm:$0xff]  }
   0xf   :  { %2455 = vmatpush3.bf16.msra.mxu0 %v2917_v4  ;;  %2571 = vmatpush3.bf16.msra.mxu1 %v2917_v4  ;;  %v2955_v42 = vld [vmem:[%s4124_s1 + $0x80] sm:$0xff]   ;;  %v2957_v44 = vld [vmem:[%s4124_s1 + $0x88] sm:$0xff]   ;;  %v2958_v45 = vld [vmem:[%s4123_s0 + $0x90] sm:$0xff]  }
  0x10   :  { %2456 = vmatprep.subr.bf16.mxu0 %v3024_v0  ;;  %2572 = vmatprep.subr.bf16.mxu1 %v3024_v0  ;;  %v2959_v46 = vld [vmem:[%s4124_s1 + $0x90] sm:$0xff]   ;;  %v2960_v47 = vld [vmem:[%s4123_s0 + $0x98] sm:$0xff]   ;;  %v2962_v49 = vld [vmem:[%s4123_s0 + $0xa0] sm:$0xff]  }
  0x11   :  { %v2961_v48 = vld [vmem:[%s4124_s1 + $0x98] sm:$0xff]   ;;  %v2963_v50 = vld [vmem:[%s4124_s1 + $0xa0] sm:$0xff]   ;;  %v2964_v51 = vld [vmem:[%s4123_s0 + $0xa8] sm:$0xff]  }
  0x12   :  { %v2965_v52 = vld [vmem:[%s4124_s1 + $0xa8] sm:$0xff]   ;;  %v2966_v53 = vld [vmem:[%s4123_s0 + $0xb0] sm:$0xff]   ;;  %v2968_v55 = vld [vmem:[%s4123_s0 + $0xb8] sm:$0xff]  }
  0x13   :  { %2457 = vmatpush3.bf16.msra.mxu0 %v2918_v5  ;;  %2573 = vmatpush3.bf16.msra.mxu1 %v2918_v5  ;;  %v2967_v54 = vld [vmem:[%s4124_s1 + $0xb0] sm:$0xff]   ;;  %v2969_v56 = vld [vmem:[%s4124_s1 + $0xb8] sm:$0xff]   ;;  %v2970_v57 = vld [vmem:[%s4123_s0 + $0xc0] ss:$0 sps:$4 sm:$0xff]  }
  0x14   :  { %2458 = vmatprep.subr.bf16.mxu0 %v3024_v0  ;;  %2574 = vmatprep.subr.bf16.mxu1 %v3024_v0  ;;  %v2971_v58 = vld [vmem:[%s4124_s1 + $0xc0] ss:$0 sps:$4 sm:$0xff]   ;;  %v2974_v61 = vld [vmem:[%s4125_s2 + $0x8] sm:$0xff]  }
  0x15   :  { %v2972_v59 = vld [vmem:[%s4125_s2] sm:$0xff]   ;;  %v2975_v62 = vld [vmem:[%s4126_s3 + $0x8] sm:$0xff]  }
  0x16   :  { %v2973_v60 = vld [vmem:[%s4126_s3] sm:$0xff]  }
  0x17   :  { %2459 = vmatpush3.bf16.msra.mxu0 %v2919_v6  ;;  %2575 = vmatpush3.bf16.msra.mxu1 %v2919_v6  ;;  %v3390_v63 = vld [vmem:[%s4127_s5] ss:$0 sm:$0xff] }
  0x18   :  { %2460 = vmatprep.subr.bf16.mxu0 %v3024_v0  ;;  %2576 = vmatprep.subr.bf16.mxu1 %v3024_v0 }
  0x1b   :  { %2461 = vmatpush3.bf16.msra.mxu0 %v2920_v7  ;;  %2577 = vmatpush3.bf16.msra.mxu1 %v2920_v7 }
  0x1c   :  { %2462 = vmatprep.subr.bf16.mxu0 %v3024_v0  ;;  %2578 = vmatprep.subr.bf16.mxu1 %v3024_v0 }
  0x1f   :  { %2463 = vmatpush3.bf16.msra.mxu0 %v2921_v8  ;;  %2579 = vmatpush3.bf16.msra.mxu1 %v2921_v8 }
  0x20   :  { %2680 = vmatprep.subr.bf16.mxu0 %v3024_v0  ;;  %2796 = vmatprep.subr.bf16.mxu1 %v3024_v0 }
  0x22   :  { %2465 = vmatmul.mubr.bf16.vlgmr.msra.gmra.mrb[0].mxu0 %v2922_v9  ;;  %2581 = vmatmul.mubr.bf16.vlgmr.msra.gmra.mrb[0].mxu1 %v2923_v10 }
  0x23   :  { %2681 = vmatpush3.bf16.msra.mxu0 %v2914_v1  ;;  %2797 = vmatpush3.bf16.msra.mxu1 %v2914_v1 }
  0x24   :  { %2468 = vmatprep.mubr.msk.bf16.mxu0 %vm3025_vm0, %v3024_v0  ;;  %2584 = vmatprep.mubr.msk.bf16.mxu1 %vm3025_vm0, %v3024_v0 }
  0x25   :  { %2682 = vmatprep.subr.bf16.mxu0 %v3024_v0  ;;  %2798 = vmatprep.subr.bf16.mxu1 %v3024_v0 }
  0x27   :  { %2683 = vmatpush3.bf16.msra.mxu0 %v2915_v2  ;;  %2799 = vmatpush3.bf16.msra.mxu1 %v2915_v2 }
  0x28   :  { %2684 = vmatprep.subr.bf16.mxu0 %v3024_v0  ;;  %2800 = vmatprep.subr.bf16.mxu1 %v3024_v0 }
  0x2a   :  { %2469 = vmatmul.mubr.bf16.gmra.mrb[4].mxu0 %v2924_v11  ;;  %2585 = vmatmul.mubr.bf16.gmra.mrb[4].mxu1 %v2925_v12 }
  0x2b   :  { %2472 = vmatprep.mubr.msk.bf16.mxu0 %vm3025_vm0, %v3024_v0  ;;  %2588 = vmatprep.mubr.msk.bf16.mxu1 %vm3025_vm0, %v3024_v0 }
  0x2c   :  { %2685 = vmatpush3.bf16.msra.mxu0 %v2916_v3  ;;  %2801 = vmatpush3.bf16.msra.mxu1 %v2916_v3 }
  0x2d   :  { %2686 = vmatprep.subr.bf16.mxu0 %v3024_v0  ;;  %2802 = vmatprep.subr.bf16.mxu1 %v3024_v0 }
  0x30   :  { %2687 = vmatpush3.bf16.msra.mxu0 %v2917_v4  ;;  %2803 = vmatpush3.bf16.msra.mxu1 %v2917_v4 }
  0x31   :  { %2688 = vmatprep.subr.bf16.mxu0 %v3024_v0  ;;  %2804 = vmatprep.subr.bf16.mxu1 %v3024_v0 }
  0x32   :  { %2473 = vmatmul.mubr.bf16.gmra.mrb[8].mxu0 %v2926_v13  ;;  %2589 = vmatmul.mubr.bf16.gmra.mrb[8].mxu1 %v2927_v14 }
  0x33   :  { %2476 = vmatprep.mubr.msk.bf16.mxu0 %vm3025_vm0, %v3024_v0  ;;  %2592 = vmatprep.mubr.msk.bf16.mxu1 %vm3025_vm0, %v3024_v0 }
  0x34   :  { %2689 = vmatpush3.bf16.msra.mxu0 %v2918_v5  ;;  %2805 = vmatpush3.bf16.msra.mxu1 %v2918_v5 }
  0x35   :  { %2690 = vmatprep.subr.bf16.mxu0 %v3024_v0  ;;  %2806 = vmatprep.subr.bf16.mxu1 %v3024_v0 }
  0x38   :  { %2691 = vmatpush3.bf16.msra.mxu0 %v2919_v6  ;;  %2807 = vmatpush3.bf16.msra.mxu1 %v2919_v6 }
  0x39   :  { %2692 = vmatprep.subr.bf16.mxu0 %v3024_v0  ;;  %2808 = vmatprep.subr.bf16.mxu1 %v3024_v0 }
  0x3a   :  { %2477 = vmatmul.mubr.bf16.gmra.mrb[12].mxu0 %v2928_v15  ;;  %2593 = vmatmul.mubr.bf16.gmra.mrb[12].mxu1 %v2929_v16 }
  0x3b   :  { %2480 = vmatprep.mubr.msk.bf16.mxu0 %vm3025_vm0, %v3024_v0  ;;  %2596 = vmatprep.mubr.msk.bf16.mxu1 %vm3025_vm0, %v3024_v0 }
  0x3c   :  { %2693 = vmatpush3.bf16.msra.mxu0 %v2920_v7  ;;  %2809 = vmatpush3.bf16.msra.mxu1 %v2920_v7  ;;  %v2976_v7 = vld [vmem:[%s4125_s2 + $0x10] sm:$0xff]  }
  0x3d   :  { %2694 = vmatprep.subr.bf16.mxu0 %v3024_v0  ;;  %2810 = vmatprep.subr.bf16.mxu1 %v3024_v0 }
  0x40   :  { %2695 = vmatpush3.bf16.msra.mxu0 %v2921_v8  ;;  %2811 = vmatpush3.bf16.msra.mxu1 %v2921_v8  ;;  %v2977_v8 = vld [vmem:[%s4126_s3 + $0x10] sm:$0xff]  }
  0x42   :  { %2481 = vmatmul.mubr.bf16.gmra.mrb[16].mxu0 %v2930_v17  ;;  %2597 = vmatmul.mubr.bf16.gmra.mrb[16].mxu1 %v2931_v18 }
  0x43   :  { %2484 = vmatprep.mubr.msk.bf16.mxu0 %vm3025_vm0, %v3024_v0  ;;  %2600 = vmatprep.mubr.msk.bf16.mxu1 %vm3025_vm0, %v3024_v0 }
  0x4a   :  { %2485 = vmatmul.mubr.bf16.gmra.mrb[20].mxu0 %v2932_v19  ;;  %2601 = vmatmul.mubr.bf16.gmra.mrb[20].mxu1 %v2933_v20 }
  0x4b   :  { %2488 = vmatprep.mubr.msk.bf16.mxu0 %vm3025_vm0, %v3024_v0  ;;  %2604 = vmatprep.mubr.msk.bf16.mxu1 %vm3025_vm0, %v3024_v0 }
  0x52   :  { %2489 = vmatmul.mubr.bf16.gmra.mrb[24].mxu0 %v2934_v21  ;;  %2605 = vmatmul.mubr.bf16.gmra.mrb[24].mxu1 %v2935_v22 }
  0x53   :  { %2492 = vmatprep.mubr.msk.bf16.mxu0 %vm3025_vm0, %v3024_v0  ;;  %2608 = vmatprep.mubr.msk.bf16.mxu1 %vm3025_vm0, %v3024_v0 }
  0x5a   :  { %2493 = vmatmul.mubr.bf16.gmra.mrb[28].mxu0 %v2936_v23  ;;  %2609 = vmatmul.mubr.bf16.gmra.mrb[28].mxu1 %v2937_v24 }
  0x5b   :  { %2496 = vmatprep.mubr.msk.bf16.mxu0 %vm3025_vm0, %v3024_v0  ;;  %2612 = vmatprep.mubr.msk.bf16.mxu1 %vm3025_vm0, %v3024_v0 }
  0x62   :  { %2497 = vmatmul.mubr.bf16.gmra.mrb[32].mxu0 %v2938_v25  ;;  %2613 = vmatmul.mubr.bf16.gmra.mrb[32].mxu1 %v2939_v26 }
  0x63   :  { %2500 = vmatprep.mubr.msk.bf16.mxu0 %vm3025_vm0, %v3024_v0  ;;  %2616 = vmatprep.mubr.msk.bf16.mxu1 %vm3025_vm0, %v3024_v0 }
  0x6a   :  { %2501 = vmatmul.mubr.bf16.gmra.mrb[36].mxu0 %v2940_v27  ;;  %2617 = vmatmul.mubr.bf16.gmra.mrb[36].mxu1 %v2941_v28  ;;  %v2978_v27 = vld [vmem:[%s4125_s2 + $0x18] sm:$0xff]  }
  0x6b   :  { %2504 = vmatprep.mubr.msk.bf16.mxu0 %vm3025_vm0, %v3024_v0  ;;  %2620 = vmatprep.mubr.msk.bf16.mxu1 %vm3025_vm0, %v3024_v0  ;;  %v2979_v28 = vld [vmem:[%s4126_s3 + $0x18] sm:$0xff]  }
  0x72   :  { %2505 = vmatmul.mubr.bf16.gmra.mrb[40].mxu0 %v2942_v29  ;;  %2621 = vmatmul.mubr.bf16.gmra.mrb[40].mxu1 %v2943_v30 }
  0x73   :  { %2508 = vmatprep.mubr.msk.bf16.mxu0 %vm3025_vm0, %v3024_v0  ;;  %2624 = vmatprep.mubr.msk.bf16.mxu1 %vm3025_vm0, %v3024_v0 }
  0x7a   :  { %2509 = vmatmul.mubr.bf16.gmra.mrb[44].mxu0 %v2944_v31  ;;  %2625 = vmatmul.mubr.bf16.gmra.mrb[44].mxu1 %v2945_v32 }
  0x7b   :  { %2512 = vmatprep.mubr.msk.bf16.mxu0 %vm3025_vm0, %v3024_v0  ;;  %2628 = vmatprep.mubr.msk.bf16.mxu1 %vm3025_vm0, %v3024_v0 }
  0x82   :  { %2513 = vmatmul.mubr.bf16.gmra.mrb[48].mxu0 %v2946_v33  ;;  %2629 = vmatmul.mubr.bf16.gmra.mrb[48].mxu1 %v2947_v34 }
  0x83   :  { %2516 = vmatprep.mubr.msk.bf16.mxu0 %vm3025_vm0, %v3024_v0  ;;  %2632 = vmatprep.mubr.msk.bf16.mxu1 %vm3025_vm0, %v3024_v0 }
  0x8a   :  { %2517 = vmatmul.mubr.bf16.gmra.mrb[52].mxu0 %v2948_v35  ;;  %2633 = vmatmul.mubr.bf16.gmra.mrb[52].mxu1 %v2949_v36 }
  0x8b   :  { %2520 = vmatprep.mubr.msk.bf16.mxu0 %vm3025_vm0, %v3024_v0  ;;  %2636 = vmatprep.mubr.msk.bf16.mxu1 %vm3025_vm0, %v3024_v0 }
  0x92   :  { %2521 = vmatmul.mubr.bf16.gmra.mrb[56].mxu0 %v2950_v37  ;;  %2637 = vmatmul.mubr.bf16.gmra.mrb[56].mxu1 %v2951_v38 }
  0x93   :  { %2524 = vmatprep.mubr.msk.bf16.mxu0 %vm3025_vm0, %v3024_v0  ;;  %2640 = vmatprep.mubr.msk.bf16.mxu1 %vm3025_vm0, %v3024_v0 }
  0x9a   :  { %2525 = vmatmul.mubr.bf16.gmra.mrb[60].mxu0 %v2952_v39  ;;  %2641 = vmatmul.mubr.bf16.gmra.mrb[60].mxu1 %v2953_v40 }
  0x9b   :  { %2528 = vmatprep.mubr.msk.bf16.mxu0 %vm3025_vm0, %v3024_v0  ;;  %2644 = vmatprep.mubr.msk.bf16.mxu1 %vm3025_vm0, %v3024_v0 }
  0xa2   :  { %2529 = vmatmul.mubr.bf16.gmra.mrb[64].mxu0 %v2954_v41  ;;  %2645 = vmatmul.mubr.bf16.gmra.mrb[64].mxu1 %v2955_v42 }
  0xa3   :  { %2532 = vmatprep.mubr.msk.bf16.mxu0 %vm3025_vm0, %v3024_v0  ;;  %2648 = vmatprep.mubr.msk.bf16.mxu1 %vm3025_vm0, %v3024_v0 }
  0xaa   :  { %2533 = vmatmul.mubr.bf16.gmra.mrb[68].mxu0 %v2956_v43  ;;  %2649 = vmatmul.mubr.bf16.gmra.mrb[68].mxu1 %v2957_v44 }
  0xab   :  { %2536 = vmatprep.mubr.msk.bf16.mxu0 %vm3025_vm0, %v3024_v0  ;;  %2652 = vmatprep.mubr.msk.bf16.mxu1 %vm3025_vm0, %v3024_v0 }
  0xb2   :  { %2537 = vmatmul.mubr.bf16.gmra.mrb[72].mxu0 %v2958_v45  ;;  %2653 = vmatmul.mubr.bf16.gmra.mrb[72].mxu1 %v2959_v46 }
  0xb3   :  { %2540 = vmatprep.mubr.msk.bf16.mxu0 %vm3025_vm0, %v3024_v0  ;;  %2656 = vmatprep.mubr.msk.bf16.mxu1 %vm3025_vm0, %v3024_v0 }
  0xba   :  { %2541 = vmatmul.mubr.bf16.gmra.mrb[76].mxu0 %v2960_v47  ;;  %2657 = vmatmul.mubr.bf16.gmra.mrb[76].mxu1 %v2961_v48  ;;  %v2980_v47 = vld [vmem:[%s4125_s2 + $0x20] sm:$0xff]  }
  0xbb   :  { %2544 = vmatprep.mubr.msk.bf16.mxu0 %vm3025_vm0, %v3024_v0  ;;  %2660 = vmatprep.mubr.msk.bf16.mxu1 %vm3025_vm0, %v3024_v0  ;;  %v2981_v48 = vld [vmem:[%s4126_s3 + $0x20] sm:$0xff]  }
  0xc2   :  { %2545 = vmatmul.mubr.bf16.gmra.mrb[80].mxu0 %v2962_v49  ;;  %2661 = vmatmul.mubr.bf16.gmra.mrb[80].mxu1 %v2963_v50 }
  0xc3   :  { %2548 = vmatprep.mubr.msk.bf16.mxu0 %vm3025_vm0, %v3024_v0  ;;  %2664 = vmatprep.mubr.msk.bf16.mxu1 %vm3025_vm0, %v3024_v0 }
  0xca   :  { %2549 = vmatmul.mubr.bf16.gmra.mrb[84].mxu0 %v2964_v51  ;;  %2665 = vmatmul.mubr.bf16.gmra.mrb[84].mxu1 %v2965_v52 }
  0xcb   :  { %2552 = vmatprep.mubr.msk.bf16.mxu0 %vm3025_vm0, %v3024_v0  ;;  %2668 = vmatprep.mubr.msk.bf16.mxu1 %vm3025_vm0, %v3024_v0 }
  0xd2   :  { %2553 = vmatmul.mubr.bf16.gmra.mrb[88].mxu0 %v2966_v53  ;;  %2669 = vmatmul.mubr.bf16.gmra.mrb[88].mxu1 %v2967_v54 }
  0xd3   :  { %2556 = vmatprep.mubr.msk.bf16.mxu0 %vm3025_vm0, %v3024_v0  ;;  %2672 = vmatprep.mubr.msk.bf16.mxu1 %vm3025_vm0, %v3024_v0 }
  0xda   :  { %2557 = vmatmul.mubr.bf16.gmra.mrb[92].mxu0 %v2968_v55  ;;  %2673 = vmatmul.mubr.bf16.gmra.mrb[92].mxu1 %v2969_v56 }
  0xdb   :  { %2560 = vmatprep.mubr.msk.bf16.mxu0 %vm3025_vm0, %v3024_v0  ;;  %2676 = vmatprep.mubr.msk.bf16.mxu1 %vm3025_vm0, %v3024_v0 }
  0xe2   :  { %2561 = vmatmul.mubr.bf16.gmra.mrb[96].mxu0 %v2970_v57  ;;  %2677 = vmatmul.mubr.bf16.gmra.mrb[96].mxu1 %v2971_v58 }
  0xe3   :  { %2696 = vmatprep.mubr.msk.bf16.mxu0 %vm3025_vm0, %v3024_v0  ;;  %2812 = vmatprep.mubr.msk.bf16.mxu1 %vm3025_vm0, %v3024_v0 }
  0xea   :  { %2697 = vmatmul.mubr.bf16.vlgmr.msra.gmra.mrb[100].mxu0 %v2972_v59  ;;  %2813 = vmatmul.mubr.bf16.vlgmr.msra.gmra.mrb[100].mxu1 %v2973_v60 }
  0xeb   :  { %2700 = vmatprep.mubr.msk.bf16.mxu0 %vm3025_vm0, %v3024_v0  ;;  %2816 = vmatprep.mubr.msk.bf16.mxu1 %vm3025_vm0, %v3024_v0 }
  0xf2   :  { %2701 = vmatmul.mubr.bf16.gmra.mrb[104].mxu0 %v2974_v61  ;;  %2817 = vmatmul.mubr.bf16.gmra.mrb[104].mxu1 %v2975_v62 }
  0xf3   :  { %2704 = vmatprep.mubr.msk.bf16.mxu0 %vm3025_vm0, %v3024_v0  ;;  %2820 = vmatprep.mubr.msk.bf16.mxu1 %vm3025_vm0, %v3024_v0 }
  0xf5   :  { %v326_v1 = vpop.f32.mrb[0].mxu0  ;;  %v804_v2 = vpop.f32.mrb[0].mxu1 }
  0xf6   :  { %v327_v3 = vadd.f32 %v3390_v63, %v326_v1  ;;  %v805_v4 = vadd.f32 %v3390_v63, %v804_v2  ;;  %v2466_v5 = vpop.f32.mrb[1].mxu0  ;;  %v2582_v6 = vpop.f32.mrb[1].mxu1 }
  0xf7   :  { %v329_v9 = vpop.f32.mrb[2].mxu0  ;;  %v807_v10 = vpop.f32.mrb[2].mxu1  ;;  %v2982_v5 = vld [vmem:[%s4125_s2 + $0x28] sm:$0xff]  }
  0xf8   :  { %v524_v11 = vmax.f32 %v327_v3, 0.0  ;;  %v1002_v12 = vmax.f32 %v805_v4, 0.0  ;;  %v330_v13 = vadd.f32 %v3390_v63, %v329_v9  ;;  %v808_v14 = vadd.f32 %v3390_v63, %v807_v10  ;;  %v2467_v15 = vpop.f32.mrb[3].mxu0  ;;  %v2583_v16 = vpop.f32.mrb[3].mxu1  ;;  %v2983_v6 = vld [vmem:[%s4126_s3 + $0x28] sm:$0xff]  }
  0xfa   :  { %v3406_v17 = vmax.f32 %v524_v11, %v1002_v12  ;;  %v525_v18 = vmax.f32 %v330_v13, 0.0  ;;  %v1003_v19 = vmax.f32 %v808_v14, 0.0  ;;  %2705 = vmatmul.mubr.bf16.gmra.mrb[108].mxu0 %v2976_v7  ;;  %2821 = vmatmul.mubr.bf16.gmra.mrb[108].mxu1 %v2977_v8 }
  0xfb   :  { %2708 = vmatprep.mubr.msk.bf16.mxu0 %vm3025_vm0, %v3024_v0  ;;  %2824 = vmatprep.mubr.msk.bf16.mxu1 %vm3025_vm0, %v3024_v0 }
  0xfc   :  { %v3412_v20 = vmax.f32 %v525_v18, %v1003_v19 }
  0xfd   :  { %v334_v21 = vpop.f32.mrb[4].mxu0  ;;  %v812_v22 = vpop.f32.mrb[4].mxu1 }
  0xfe   :  { %v335_v23 = vadd.f32 %v3390_v63, %v334_v21  ;;  %v813_v24 = vadd.f32 %v3390_v63, %v812_v22  ;;  %v2470_v25 = vpop.f32.mrb[5].mxu0  ;;  %v2586_v26 = vpop.f32.mrb[5].mxu1 }
  0xff   :  { %v337_v29 = vpop.f32.mrb[6].mxu0  ;;  %v815_v30 = vpop.f32.mrb[6].mxu1 }
 0x100   :  { %v526_v31 = vmax.f32 %v335_v23, 0.0  ;;  %v1004_v32 = vmax.f32 %v813_v24, 0.0  ;;  %v338_v33 = vadd.f32 %v3390_v63, %v337_v29  ;;  %v816_v34 = vadd.f32 %v3390_v63, %v815_v30  ;;  %v2471_v35 = vpop.f32.mrb[7].mxu0  ;;  %v2587_v36 = vpop.f32.mrb[7].mxu1 }
 0x102   :  { %v3424_v37 = vmax.f32 %v526_v31, %v1004_v32  ;;  %v527_v38 = vmax.f32 %v338_v33, 0.0  ;;  %v1005_v39 = vmax.f32 %v816_v34, 0.0  ;;  %2709 = vmatmul.mubr.bf16.gmra.mrb[112].mxu0 %v2978_v27  ;;  %2825 = vmatmul.mubr.bf16.gmra.mrb[112].mxu1 %v2979_v28  ;;  %v2984_v27 = vld [vmem:[%s4125_s2 + $0x30] sm:$0xff]  }
 0x103   :  { %2712 = vmatprep.mubr.msk.bf16.mxu0 %vm3025_vm0, %v3024_v0  ;;  %2828 = vmatprep.mubr.msk.bf16.mxu1 %vm3025_vm0, %v3024_v0  ;;  %v2985_v28 = vld [vmem:[%s4126_s3 + $0x30] sm:$0xff]  }
 0x104   :  { %v3430_v40 = vmax.f32 %v527_v38, %v1005_v39 }
 0x105   :  { %v342_v41 = vpop.f32.mrb[8].mxu0  ;;  %v820_v42 = vpop.f32.mrb[8].mxu1 }
 0x106   :  { %v343_v43 = vadd.f32 %v3390_v63, %v342_v41  ;;  %v821_v44 = vadd.f32 %v3390_v63, %v820_v42  ;;  %v2474_v45 = vpop.f32.mrb[9].mxu0  ;;  %v2590_v46 = vpop.f32.mrb[9].mxu1 }
 0x107   :  { %v345_v49 = vpop.f32.mrb[10].mxu0  ;;  %v823_v50 = vpop.f32.mrb[10].mxu1 }
 0x108   :  { %v528_v51 = vmax.f32 %v343_v43, 0.0  ;;  %v1006_v52 = vmax.f32 %v821_v44, 0.0  ;;  %v346_v53 = vadd.f32 %v3390_v63, %v345_v49  ;;  %v824_v54 = vadd.f32 %v3390_v63, %v823_v50  ;;  %v2475_v55 = vpop.f32.mrb[11].mxu0  ;;  %v2591_v56 = vpop.f32.mrb[11].mxu1  ;;  %v2986_v49 = vld [vmem:[%s4125_s2 + $0x38] sm:$0xff]  }
 0x109   :  { %v2987_v50 = vld [vmem:[%s4126_s3 + $0x38] sm:$0xff]  }
 0x10a   :  { %v3442_v57 = vmax.f32 %v528_v51, %v1006_v52  ;;  %v529_v58 = vmax.f32 %v346_v53, 0.0  ;;  %v1007_v59 = vmax.f32 %v824_v54, 0.0  ;;  %2713 = vmatmul.mubr.bf16.gmra.mrb[116].mxu0 %v2980_v47  ;;  %2829 = vmatmul.mubr.bf16.gmra.mrb[116].mxu1 %v2981_v48 }
 0x10b   :  { %2716 = vmatprep.mubr.msk.bf16.mxu0 %vm3025_vm0, %v3024_v0  ;;  %2832 = vmatprep.mubr.msk.bf16.mxu1 %vm3025_vm0, %v3024_v0 }
 0x10c   :  { %v3448_v60 = vmax.f32 %v529_v58, %v1007_v59 }
 0x10d   :  { %v350_v61 = vpop.f32.mrb[12].mxu0  ;;  %v828_v62 = vpop.f32.mrb[12].mxu1 }
 0x10e   :  { %v351_v1 = vadd.f32 %v3390_v63, %v350_v61  ;;  %v829_v2 = vadd.f32 %v3390_v63, %v828_v62  ;;  %v2478_v3 = vpop.f32.mrb[13].mxu0  ;;  %v2594_v4 = vpop.f32.mrb[13].mxu1 }
 0x10f   :  { %v353_v7 = vpop.f32.mrb[14].mxu0  ;;  %v831_v8 = vpop.f32.mrb[14].mxu1 }
 0x110   :  { %v530_v9 = vmax.f32 %v351_v1, 0.0  ;;  %v1008_v10 = vmax.f32 %v829_v2, 0.0  ;;  %v354_v11 = vadd.f32 %v3390_v63, %v353_v7  ;;  %v832_v12 = vadd.f32 %v3390_v63, %v831_v8  ;;  %v2479_v13 = vpop.f32.mrb[15].mxu0  ;;  %v2595_v14 = vpop.f32.mrb[15].mxu1 }
 0x112   :  { %v3460_v15 = vmax.f32 %v530_v9, %v1008_v10  ;;  %v531_v16 = vmax.f32 %v354_v11, 0.0  ;;  %v1009_v18 = vmax.f32 %v832_v12, 0.0  ;;  %2717 = vmatmul.mubr.bf16.gmra.mrb[120].mxu0 %v2982_v5  ;;  %2833 = vmatmul.mubr.bf16.gmra.mrb[120].mxu1 %v2983_v6  ;;  %v2988_v9 = vld [vmem:[%s4125_s2 + $0x40] sm:$0xff]  }
 0x113   :  { %2720 = vmatprep.mubr.msk.bf16.mxu0 %vm3025_vm0, %v3024_v0  ;;  %2836 = vmatprep.mubr.msk.bf16.mxu1 %vm3025_vm0, %v3024_v0  ;;  %v2989_v10 = vld [vmem:[%s4126_s3 + $0x40] sm:$0xff]  }
 0x114   :  { %v3466_v19 = vmax.f32 %v531_v16, %v1009_v18 }
 0x115   :  { %v358_v21 = vpop.f32.mrb[16].mxu0  ;;  %v836_v22 = vpop.f32.mrb[16].mxu1 }
 0x116   :  { %v359_v23 = vadd.f32 %v3390_v63, %v358_v21  ;;  %v837_v24 = vadd.f32 %v3390_v63, %v836_v22  ;;  %v2482_v25 = vpop.f32.mrb[17].mxu0  ;;  %v2598_v26 = vpop.f32.mrb[17].mxu1 }
 0x117   :  { %v361_v29 = vpop.f32.mrb[18].mxu0  ;;  %v839_v30 = vpop.f32.mrb[18].mxu1 }
 0x118   :  { %v532_v31 = vmax.f32 %v359_v23, 0.0  ;;  %v1010_v32 = vmax.f32 %v837_v24, 0.0  ;;  %v362_v33 = vadd.f32 %v3390_v63, %v361_v29  ;;  %v840_v34 = vadd.f32 %v3390_v63, %v839_v30  ;;  %v2483_v35 = vpop.f32.mrb[19].mxu0  ;;  %v2599_v36 = vpop.f32.mrb[19].mxu1 }
 0x11a   :  { %v3478_v38 = vmax.f32 %v532_v31, %v1010_v32  ;;  %v533_v39 = vmax.f32 %v362_v33, 0.0  ;;  %v1011_v41 = vmax.f32 %v840_v34, 0.0  ;;  %2721 = vmatmul.mubr.bf16.gmra.mrb[124].mxu0 %v2984_v27  ;;  %2837 = vmatmul.mubr.bf16.gmra.mrb[124].mxu1 %v2985_v28  ;;  %v2990_v33 = vld [vmem:[%s4125_s2 + $0x48] sm:$0xff]  }
 0x11b   :  { %2724 = vmatprep.mubr.msk.bf16.mxu0 %vm3025_vm0, %v3024_v0  ;;  %2840 = vmatprep.mubr.msk.bf16.mxu1 %vm3025_vm0, %v3024_v0  ;;  %v2991_v34 = vld [vmem:[%s4126_s3 + $0x48] sm:$0xff]  }
 0x11c   :  { %v3484_v42 = vmax.f32 %v533_v39, %v1011_v41 }
 0x11d   :  { %v366_v43 = vpop.f32.mrb[20].mxu0  ;;  %v844_v44 = vpop.f32.mrb[20].mxu1 }
 0x11e   :  { %v367_v45 = vadd.f32 %v3390_v63, %v366_v43  ;;  %v845_v46 = vadd.f32 %v3390_v63, %v844_v44  ;;  %v2486_v47 = vpop.f32.mrb[21].mxu0  ;;  %v2602_v48 = vpop.f32.mrb[21].mxu1 }
 0x11f   :  { %v369_v51 = vpop.f32.mrb[22].mxu0  ;;  %v847_v52 = vpop.f32.mrb[22].mxu1 }
 0x120   :  { %v534_v53 = vmax.f32 %v367_v45, 0.0  ;;  %v1012_v54 = vmax.f32 %v845_v46, 0.0  ;;  %v370_v55 = vadd.f32 %v3390_v63, %v369_v51  ;;  %v848_v56 = vadd.f32 %v3390_v63, %v847_v52  ;;  %v2487_v58 = vpop.f32.mrb[23].mxu0  ;;  %v2603_v59 = vpop.f32.mrb[23].mxu1 }
 0x121   :  { %v2992_v58 = vld [vmem:[%s4125_s2 + $0x50] sm:$0xff]  }
 0x122   :  { %v3496_v61 = vmax.f32 %v534_v53, %v1012_v54  ;;  %v535_v62 = vmax.f32 %v370_v55, 0.0  ;;  %v1013_v1 = vmax.f32 %v848_v56, 0.0  ;;  %2725 = vmatmul.mubr.bf16.gmra.mrb[128].mxu0 %v2986_v49  ;;  %2841 = vmatmul.mubr.bf16.gmra.mrb[128].mxu1 %v2987_v50  ;;  %v2993_v59 = vld [vmem:[%s4126_s3 + $0x50] sm:$0xff]  }
 0x123   :  { %2728 = vmatprep.mubr.msk.bf16.mxu0 %vm3025_vm0, %v3024_v0  ;;  %2844 = vmatprep.mubr.msk.bf16.mxu1 %vm3025_vm0, %v3024_v0 }
 0x124   :  { %v3502_v2 = vmax.f32 %v535_v62, %v1013_v1 }
 0x125   :  { %v374_v3 = vpop.f32.mrb[24].mxu0  ;;  %v852_v4 = vpop.f32.mrb[24].mxu1 }
 0x126   :  { %v375_v5 = vadd.f32 %v3390_v63, %v374_v3  ;;  %v853_v6 = vadd.f32 %v3390_v63, %v852_v4  ;;  %v2490_v7 = vpop.f32.mrb[25].mxu0  ;;  %v2606_v8 = vpop.f32.mrb[25].mxu1 }
 0x127   :  { %v377_v11 = vpop.f32.mrb[26].mxu0  ;;  %v855_v12 = vpop.f32.mrb[26].mxu1 }
 0x128   :  { %v536_v13 = vmax.f32 %v375_v5, 0.0  ;;  %v1014_v14 = vmax.f32 %v853_v6, 0.0  ;;  %v378_v16 = vadd.f32 %v3390_v63, %v377_v11  ;;  %v856_v18 = vadd.f32 %v3390_v63, %v855_v12  ;;  %v2491_v21 = vpop.f32.mrb[27].mxu0  ;;  %v2607_v22 = vpop.f32.mrb[27].mxu1 }
 0x12a   :  { %v3514_v23 = vmax.f32 %v536_v13, %v1014_v14  ;;  %v537_v24 = vmax.f32 %v378_v16, 0.0  ;;  %v1015_v25 = vmax.f32 %v856_v18, 0.0  ;;  %2729 = vmatmul.mubr.bf16.gmra.mrb[132].mxu0 %v2988_v9  ;;  %2845 = vmatmul.mubr.bf16.gmra.mrb[132].mxu1 %v2989_v10 }
 0x12b   :  { %2732 = vmatprep.mubr.msk.bf16.mxu0 %vm3025_vm0, %v3024_v0  ;;  %2848 = vmatprep.mubr.msk.bf16.mxu1 %vm3025_vm0, %v3024_v0 }
 0x12c   :  { %v3520_v26 = vmax.f32 %v537_v24, %v1015_v25  ;;  %v2994_v24 = vld [vmem:[%s4125_s2 + $0x58] sm:$0xff]  }
 0x12d   :  { %v382_v27 = vpop.f32.mrb[28].mxu0  ;;  %v860_v28 = vpop.f32.mrb[28].mxu1  ;;  %v2995_v25 = vld [vmem:[%s4126_s3 + $0x58] sm:$0xff]  }
 0x12e   :  { %v383_v29 = vadd.f32 %v3390_v63, %v382_v27  ;;  %v861_v30 = vadd.f32 %v3390_v63, %v860_v28  ;;  %v2494_v31 = vpop.f32.mrb[29].mxu0  ;;  %v2610_v32 = vpop.f32.mrb[29].mxu1 }
 0x12f   :  { %v385_v35 = vpop.f32.mrb[30].mxu0  ;;  %v863_v36 = vpop.f32.mrb[30].mxu1 }
 0x130   :  { %v538_v39 = vmax.f32 %v383_v29, 0.0  ;;  %v1016_v41 = vmax.f32 %v861_v30, 0.0  ;;  %v386_v43 = vadd.f32 %v3390_v63, %v385_v35  ;;  %v864_v44 = vadd.f32 %v3390_v63, %v863_v36  ;;  %v2495_v45 = vpop.f32.mrb[31].mxu0  ;;  %v2611_v46 = vpop.f32.mrb[31].mxu1 }
 0x132   :  { %v3532_v47 = vmax.f32 %v538_v39, %v1016_v41  ;;  %v539_v48 = vmax.f32 %v386_v43, 0.0  ;;  %v1017_v49 = vmax.f32 %v864_v44, 0.0  ;;  %2733 = vmatmul.mubr.bf16.gmra.mrb[136].mxu0 %v2990_v33  ;;  %2849 = vmatmul.mubr.bf16.gmra.mrb[136].mxu1 %v2991_v34 }
 0x133   :  { %2736 = vmatprep.mubr.msk.bf16.mxu0 %vm3025_vm0, %v3024_v0  ;;  %2852 = vmatprep.mubr.msk.bf16.mxu1 %vm3025_vm0, %v3024_v0 }
 0x134   :  { %v3538_v50 = vmax.f32 %v539_v48, %v1017_v49 }
 0x135   :  { %v390_v51 = vpop.f32.mrb[32].mxu0  ;;  %v868_v52 = vpop.f32.mrb[32].mxu1 }
 0x136   :  { %v391_v53 = vadd.f32 %v3390_v63, %v390_v51  ;;  %v869_v54 = vadd.f32 %v3390_v63, %v868_v52  ;;  %v2498_v55 = vpop.f32.mrb[33].mxu0  ;;  %v2614_v56 = vpop.f32.mrb[33].mxu1  ;;  %v2996_v51 = vld [vmem:[%s4125_s2 + $0x60] sm:$0xff]  }
 0x137   :  { %v393_v62 = vpop.f32.mrb[34].mxu0  ;;  %v871_v1 = vpop.f32.mrb[34].mxu1  ;;  %v2997_v52 = vld [vmem:[%s4126_s3 + $0x60] sm:$0xff]  }
 0x138   :  { %v540_v3 = vmax.f32 %v391_v53, 0.0  ;;  %v1018_v4 = vmax.f32 %v869_v54, 0.0  ;;  %v394_v5 = vadd.f32 %v3390_v63, %v393_v62  ;;  %v872_v6 = vadd.f32 %v3390_v63, %v871_v1  ;;  %v2499_v7 = vpop.f32.mrb[35].mxu0  ;;  %v2615_v8 = vpop.f32.mrb[35].mxu1 }
 0x13a   :  { %v3550_v9 = vmax.f32 %v540_v3, %v1018_v4  ;;  %v541_v10 = vmax.f32 %v394_v5, 0.0  ;;  %v1019_v11 = vmax.f32 %v872_v6, 0.0  ;;  %2737 = vmatmul.mubr.bf16.gmra.mrb[140].mxu0 %v2992_v58  ;;  %2853 = vmatmul.mubr.bf16.gmra.mrb[140].mxu1 %v2993_v59 }
 0x13b   :  { %2740 = vmatprep.mubr.msk.bf16.mxu0 %vm3025_vm0, %v3024_v0  ;;  %2856 = vmatprep.mubr.msk.bf16.mxu1 %vm3025_vm0, %v3024_v0 }
 0x13c   :  { %v3556_v12 = vmax.f32 %v541_v10, %v1019_v11 }
 0x13d   :  { %v398_v13 = vpop.f32.mrb[36].mxu0  ;;  %v876_v14 = vpop.f32.mrb[36].mxu1 }
 0x13e   :  { %v399_v16 = vadd.f32 %v3390_v63, %v398_v13  ;;  %v877_v18 = vadd.f32 %v3390_v63, %v876_v14  ;;  %v2502_v21 = vpop.f32.mrb[37].mxu0  ;;  %v2618_v22 = vpop.f32.mrb[37].mxu1 }
 0x13f   :  { %v401_v27 = vpop.f32.mrb[38].mxu0  ;;  %v879_v28 = vpop.f32.mrb[38].mxu1 }
 0x140   :  { %v542_v29 = vmax.f32 %v399_v16, 0.0  ;;  %v1020_v30 = vmax.f32 %v877_v18, 0.0  ;;  %v402_v31 = vadd.f32 %v3390_v63, %v401_v27  ;;  %v880_v32 = vadd.f32 %v3390_v63, %v879_v28  ;;  %v2503_v33 = vpop.f32.mrb[39].mxu0  ;;  %v2619_v34 = vpop.f32.mrb[39].mxu1  ;;  %v2998_v16 = vld [vmem:[%s4125_s2 + $0x68] sm:$0xff]  }
 0x141   :  { %v2999_v18 = vld [vmem:[%s4126_s3 + $0x68] sm:$0xff]  }
 0x142   :  { %v3568_v35 = vmax.f32 %v542_v29, %v1020_v30  ;;  %v543_v36 = vmax.f32 %v402_v31, 0.0  ;;  %v1021_v39 = vmax.f32 %v880_v32, 0.0  ;;  %2741 = vmatmul.mubr.bf16.gmra.mrb[144].mxu0 %v2994_v24  ;;  %2857 = vmatmul.mubr.bf16.gmra.mrb[144].mxu1 %v2995_v25 }
 0x143   :  { %2744 = vmatprep.mubr.msk.bf16.mxu0 %vm3025_vm0, %v3024_v0  ;;  %2860 = vmatprep.mubr.msk.bf16.mxu1 %vm3025_vm0, %v3024_v0 }
 0x144   :  { %v3574_v41 = vmax.f32 %v543_v36, %v1021_v39 }
 0x145   :  { %v406_v43 = vpop.f32.mrb[40].mxu0  ;;  %v884_v44 = vpop.f32.mrb[40].mxu1 }
 0x146   :  { %v407_v45 = vadd.f32 %v3390_v63, %v406_v43  ;;  %v885_v46 = vadd.f32 %v3390_v63, %v884_v44  ;;  %v2506_v48 = vpop.f32.mrb[41].mxu0  ;;  %v2622_v49 = vpop.f32.mrb[41].mxu1 }
 0x147   :  { %v409_v53 = vpop.f32.mrb[42].mxu0  ;;  %v887_v54 = vpop.f32.mrb[42].mxu1  ;;  %v3000_v48 = vld [vmem:[%s4125_s2 + $0x70] sm:$0xff]  }
 0x148   :  { %v544_v55 = vmax.f32 %v407_v45, 0.0  ;;  %v1022_v56 = vmax.f32 %v885_v46, 0.0  ;;  %v410_v58 = vadd.f32 %v3390_v63, %v409_v53  ;;  %v888_v59 = vadd.f32 %v3390_v63, %v887_v54  ;;  %v2507_v62 = vpop.f32.mrb[43].mxu0  ;;  %v2623_v1 = vpop.f32.mrb[43].mxu1  ;;  %v3001_v49 = vld [vmem:[%s4126_s3 + $0x70] sm:$0xff]  }
 0x14a   :  { %v3586_v3 = vmax.f32 %v544_v55, %v1022_v56  ;;  %v545_v4 = vmax.f32 %v410_v58, 0.0  ;;  %v1023_v5 = vmax.f32 %v888_v59, 0.0  ;;  %2745 = vmatmul.mubr.bf16.gmra.mrb[148].mxu0 %v2996_v51  ;;  %2861 = vmatmul.mubr.bf16.gmra.mrb[148].mxu1 %v2997_v52 }
 0x14b   :  { %2748 = vmatprep.mubr.msk.bf16.mxu0 %vm3025_vm0, %v3024_v0  ;;  %2864 = vmatprep.mubr.msk.bf16.mxu1 %vm3025_vm0, %v3024_v0 }
 0x14c   :  { %v3592_v6 = vmax.f32 %v545_v4, %v1023_v5 }
 0x14d   :  { %v414_v7 = vpop.f32.mrb[44].mxu0  ;;  %v892_v8 = vpop.f32.mrb[44].mxu1 }
 0x14e   :  { %v415_v10 = vadd.f32 %v3390_v63, %v414_v7  ;;  %v893_v11 = vadd.f32 %v3390_v63, %v892_v8  ;;  %v2510_v13 = vpop.f32.mrb[45].mxu0  ;;  %v2626_v14 = vpop.f32.mrb[45].mxu1 }
 0x14f   :  { %v417_v21 = vpop.f32.mrb[46].mxu0  ;;  %v895_v22 = vpop.f32.mrb[46].mxu1 }
 0x150   :  { %v546_v24 = vmax.f32 %v415_v10, 0.0  ;;  %v1024_v25 = vmax.f32 %v893_v11, 0.0  ;;  %v418_v27 = vadd.f32 %v3390_v63, %v417_v21  ;;  %v896_v28 = vadd.f32 %v3390_v63, %v895_v22  ;;  %v2511_v29 = vpop.f32.mrb[47].mxu0  ;;  %v2627_v30 = vpop.f32.mrb[47].mxu1 }
 0x152   :  { %v3604_v31 = vmax.f32 %v546_v24, %v1024_v25  ;;  %v547_v32 = vmax.f32 %v418_v27, 0.0  ;;  %v1025_v33 = vmax.f32 %v896_v28, 0.0  ;;  %2749 = vmatmul.mubr.bf16.gmra.mrb[152].mxu0 %v2998_v16  ;;  %2865 = vmatmul.mubr.bf16.gmra.mrb[152].mxu1 %v2999_v18  ;;  %v3002_v16 = vld [vmem:[%s4125_s2 + $0x78] sm:$0xff]  }
 0x153   :  { %2752 = vmatprep.mubr.msk.bf16.mxu0 %vm3025_vm0, %v3024_v0  ;;  %2868 = vmatprep.mubr.msk.bf16.mxu1 %vm3025_vm0, %v3024_v0  ;;  %v3003_v18 = vld [vmem:[%s4126_s3 + $0x78] sm:$0xff]  }
 0x154   :  { %v3610_v34 = vmax.f32 %v547_v32, %v1025_v33 }
 0x155   :  { %v422_v36 = vpop.f32.mrb[48].mxu0  ;;  %v900_v39 = vpop.f32.mrb[48].mxu1 }
 0x156   :  { %v423_v43 = vadd.f32 %v3390_v63, %v422_v36  ;;  %v901_v44 = vadd.f32 %v3390_v63, %v900_v39  ;;  %v2514_v45 = vpop.f32.mrb[49].mxu0  ;;  %v2630_v46 = vpop.f32.mrb[49].mxu1 }
 0x157   :  { %v425_v51 = vpop.f32.mrb[50].mxu0  ;;  %v903_v52 = vpop.f32.mrb[50].mxu1 }
 0x158   :  { %v548_v53 = vmax.f32 %v423_v43, 0.0  ;;  %v1026_v54 = vmax.f32 %v901_v44, 0.0  ;;  %v426_v55 = vadd.f32 %v3390_v63, %v425_v51  ;;  %v904_v56 = vadd.f32 %v3390_v63, %v903_v52  ;;  %v2515_v58 = vpop.f32.mrb[51].mxu0  ;;  %v2631_v59 = vpop.f32.mrb[51].mxu1  ;;  %v3004_v51 = vld [vmem:[%s4125_s2 + $0x80] sm:$0xff]  }
 0x159   :  { %v3005_v52 = vld [vmem:[%s4126_s3 + $0x80] sm:$0xff]  }
 0x15a   :  { %v3622_v62 = vmax.f32 %v548_v53, %v1026_v54  ;;  %v549_v1 = vmax.f32 %v426_v55, 0.0  ;;  %v1027_v4 = vmax.f32 %v904_v56, 0.0  ;;  %2753 = vmatmul.mubr.bf16.gmra.mrb[156].mxu0 %v3000_v48  ;;  %2869 = vmatmul.mubr.bf16.gmra.mrb[156].mxu1 %v3001_v49 }
 0x15b   :  { %2756 = vmatprep.mubr.msk.bf16.mxu0 %vm3025_vm0, %v3024_v0  ;;  %2872 = vmatprep.mubr.msk.bf16.mxu1 %vm3025_vm0, %v3024_v0 }
 0x15c   :  { %v3628_v5 = vmax.f32 %v549_v1, %v1027_v4 }
 0x15d   :  { %v430_v7 = vpop.f32.mrb[52].mxu0  ;;  %v908_v8 = vpop.f32.mrb[52].mxu1 }
 0x15e   :  { %v431_v10 = vadd.f32 %v3390_v63, %v430_v7  ;;  %v909_v11 = vadd.f32 %v3390_v63, %v908_v8  ;;  %v2518_v13 = vpop.f32.mrb[53].mxu0  ;;  %v2634_v14 = vpop.f32.mrb[53].mxu1 }
 0x15f   :  { %v433_v21 = vpop.f32.mrb[54].mxu0  ;;  %v911_v22 = vpop.f32.mrb[54].mxu1 }
 0x160   :  { %v550_v24 = vmax.f32 %v431_v10, 0.0  ;;  %v1028_v25 = vmax.f32 %v909_v11, 0.0  ;;  %v434_v27 = vadd.f32 %v3390_v63, %v433_v21  ;;  %v912_v28 = vadd.f32 %v3390_v63, %v911_v22  ;;  %v2519_v29 = vpop.f32.mrb[55].mxu0  ;;  %v2635_v30 = vpop.f32.mrb[55].mxu1 }
 0x162   :  { %v3640_v32 = vmax.f32 %v550_v24, %v1028_v25  ;;  %v551_v33 = vmax.f32 %v434_v27, 0.0  ;;  %v1029_v36 = vmax.f32 %v912_v28, 0.0  ;;  %2757 = vmatmul.mubr.bf16.gmra.mrb[160].mxu0 %v3002_v16  ;;  %2873 = vmatmul.mubr.bf16.gmra.mrb[160].mxu1 %v3003_v18  ;;  %v3006_v24 = vld [vmem:[%s4125_s2 + $0x88] sm:$0xff]  }
 0x163   :  { %2760 = vmatprep.mubr.msk.bf16.mxu0 %vm3025_vm0, %v3024_v0  ;;  %2876 = vmatprep.mubr.msk.bf16.mxu1 %vm3025_vm0, %v3024_v0  ;;  %v3007_v25 = vld [vmem:[%s4126_s3 + $0x88] sm:$0xff]  }
 0x164   :  { %v3646_v39 = vmax.f32 %v551_v33, %v1029_v36 }
 0x165   :  { %v438_v43 = vpop.f32.mrb[56].mxu0  ;;  %v916_v44 = vpop.f32.mrb[56].mxu1 }
 0x166   :  { %v439_v45 = vadd.f32 %v3390_v63, %v438_v43  ;;  %v917_v46 = vadd.f32 %v3390_v63, %v916_v44  ;;  %v2522_v48 = vpop.f32.mrb[57].mxu0  ;;  %v2638_v49 = vpop.f32.mrb[57].mxu1 }
 0x167   :  { %v441_v53 = vpop.f32.mrb[58].mxu0  ;;  %v919_v54 = vpop.f32.mrb[58].mxu1 }
 0x168   :  { %v552_v55 = vmax.f32 %v439_v45, 0.0  ;;  %v1030_v56 = vmax.f32 %v917_v46, 0.0  ;;  %v442_v58 = vadd.f32 %v3390_v63, %v441_v53  ;;  %v920_v59 = vadd.f32 %v3390_v63, %v919_v54  ;;  %v2523_v1 = vpop.f32.mrb[59].mxu0  ;;  %v2639_v4 = vpop.f32.mrb[59].mxu1 }
 0x16a   :  { %v3658_v7 = vmax.f32 %v552_v55, %v1030_v56  ;;  %v553_v8 = vmax.f32 %v442_v58, 0.0  ;;  %v1031_v10 = vmax.f32 %v920_v59, 0.0  ;;  %2761 = vmatmul.mubr.bf16.gmra.mrb[164].mxu0 %v3004_v51  ;;  %2877 = vmatmul.mubr.bf16.gmra.mrb[164].mxu1 %v3005_v52  ;;  %v3008_v58 = vld [vmem:[%s4125_s2 + $0x90] sm:$0xff]  }
 0x16b   :  { %2764 = vmatprep.mubr.msk.bf16.mxu0 %vm3025_vm0, %v3024_v0  ;;  %2880 = vmatprep.mubr.msk.bf16.mxu1 %vm3025_vm0, %v3024_v0  ;;  %v3009_v59 = vld [vmem:[%s4126_s3 + $0x90] sm:$0xff]  }
 0x16c   :  { %v3664_v11 = vmax.f32 %v553_v8, %v1031_v10 }
 0x16d   :  { %v446_v13 = vpop.f32.mrb[60].mxu0  ;;  %v924_v14 = vpop.f32.mrb[60].mxu1 }
 0x16e   :  { %v447_v16 = vadd.f32 %v3390_v63, %v446_v13  ;;  %v925_v18 = vadd.f32 %v3390_v63, %v924_v14  ;;  %v2526_v21 = vpop.f32.mrb[61].mxu0  ;;  %v2642_v22 = vpop.f32.mrb[61].mxu1 }
 0x16f   :  { %v449_v27 = vpop.f32.mrb[62].mxu0  ;;  %v927_v28 = vpop.f32.mrb[62].mxu1 }
 0x170   :  { %v554_v29 = vmax.f32 %v447_v16, 0.0  ;;  %v1032_v30 = vmax.f32 %v925_v18, 0.0  ;;  %v450_v33 = vadd.f32 %v3390_v63, %v449_v27  ;;  %v928_v36 = vadd.f32 %v3390_v63, %v927_v28  ;;  %v2527_v43 = vpop.f32.mrb[63].mxu0  ;;  %v2643_v44 = vpop.f32.mrb[63].mxu1 }
 0x171   :  { %v3010_v43 = vld [vmem:[%s4125_s2 + $0x98] sm:$0xff]  }
 0x172   :  { %v3676_v45 = vmax.f32 %v554_v29, %v1032_v30  ;;  %v555_v46 = vmax.f32 %v450_v33, 0.0  ;;  %v1033_v48 = vmax.f32 %v928_v36, 0.0  ;;  %2765 = vmatmul.mubr.bf16.gmra.mrb[168].mxu0 %v3006_v24  ;;  %2881 = vmatmul.mubr.bf16.gmra.mrb[168].mxu1 %v3007_v25  ;;  %v3011_v44 = vld [vmem:[%s4126_s3 + $0x98] sm:$0xff]  }
 0x173   :  { %2768 = vmatprep.mubr.msk.bf16.mxu0 %vm3025_vm0, %v3024_v0  ;;  %2884 = vmatprep.mubr.msk.bf16.mxu1 %vm3025_vm0, %v3024_v0 }
 0x174   :  { %v3682_v49 = vmax.f32 %v555_v46, %v1033_v48 }
 0x175   :  { %v454_v51 = vpop.f32.mrb[64].mxu0  ;;  %v932_v52 = vpop.f32.mrb[64].mxu1 }
 0x176   :  { %v455_v53 = vadd.f32 %v3390_v63, %v454_v51  ;;  %v933_v54 = vadd.f32 %v3390_v63, %v932_v52  ;;  %v2530_v55 = vpop.f32.mrb[65].mxu0  ;;  %v2646_v56 = vpop.f32.mrb[65].mxu1 }
 0x177   :  { %v457_v1 = vpop.f32.mrb[66].mxu0  ;;  %v935_v4 = vpop.f32.mrb[66].mxu1 }
 0x178   :  { %v556_v8 = vmax.f32 %v455_v53, 0.0  ;;  %v1034_v10 = vmax.f32 %v933_v54, 0.0  ;;  %v458_v13 = vadd.f32 %v3390_v63, %v457_v1  ;;  %v936_v14 = vadd.f32 %v3390_v63, %v935_v4  ;;  %v2531_v16 = vpop.f32.mrb[67].mxu0  ;;  %v2647_v18 = vpop.f32.mrb[67].mxu1 }
 0x17a   :  { %v3694_v21 = vmax.f32 %v556_v8, %v1034_v10  ;;  %v557_v22 = vmax.f32 %v458_v13, 0.0  ;;  %v1035_v24 = vmax.f32 %v936_v14, 0.0  ;;  %2769 = vmatmul.mubr.bf16.gmra.mrb[172].mxu0 %v3008_v58  ;;  %2885 = vmatmul.mubr.bf16.gmra.mrb[172].mxu1 %v3009_v59 }
 0x17b   :  { %2772 = vmatprep.mubr.msk.bf16.mxu0 %vm3025_vm0, %v3024_v0  ;;  %2888 = vmatprep.mubr.msk.bf16.mxu1 %vm3025_vm0, %v3024_v0 }
 0x17c   :  { %v3700_v25 = vmax.f32 %v557_v22, %v1035_v24  ;;  %v3012_v22 = vld [vmem:[%s4125_s2 + $0xa0] sm:$0xff]  }
 0x17d   :  { %v462_v27 = vpop.f32.mrb[68].mxu0  ;;  %v940_v28 = vpop.f32.mrb[68].mxu1  ;;  %v3013_v24 = vld [vmem:[%s4126_s3 + $0xa0] sm:$0xff]  }
 0x17e   :  { %v463_v29 = vadd.f32 %v3390_v63, %v462_v27  ;;  %v941_v30 = vadd.f32 %v3390_v63, %v940_v28  ;;  %v2534_v33 = vpop.f32.mrb[69].mxu0  ;;  %v2650_v36 = vpop.f32.mrb[69].mxu1 }
 0x17f   :  { %v465_v46 = vpop.f32.mrb[70].mxu0  ;;  %v943_v48 = vpop.f32.mrb[70].mxu1 }
 0x180   :  { %v558_v51 = vmax.f32 %v463_v29, 0.0  ;;  %v1036_v52 = vmax.f32 %v941_v30, 0.0  ;;  %v466_v53 = vadd.f32 %v3390_v63, %v465_v46  ;;  %v944_v54 = vadd.f32 %v3390_v63, %v943_v48  ;;  %v2535_v55 = vpop.f32.mrb[71].mxu0  ;;  %v2651_v56 = vpop.f32.mrb[71].mxu1 }
 0x182   :  { %v3712_v58 = vmax.f32 %v558_v51, %v1036_v52  ;;  %v559_v59 = vmax.f32 %v466_v53, 0.0  ;;  %v1037_v1 = vmax.f32 %v944_v54, 0.0  ;;  %2773 = vmatmul.mubr.bf16.gmra.mrb[176].mxu0 %v3010_v43  ;;  %2889 = vmatmul.mubr.bf16.gmra.mrb[176].mxu1 %v3011_v44 }
 0x183   :  { %2776 = vmatprep.mubr.msk.bf16.mxu0 %vm3025_vm0, %v3024_v0  ;;  %2892 = vmatprep.mubr.msk.bf16.mxu1 %vm3025_vm0, %v3024_v0 }
 0x184   :  { %v3718_v4 = vmax.f32 %v559_v59, %v1037_v1 }
 0x185   :  { %v470_v8 = vpop.f32.mrb[72].mxu0  ;;  %v948_v10 = vpop.f32.mrb[72].mxu1 }
 0x186   :  { %v471_v13 = vadd.f32 %v3390_v63, %v470_v8  ;;  %v949_v14 = vadd.f32 %v3390_v63, %v948_v10  ;;  %v2538_v16 = vpop.f32.mrb[73].mxu0  ;;  %v2654_v18 = vpop.f32.mrb[73].mxu1  ;;  %v3014_v8 = vld [vmem:[%s4125_s2 + $0xa8] sm:$0xff]  }
 0x187   :  { %v473_v27 = vpop.f32.mrb[74].mxu0  ;;  %v951_v28 = vpop.f32.mrb[74].mxu1  ;;  %v3015_v10 = vld [vmem:[%s4126_s3 + $0xa8] sm:$0xff]  }
 0x188   :  { %v560_v29 = vmax.f32 %v471_v13, 0.0  ;;  %v1038_v30 = vmax.f32 %v949_v14, 0.0  ;;  %v474_v33 = vadd.f32 %v3390_v63, %v473_v27  ;;  %v952_v36 = vadd.f32 %v3390_v63, %v951_v28  ;;  %v2539_v43 = vpop.f32.mrb[75].mxu0  ;;  %v2655_v44 = vpop.f32.mrb[75].mxu1 }
 0x18a   :  { %v3730_v46 = vmax.f32 %v560_v29, %v1038_v30  ;;  %v561_v48 = vmax.f32 %v474_v33, 0.0  ;;  %v1039_v51 = vmax.f32 %v952_v36, 0.0  ;;  %2777 = vmatmul.mubr.bf16.gmra.mrb[180].mxu0 %v3012_v22  ;;  %2893 = vmatmul.mubr.bf16.gmra.mrb[180].mxu1 %v3013_v24 }
 0x18b   :  { %2780 = vmatprep.mubr.msk.bf16.mxu0 %vm3025_vm0, %v3024_v0  ;;  %2896 = vmatprep.mubr.msk.bf16.mxu1 %vm3025_vm0, %v3024_v0 }
 0x18c   :  { %v3736_v52 = vmax.f32 %v561_v48, %v1039_v51 }
 0x18d   :  { %v478_v53 = vpop.f32.mrb[76].mxu0  ;;  %v956_v54 = vpop.f32.mrb[76].mxu1 }
 0x18e   :  { %v479_v55 = vadd.f32 %v3390_v63, %v478_v53  ;;  %v957_v56 = vadd.f32 %v3390_v63, %v956_v54  ;;  %v2542_v59 = vpop.f32.mrb[77].mxu0  ;;  %v2658_v1 = vpop.f32.mrb[77].mxu1 }
 0x18f   :  { %v481_v13 = vpop.f32.mrb[78].mxu0  ;;  %v959_v14 = vpop.f32.mrb[78].mxu1 }
 0x190   :  { %v562_v16 = vmax.f32 %v479_v55, 0.0  ;;  %v1040_v18 = vmax.f32 %v957_v56, 0.0  ;;  %v482_v22 = vadd.f32 %v3390_v63, %v481_v13  ;;  %v960_v24 = vadd.f32 %v3390_v63, %v959_v14  ;;  %v2543_v27 = vpop.f32.mrb[79].mxu0  ;;  %v2659_v28 = vpop.f32.mrb[79].mxu1  ;;  %v3016_v55 = vld [vmem:[%s4125_s2 + $0xb0] sm:$0xff]  }
 0x191   :  { %v3017_v56 = vld [vmem:[%s4126_s3 + $0xb0] sm:$0xff]  }
 0x192   :  { %v3748_v29 = vmax.f32 %v562_v16, %v1040_v18  ;;  %v563_v30 = vmax.f32 %v482_v22, 0.0  ;;  %v1041_v33 = vmax.f32 %v960_v24, 0.0  ;;  %2781 = vmatmul.mubr.bf16.gmra.mrb[184].mxu0 %v3014_v8  ;;  %2897 = vmatmul.mubr.bf16.gmra.mrb[184].mxu1 %v3015_v10 }
 0x193   :  { %2784 = vmatprep.mubr.msk.bf16.mxu0 %vm3025_vm0, %v3024_v0  ;;  %2900 = vmatprep.mubr.msk.bf16.mxu1 %vm3025_vm0, %v3024_v0 }
 0x194   :  { %v3754_v36 = vmax.f32 %v563_v30, %v1041_v33 }
 0x195   :  { %v486_v43 = vpop.f32.mrb[80].mxu0  ;;  %v964_v44 = vpop.f32.mrb[80].mxu1 }
 0x196   :  { %v487_v48 = vadd.f32 %v3390_v63, %v486_v43  ;;  %v965_v51 = vadd.f32 %v3390_v63, %v964_v44  ;;  %v2546_v53 = vpop.f32.mrb[81].mxu0  ;;  %v2662_v54 = vpop.f32.mrb[81].mxu1 }
 0x197   :  { %v489_v59 = vpop.f32.mrb[82].mxu0  ;;  %v967_v1 = vpop.f32.mrb[82].mxu1  ;;  %v3018_v53 = vld [vmem:[%s4125_s2 + $0xb8] sm:$0xff]  }
 0x198   :  { %v564_v8 = vmax.f32 %v487_v48, 0.0  ;;  %v1042_v10 = vmax.f32 %v965_v51, 0.0  ;;  %v490_v13 = vadd.f32 %v3390_v63, %v489_v59  ;;  %v968_v14 = vadd.f32 %v3390_v63, %v967_v1  ;;  %v2547_v16 = vpop.f32.mrb[83].mxu0  ;;  %v2663_v18 = vpop.f32.mrb[83].mxu1  ;;  %v3019_v54 = vld [vmem:[%s4126_s3 + $0xb8] sm:$0xff]  }
 0x19a   :  { %v3766_v22 = vmax.f32 %v564_v8, %v1042_v10  ;;  %v565_v24 = vmax.f32 %v490_v13, 0.0  ;;  %v1043_v27 = vmax.f32 %v968_v14, 0.0  ;;  %2785 = vmatmul.mubr.bf16.gmra.mrb[188].mxu0 %v3016_v55  ;;  %2901 = vmatmul.mubr.bf16.gmra.mrb[188].mxu1 %v3017_v56  ;;  %v3785_v8 = vld [vmem:[%s4127_s5] ss:$0 sm:$0xff] }
 0x19b   :  { %2788 = vmatprep.mubr.msk.bf16.mxu0 %vm3025_vm0, %v3024_v0  ;;  %2904 = vmatprep.mubr.msk.bf16.mxu1 %vm3025_vm0, %v3024_v0 }
 0x19c   :  { %v3772_v28 = vmax.f32 %v565_v24, %v1043_v27 }
 0x19d   :  { %v494_v30 = vpop.f32.mrb[84].mxu0  ;;  %v972_v33 = vpop.f32.mrb[84].mxu1 }
 0x19e   :  { %v495_v43 = vadd.f32 %v3390_v63, %v494_v30  ;;  %v973_v44 = vadd.f32 %v3390_v63, %v972_v33  ;;  %v2550_v48 = vpop.f32.mrb[85].mxu0  ;;  %v2666_v51 = vpop.f32.mrb[85].mxu1 }
 0x19f   :  { %v497_v55 = vpop.f32.mrb[86].mxu0  ;;  %v975_v56 = vpop.f32.mrb[86].mxu1 }
 0x1a0   :  { %v566_v59 = vmax.f32 %v495_v43, 0.0  ;;  %v1044_v1 = vmax.f32 %v973_v44, 0.0  ;;  %v498_v63 = vadd.f32 %v3785_v8, %v497_v55  ;;  %v976_v10 = vadd.f32 %v3785_v8, %v975_v56  ;;  %v2551_v13 = vpop.f32.mrb[87].mxu0  ;;  %v2667_v14 = vpop.f32.mrb[87].mxu1 }
 0x1a2   :  { %v3789_v16 = vmax.f32 %v566_v59, %v1044_v1  ;;  %v567_v18 = vmax.f32 %v498_v63, 0.0  ;;  %v1045_v24 = vmax.f32 %v976_v10, 0.0  ;;  %2789 = vmatmul.mubr.bf16.gmra.mrb[192].mxu0 %v3018_v53  ;;  %2905 = vmatmul.mubr.bf16.gmra.mrb[192].mxu1 %v3019_v54  ;;  %v3020_v53 = vld [vmem:[%s4125_s2 + $0xc0] ss:$0 sps:$4 sm:$0xff]  }
 0x1a3   :  { %2792 = vmatprep.mubr.msk.bf16.mxu0 %vm3025_vm0, %v3024_v0  ;;  %2908 = vmatprep.mubr.msk.bf16.mxu1 %vm3025_vm0, %v3024_v0  ;;  %v3021_v54 = vld [vmem:[%s4126_s3 + $0xc0] ss:$0 sps:$4 sm:$0xff]  }
 0x1a4   :  { %v3795_v27 = vmax.f32 %v567_v18, %v1045_v24 }
 0x1a5   :  { %v502_v30 = vpop.f32.mrb[88].mxu0  ;;  %v980_v33 = vpop.f32.mrb[88].mxu1 }
 0x1a6   :  { %4129 = vst [vmem:[#allocation2_spill] sm:$0xff] %v3795_v27  ;;  %v503_v43 = vadd.f32 %v3785_v8, %v502_v30  ;;  %v981_v44 = vadd.f32 %v3785_v8, %v980_v33  ;;  %v2554_v48 = vpop.f32.mrb[89].mxu0  ;;  %v2670_v51 = vpop.f32.mrb[89].mxu1 }
 0x1a7   :  { %v505_v55 = vpop.f32.mrb[90].mxu0  ;;  %v983_v0 = vpop.f32.mrb[90].mxu1 }
 0x1a8   :  { %v568_v56 = vmax.f32 %v503_v43, 0.0  ;;  %v1046_v59 = vmax.f32 %v981_v44, 0.0  ;;  %v506_v1 = vadd.f32 %v3785_v8, %v505_v55  ;;  %v984_v63 = vadd.f32 %v3785_v8, %v983_v0  ;;  %v2555_v10 = vpop.f32.mrb[91].mxu0  ;;  %v2671_v13 = vpop.f32.mrb[91].mxu1 }
 0x1aa   :  { %v3807_v14 = vmax.f32 %v568_v56, %v1046_v59  ;;  %v569_v18 = vmax.f32 %v506_v1, 0.0  ;;  %v1047_v24 = vmax.f32 %v984_v63, 0.0  ;;  %2793 = vmatmul.mubr.bf16.gmra.mrb[196].mxu0 %v3020_v53  ;;  %2909 = vmatmul.mubr.bf16.gmra.mrb[196].mxu1 %v3021_v54 }
 0x1ac   :  { %4130 = vst [vmem:[#allocation3_spill] sm:$0xff] %v3807_v14  ;;  %v3809_v30 = vmax.f32 %v569_v18, %v1047_v24 }
 0x1ad   :  { %v510_v33 = vpop.f32.mrb[92].mxu0  ;;  %v988_v48 = vpop.f32.mrb[92].mxu1 }
 0x1ae   :  { %4131 = vst [vmem:[#allocation4_spill] sm:$0xff] %v3809_v30  ;;  %v511_v51 = vadd.f32 %v3785_v8, %v510_v33  ;;  %v989_v43 = vadd.f32 %v3785_v8, %v988_v48  ;;  %v2558_v44 = vpop.f32.mrb[93].mxu0  ;;  %v2674_v55 = vpop.f32.mrb[93].mxu1 }
 0x1af   :  { %v513_v27 = vpop.f32.mrb[94].mxu0  ;;  %v991_v0 = vpop.f32.mrb[94].mxu1 }
 0x1b0   :  { %v570_v10 = vmax.f32 %v511_v51, 0.0  ;;  %v1048_v13 = vmax.f32 %v989_v43, 0.0  ;;  %v514_v56 = vadd.f32 %v3785_v8, %v513_v27  ;;  %v992_v59 = vadd.f32 %v3785_v8, %v991_v0  ;;  %v2559_v53 = vpop.f32.mrb[95].mxu0  ;;  %v2675_v54 = vpop.f32.mrb[95].mxu1 }
 0x1b2   :  { %v3815_v1 = vmax.f32 %v570_v10, %v1048_v13  ;;  %v571_v63 = vmax.f32 %v514_v56, 0.0  ;;  %v1049_v18 = vmax.f32 %v992_v59, 0.0 }
 0x1b4   :  { %v3817_v24 = vmax.f32 %v571_v63, %v1049_v18 }
 0x1b5   :  { %v518_v33 = vpop.f32.mrb[96].mxu0  ;;  %v996_v48 = vpop.f32.mrb[96].mxu1 }
 0x1b6   :  { %4132 = vst [vmem:[#allocation5_spill] sm:$0xff] %v3817_v24  ;;  %v519_v44 = vadd.f32 %v3785_v8, %v518_v33  ;;  %v997_v55 = vadd.f32 %v3785_v8, %v996_v48  ;;  %v2562_v51 = vpop.f32.mrb[97].mxu0  ;;  %v2678_v43 = vpop.f32.mrb[97].mxu1 }
 0x1b7   :  { %v521_v30 = vpop.f32.mrb[98].mxu0  ;;  %v999_v27 = vpop.f32.mrb[98].mxu1 }
 0x1b8   :  { %v572_v14 = vmax.f32 %v519_v44, 0.0  ;;  %v1050_v0 = vmax.f32 %v997_v55, 0.0  ;;  %v2563_v53 = vpop.f32.mrb[99].mxu0  ;;  %v2679_v54 = vpop.f32.mrb[99].mxu1 }
 0x1ba   :  { %v3821_v10 = vmax.f32 %v572_v14, %v1050_v0 }
 0x1bc   :  { %4133 = vst [vmem:[#allocation6_spill] sm:$0xff] %v3821_v10 }
 0x1bd   :  { %v1331_v13 = vpop.f32.mrb[100].mxu0  ;;  %v1809_v56 = vpop.f32.mrb[100].mxu1 }
 0x1be   :  { %v1332_v59 = vadd.f32 %v3785_v8, %v1331_v13  ;;  %v1810_v63 = vadd.f32 %v3785_v8, %v1809_v56  ;;  %v2698_v18 = vpop.f32.mrb[101].mxu0  ;;  %v2814_v33 = vpop.f32.mrb[101].mxu1 }
 0x1bf   :  { %v1334_v24 = vpop.f32.mrb[102].mxu0  ;;  %v1812_v48 = vpop.f32.mrb[102].mxu1 }
 0x1c0   :  { %v1529_v51 = vmax.f32 %v1332_v59, 0.0  ;;  %v2007_v43 = vmax.f32 %v1810_v63, 0.0  ;;  %v1335_v30 = vadd.f32 %v3785_v8, %v1334_v24  ;;  %v1813_v44 = vadd.f32 %v3785_v8, %v1812_v48  ;;  %v2699_v55 = vpop.f32.mrb[103].mxu0  ;;  %v2815_v27 = vpop.f32.mrb[103].mxu1 }
 0x1c2   :  { %v2056_v14 = vmax.f32 %v1529_v51, %v2007_v43  ;;  %v1530_v0 = vmax.f32 %v1335_v30, 0.0  ;;  %v2008_v53 = vmax.f32 %v1813_v44, 0.0 }
 0x1c4   :  { %v2105_v54 = vmax.f32 %v3406_v17, %v2056_v14  ;;  %v2057_v13 = vmax.f32 %v1530_v0, %v2008_v53 }
 0x1c5   :  { %v1339_v10 = vpop.f32.mrb[104].mxu0  ;;  %v1817_v56 = vpop.f32.mrb[104].mxu1 }
 0x1c6   :  { %2154 = vst [vmem:[%s4128_s6] sm:$0xff] %v2105_v54  ;;  %v2106_v59 = vmax.f32 %v3412_v20, %v2057_v13  ;;  %v1340_v24 = vadd.f32 %v3785_v8, %v1339_v10  ;;  %v1818_v63 = vadd.f32 %v3785_v8, %v1817_v56  ;;  %v2702_v18 = vpop.f32.mrb[105].mxu0  ;;  %v2818_v33 = vpop.f32.mrb[105].mxu1 }
 0x1c7   :  { %v1342_v48 = vpop.f32.mrb[106].mxu0  ;;  %v1820_v51 = vpop.f32.mrb[106].mxu1 }
 0x1c8   :  { %2155 = vst [vmem:[%s4128_s6 + $0x8] sm:$0xff] %v2106_v59  ;;  %v1531_v17 = vmax.f32 %v1340_v24, 0.0  ;;  %v2009_v43 = vmax.f32 %v1818_v63, 0.0  ;;  %v1343_v30 = vadd.f32 %v3785_v8, %v1342_v48  ;;  %v1821_v44 = vadd.f32 %v3785_v8, %v1820_v51  ;;  %v2703_v55 = vpop.f32.mrb[107].mxu0  ;;  %v2819_v20 = vpop.f32.mrb[107].mxu1 }
 0x1ca   :  { %v2058_v27 = vmax.f32 %v1531_v17, %v2009_v43  ;;  %v1532_v10 = vmax.f32 %v1343_v30, 0.0  ;;  %v2010_v14 = vmax.f32 %v1821_v44, 0.0 }
 0x1cc   :  { %v2107_v0 = vmax.f32 %v3424_v37, %v2058_v27  ;;  %v2059_v53 = vmax.f32 %v1532_v10, %v2010_v14 }
 0x1cd   :  { %v1347_v54 = vpop.f32.mrb[108].mxu0  ;;  %v1825_v13 = vpop.f32.mrb[108].mxu1 }
 0x1ce   :  { %2156 = vst [vmem:[%s4128_s6 + $0x10] sm:$0xff] %v2107_v0  ;;  %v2108_v56 = vmax.f32 %v3430_v40, %v2059_v53  ;;  %v1348_v59 = vadd.f32 %v3785_v8, %v1347_v54  ;;  %v1826_v24 = vadd.f32 %v3785_v8, %v1825_v13  ;;  %v2706_v63 = vpop.f32.mrb[109].mxu0  ;;  %v2822_v18 = vpop.f32.mrb[109].mxu1 }
 0x1cf   :  { %v1350_v33 = vpop.f32.mrb[110].mxu0  ;;  %v1828_v48 = vpop.f32.mrb[110].mxu1 }
 0x1d0   :  { %2157 = vst [vmem:[%s4128_s6 + $0x18] sm:$0xff] %v2108_v56  ;;  %v1533_v37 = vmax.f32 %v1348_v59, 0.0  ;;  %v2011_v51 = vmax.f32 %v1826_v24, 0.0  ;;  %v1351_v17 = vadd.f32 %v3785_v8, %v1350_v33  ;;  %v1829_v43 = vadd.f32 %v3785_v8, %v1828_v48  ;;  %v2707_v30 = vpop.f32.mrb[111].mxu0  ;;  %v2823_v40 = vpop.f32.mrb[111].mxu1 }
 0x1d2   :  { %v2060_v44 = vmax.f32 %v1533_v37, %v2011_v51  ;;  %v1534_v55 = vmax.f32 %v1351_v17, 0.0  ;;  %v2012_v20 = vmax.f32 %v1829_v43, 0.0 }
 0x1d4   :  { %v2109_v27 = vmax.f32 %v3442_v57, %v2060_v44  ;;  %v2061_v10 = vmax.f32 %v1534_v55, %v2012_v20 }
 0x1d5   :  { %v1355_v14 = vpop.f32.mrb[112].mxu0  ;;  %v1833_v0 = vpop.f32.mrb[112].mxu1 }
 0x1d6   :  { %2158 = vst [vmem:[%s4128_s6 + $0x20] sm:$0xff] %v2109_v27  ;;  %v2110_v53 = vmax.f32 %v3448_v60, %v2061_v10  ;;  %v1356_v54 = vadd.f32 %v3785_v8, %v1355_v14  ;;  %v1834_v13 = vadd.f32 %v3785_v8, %v1833_v0  ;;  %v2710_v56 = vpop.f32.mrb[113].mxu0  ;;  %v2826_v59 = vpop.f32.mrb[113].mxu1 }
 0x1d7   :  { %v1358_v24 = vpop.f32.mrb[114].mxu0  ;;  %v1836_v63 = vpop.f32.mrb[114].mxu1 }
 0x1d8   :  { %2159 = vst [vmem:[%s4128_s6 + $0x28] sm:$0xff] %v2110_v53  ;;  %v1535_v57 = vmax.f32 %v1356_v54, 0.0  ;;  %v2013_v18 = vmax.f32 %v1834_v13, 0.0  ;;  %v1359_v33 = vadd.f32 %v3785_v8, %v1358_v24  ;;  %v1837_v48 = vadd.f32 %v3785_v8, %v1836_v63  ;;  %v2711_v37 = vpop.f32.mrb[115].mxu0  ;;  %v2827_v60 = vpop.f32.mrb[115].mxu1 }
 0x1da   :  { %v2062_v51 = vmax.f32 %v1535_v57, %v2013_v18  ;;  %v1536_v17 = vmax.f32 %v1359_v33, 0.0  ;;  %v2014_v43 = vmax.f32 %v1837_v48, 0.0 }
 0x1dc   :  { %v2111_v30 = vmax.f32 %v3460_v15, %v2062_v51  ;;  %v2063_v40 = vmax.f32 %v1536_v17, %v2014_v43 }
 0x1dd   :  { %v1363_v44 = vpop.f32.mrb[116].mxu0  ;;  %v1841_v55 = vpop.f32.mrb[116].mxu1 }
 0x1de   :  { %2160 = vst [vmem:[%s4128_s6 + $0x30] sm:$0xff] %v2111_v30  ;;  %v2112_v20 = vmax.f32 %v3466_v19, %v2063_v40  ;;  %v1364_v27 = vadd.f32 %v3785_v8, %v1363_v44  ;;  %v1842_v10 = vadd.f32 %v3785_v8, %v1841_v55  ;;  %v2714_v14 = vpop.f32.mrb[117].mxu0  ;;  %v2830_v0 = vpop.f32.mrb[117].mxu1 }
 0x1df   :  { %v1366_v53 = vpop.f32.mrb[118].mxu0  ;;  %v1844_v54 = vpop.f32.mrb[118].mxu1 }
 0x1e0   :  { %2161 = vst [vmem:[%s4128_s6 + $0x38] sm:$0xff] %v2112_v20  ;;  %v1537_v15 = vmax.f32 %v1364_v27, 0.0  ;;  %v2015_v13 = vmax.f32 %v1842_v10, 0.0  ;;  %v1367_v56 = vadd.f32 %v3785_v8, %v1366_v53  ;;  %v1845_v59 = vadd.f32 %v3785_v8, %v1844_v54  ;;  %v2715_v24 = vpop.f32.mrb[119].mxu0  ;;  %v2831_v19 = vpop.f32.mrb[119].mxu1 }
 0x1e2   :  { %v2064_v63 = vmax.f32 %v1537_v15, %v2015_v13  ;;  %v1538_v57 = vmax.f32 %v1367_v56, 0.0  ;;  %v2016_v18 = vmax.f32 %v1845_v59, 0.0 }
 0x1e4   :  { %v2113_v33 = vmax.f32 %v3478_v38, %v2064_v63  ;;  %v2065_v48 = vmax.f32 %v1538_v57, %v2016_v18 }
 0x1e5   :  { %v1371_v37 = vpop.f32.mrb[120].mxu0  ;;  %v1849_v60 = vpop.f32.mrb[120].mxu1 }
 0x1e6   :  { %2162 = vst [vmem:[%s4128_s6 + $0x40] sm:$0xff] %v2113_v33  ;;  %v2114_v51 = vmax.f32 %v3484_v42, %v2065_v48  ;;  %v1372_v17 = vadd.f32 %v3785_v8, %v1371_v37  ;;  %v1850_v43 = vadd.f32 %v3785_v8, %v1849_v60  ;;  %v2718_v30 = vpop.f32.mrb[121].mxu0  ;;  %v2834_v40 = vpop.f32.mrb[121].mxu1 }
 0x1e7   :  { %v1374_v44 = vpop.f32.mrb[122].mxu0  ;;  %v1852_v55 = vpop.f32.mrb[122].mxu1 }
 0x1e8   :  { %2163 = vst [vmem:[%s4128_s6 + $0x48] sm:$0xff] %v2114_v51  ;;  %v1539_v38 = vmax.f32 %v1372_v17, 0.0  ;;  %v2017_v20 = vmax.f32 %v1850_v43, 0.0  ;;  %v1375_v27 = vadd.f32 %v3785_v8, %v1374_v44  ;;  %v1853_v10 = vadd.f32 %v3785_v8, %v1852_v55  ;;  %v2719_v14 = vpop.f32.mrb[123].mxu0  ;;  %v2835_v42 = vpop.f32.mrb[123].mxu1 }
 0x1ea   :  { %v2066_v0 = vmax.f32 %v1539_v38, %v2017_v20  ;;  %v1540_v53 = vmax.f32 %v1375_v27, 0.0  ;;  %v2018_v54 = vmax.f32 %v1853_v10, 0.0 }
 0x1ec   :  { %v2115_v15 = vmax.f32 %v3496_v61, %v2066_v0  ;;  %v2067_v13 = vmax.f32 %v1540_v53, %v2018_v54 }
 0x1ed   :  { %v1379_v56 = vpop.f32.mrb[124].mxu0  ;;  %v1857_v59 = vpop.f32.mrb[124].mxu1 }
 0x1ee   :  { %2164 = vst [vmem:[%s4128_s6 + $0x50] sm:$0xff] %v2115_v15  ;;  %v2116_v24 = vmax.f32 %v3502_v2, %v2067_v13  ;;  %v1380_v19 = vadd.f32 %v3785_v8, %v1379_v56  ;;  %v1858_v63 = vadd.f32 %v3785_v8, %v1857_v59  ;;  %v2722_v57 = vpop.f32.mrb[125].mxu0  ;;  %v2838_v18 = vpop.f32.mrb[125].mxu1 }
 0x1ef   :  { %v1382_v33 = vpop.f32.mrb[126].mxu0  ;;  %v1860_v48 = vpop.f32.mrb[126].mxu1 }
 0x1f0   :  { %2165 = vst [vmem:[%s4128_s6 + $0x58] sm:$0xff] %v2116_v24  ;;  %v1541_v61 = vmax.f32 %v1380_v19, 0.0  ;;  %v2019_v37 = vmax.f32 %v1858_v63, 0.0  ;;  %v1383_v60 = vadd.f32 %v3785_v8, %v1382_v33  ;;  %v1861_v51 = vadd.f32 %v3785_v8, %v1860_v48  ;;  %v2723_v17 = vpop.f32.mrb[127].mxu0  ;;  %v2839_v2 = vpop.f32.mrb[127].mxu1 }
 0x1f2   :  { %v2068_v43 = vmax.f32 %v1541_v61, %v2019_v37  ;;  %v1542_v30 = vmax.f32 %v1383_v60, 0.0  ;;  %v2020_v40 = vmax.f32 %v1861_v51, 0.0 }
 0x1f4   :  { %v2117_v44 = vmax.f32 %v3514_v23, %v2068_v43  ;;  %v2069_v55 = vmax.f32 %v1542_v30, %v2020_v40 }
 0x1f5   :  { %v1387_v38 = vpop.f32.mrb[128].mxu0  ;;  %v1865_v20 = vpop.f32.mrb[128].mxu1 }
 0x1f6   :  { %2166 = vst [vmem:[%s4128_s6 + $0x60] sm:$0xff] %v2117_v44  ;;  %v2118_v27 = vmax.f32 %v3520_v26, %v2069_v55  ;;  %v1388_v10 = vadd.f32 %v3785_v8, %v1387_v38  ;;  %v1866_v14 = vadd.f32 %v3785_v8, %v1865_v20  ;;  %v2726_v42 = vpop.f32.mrb[129].mxu0  ;;  %v2842_v0 = vpop.f32.mrb[129].mxu1 }
 0x1f7   :  { %v1390_v53 = vpop.f32.mrb[130].mxu0  ;;  %v1868_v54 = vpop.f32.mrb[130].mxu1 }
 0x1f8   :  { %2167 = vst [vmem:[%s4128_s6 + $0x68] sm:$0xff] %v2118_v27  ;;  %v1543_v23 = vmax.f32 %v1388_v10, 0.0  ;;  %v2021_v15 = vmax.f32 %v1866_v14, 0.0  ;;  %v1391_v13 = vadd.f32 %v3785_v8, %v1390_v53  ;;  %v1869_v56 = vadd.f32 %v3785_v8, %v1868_v54  ;;  %v2727_v59 = vpop.f32.mrb[131].mxu0  ;;  %v2843_v26 = vpop.f32.mrb[131].mxu1 }
 0x1fa   :  { %v2070_v24 = vmax.f32 %v1543_v23, %v2021_v15  ;;  %v1544_v19 = vmax.f32 %v1391_v13, 0.0  ;;  %v2022_v63 = vmax.f32 %v1869_v56, 0.0 }
 0x1fc   :  { %v2119_v57 = vmax.f32 %v3532_v47, %v2070_v24  ;;  %v2071_v18 = vmax.f32 %v1544_v19, %v2022_v63 }
 0x1fd   :  { %v1395_v33 = vpop.f32.mrb[132].mxu0  ;;  %v1873_v48 = vpop.f32.mrb[132].mxu1 }
 0x1fe   :  { %2168 = vst [vmem:[%s4128_s6 + $0x70] sm:$0xff] %v2119_v57  ;;  %v2120_v61 = vmax.f32 %v3538_v50, %v2071_v18  ;;  %v1396_v37 = vadd.f32 %v3785_v8, %v1395_v33  ;;  %v1874_v60 = vadd.f32 %v3785_v8, %v1873_v48  ;;  %v2730_v51 = vpop.f32.mrb[133].mxu0  ;;  %v2846_v17 = vpop.f32.mrb[133].mxu1 }
 0x1ff   :  { %v1398_v2 = vpop.f32.mrb[134].mxu0  ;;  %v1876_v43 = vpop.f32.mrb[134].mxu1 }
 0x200   :  { %2169 = vst [vmem:[%s4128_s6 + $0x78] sm:$0xff] %v2120_v61  ;;  %v1545_v47 = vmax.f32 %v1396_v37, 0.0  ;;  %v2023_v30 = vmax.f32 %v1874_v60, 0.0  ;;  %v1399_v40 = vadd.f32 %v3785_v8, %v1398_v2  ;;  %v1877_v44 = vadd.f32 %v3785_v8, %v1876_v43  ;;  %v2731_v55 = vpop.f32.mrb[135].mxu0  ;;  %v2847_v50 = vpop.f32.mrb[135].mxu1 }
 0x202   :  { %v2072_v38 = vmax.f32 %v1545_v47, %v2023_v30  ;;  %v1546_v20 = vmax.f32 %v1399_v40, 0.0  ;;  %v2024_v27 = vmax.f32 %v1877_v44, 0.0 }
 0x204   :  { %v2121_v10 = vmax.f32 %v3550_v9, %v2072_v38  ;;  %v2073_v14 = vmax.f32 %v1546_v20, %v2024_v27 }
 0x205   :  { %v1403_v42 = vpop.f32.mrb[136].mxu0  ;;  %v1881_v0 = vpop.f32.mrb[136].mxu1 }
 0x206   :  { %2170 = vst [vmem:[%s4128_s6 + $0x80] sm:$0xff] %v2121_v10  ;;  %v2122_v53 = vmax.f32 %v3556_v12, %v2073_v14  ;;  %v1404_v54 = vadd.f32 %v3785_v8, %v1403_v42  ;;  %v1882_v23 = vadd.f32 %v3785_v8, %v1881_v0  ;;  %v2734_v15 = vpop.f32.mrb[137].mxu0  ;;  %v2850_v13 = vpop.f32.mrb[137].mxu1 }
 0x207   :  { %v1406_v56 = vpop.f32.mrb[138].mxu0  ;;  %v1884_v59 = vpop.f32.mrb[138].mxu1 }
 0x208   :  { %2171 = vst [vmem:[%s4128_s6 + $0x88] sm:$0xff] %v2122_v53  ;;  %v1547_v9 = vmax.f32 %v1404_v54, 0.0  ;;  %v2025_v26 = vmax.f32 %v1882_v23, 0.0  ;;  %v1407_v24 = vadd.f32 %v3785_v8, %v1406_v56  ;;  %v1885_v19 = vadd.f32 %v3785_v8, %v1884_v59  ;;  %v2735_v63 = vpop.f32.mrb[139].mxu0  ;;  %v2851_v12 = vpop.f32.mrb[139].mxu1 }
 0x20a   :  { %v2074_v57 = vmax.f32 %v1547_v9, %v2025_v26  ;;  %v1548_v18 = vmax.f32 %v1407_v24, 0.0  ;;  %v2026_v33 = vmax.f32 %v1885_v19, 0.0 }
 0x20c   :  { %v2123_v48 = vmax.f32 %v3568_v35, %v2074_v57  ;;  %v2075_v61 = vmax.f32 %v1548_v18, %v2026_v33 }
 0x20d   :  { %v1411_v37 = vpop.f32.mrb[140].mxu0  ;;  %v1889_v60 = vpop.f32.mrb[140].mxu1 }
 0x20e   :  { %2172 = vst [vmem:[%s4128_s6 + $0x90] sm:$0xff] %v2123_v48  ;;  %v2124_v51 = vmax.f32 %v3574_v41, %v2075_v61  ;;  %v1412_v17 = vadd.f32 %v3785_v8, %v1411_v37  ;;  %v1890_v2 = vadd.f32 %v3785_v8, %v1889_v60  ;;  %v2738_v43 = vpop.f32.mrb[141].mxu0  ;;  %v2854_v47 = vpop.f32.mrb[141].mxu1 }
 0x20f   :  { %v1414_v30 = vpop.f32.mrb[142].mxu0  ;;  %v1892_v40 = vpop.f32.mrb[142].mxu1 }
 0x210   :  { %2173 = vst [vmem:[%s4128_s6 + $0x98] sm:$0xff] %v2124_v51  ;;  %v1549_v35 = vmax.f32 %v1412_v17, 0.0  ;;  %v2027_v44 = vmax.f32 %v1890_v2, 0.0  ;;  %v1415_v55 = vadd.f32 %v3785_v8, %v1414_v30  ;;  %v1893_v50 = vadd.f32 %v3785_v8, %v1892_v40  ;;  %v2739_v38 = vpop.f32.mrb[143].mxu0  ;;  %v2855_v41 = vpop.f32.mrb[143].mxu1 }
 0x212   :  { %v2076_v20 = vmax.f32 %v1549_v35, %v2027_v44  ;;  %v1550_v27 = vmax.f32 %v1415_v55, 0.0  ;;  %v2028_v10 = vmax.f32 %v1893_v50, 0.0 }
 0x214   :  { %v2125_v14 = vmax.f32 %v3586_v3, %v2076_v20  ;;  %v2077_v42 = vmax.f32 %v1550_v27, %v2028_v10 }
 0x215   :  { %v1419_v0 = vpop.f32.mrb[144].mxu0  ;;  %v1897_v53 = vpop.f32.mrb[144].mxu1 }
 0x216   :  { %2174 = vst [vmem:[%s4128_s6 + $0xa0] sm:$0xff] %v2125_v14  ;;  %v2126_v54 = vmax.f32 %v3592_v6, %v2077_v42  ;;  %v1420_v23 = vadd.f32 %v3785_v8, %v1419_v0  ;;  %v1898_v15 = vadd.f32 %v3785_v8, %v1897_v53  ;;  %v2742_v13 = vpop.f32.mrb[145].mxu0  ;;  %v2858_v56 = vpop.f32.mrb[145].mxu1 }
 0x217   :  { %v1422_v59 = vpop.f32.mrb[146].mxu0  ;;  %v1900_v9 = vpop.f32.mrb[146].mxu1 }
 0x218   :  { %2175 = vst [vmem:[%s4128_s6 + $0xa8] sm:$0xff] %v2126_v54  ;;  %v1551_v3 = vmax.f32 %v1420_v23, 0.0  ;;  %v2029_v26 = vmax.f32 %v1898_v15, 0.0  ;;  %v1423_v24 = vadd.f32 %v3785_v8, %v1422_v59  ;;  %v1901_v19 = vadd.f32 %v3785_v8, %v1900_v9  ;;  %v2743_v63 = vpop.f32.mrb[147].mxu0  ;;  %v2859_v6 = vpop.f32.mrb[147].mxu1 }
 0x21a   :  { %v2078_v12 = vmax.f32 %v1551_v3, %v2029_v26  ;;  %v1552_v57 = vmax.f32 %v1423_v24, 0.0  ;;  %v2030_v18 = vmax.f32 %v1901_v19, 0.0 }
 0x21c   :  { %v2127_v33 = vmax.f32 %v3604_v31, %v2078_v12  ;;  %v2079_v48 = vmax.f32 %v1552_v57, %v2030_v18 }
 0x21d   :  { %v1427_v61 = vpop.f32.mrb[148].mxu0  ;;  %v1905_v37 = vpop.f32.mrb[148].mxu1 }
 0x21e   :  { %2176 = vst [vmem:[%s4128_s6 + $0xb0] sm:$0xff] %v2127_v33  ;;  %v2128_v60 = vmax.f32 %v3610_v34, %v2079_v48  ;;  %v1428_v51 = vadd.f32 %v3785_v8, %v1427_v61  ;;  %v1906_v17 = vadd.f32 %v3785_v8, %v1905_v37  ;;  %v2746_v2 = vpop.f32.mrb[149].mxu0  ;;  %v2862_v43 = vpop.f32.mrb[149].mxu1 }
 0x21f   :  { %v1430_v47 = vpop.f32.mrb[150].mxu0  ;;  %v1908_v30 = vpop.f32.mrb[150].mxu1 }
 0x220   :  { %2177 = vst [vmem:[%s4128_s6 + $0xb8] sm:$0xff] %v2128_v60  ;;  %v1553_v31 = vmax.f32 %v1428_v51, 0.0  ;;  %v2031_v40 = vmax.f32 %v1906_v17, 0.0  ;;  %v1431_v35 = vadd.f32 %v3785_v8, %v1430_v47  ;;  %v1909_v44 = vadd.f32 %v3785_v8, %v1908_v30  ;;  %v2747_v55 = vpop.f32.mrb[151].mxu0  ;;  %v2863_v34 = vpop.f32.mrb[151].mxu1 }
 0x222   :  { %v2080_v50 = vmax.f32 %v1553_v31, %v2031_v40  ;;  %v1554_v38 = vmax.f32 %v1431_v35, 0.0  ;;  %v2032_v41 = vmax.f32 %v1909_v44, 0.0 }
 0x224   :  { %v2129_v20 = vmax.f32 %v3622_v62, %v2080_v50  ;;  %v2081_v27 = vmax.f32 %v1554_v38, %v2032_v41 }
 0x225   :  { %v1435_v10 = vpop.f32.mrb[152].mxu0  ;;  %v1913_v14 = vpop.f32.mrb[152].mxu1 }
 0x226   :  { %2178 = vst [vmem:[%s4128_s6 + $0xc0] sm:$0xff] %v2129_v20  ;;  %v2130_v42 = vmax.f32 %v3628_v5, %v2081_v27  ;;  %v1436_v0 = vadd.f32 %v3785_v8, %v1435_v10  ;;  %v1914_v53 = vadd.f32 %v3785_v8, %v1913_v14  ;;  %v2750_v54 = vpop.f32.mrb[153].mxu0  ;;  %v2866_v23 = vpop.f32.mrb[153].mxu1 }
 0x227   :  { %v1438_v15 = vpop.f32.mrb[154].mxu0  ;;  %v1916_v13 = vpop.f32.mrb[154].mxu1 }
 0x228   :  { %2179 = vst [vmem:[%s4128_s6 + $0xc8] sm:$0xff] %v2130_v42  ;;  %v1555_v62 = vmax.f32 %v1436_v0, 0.0  ;;  %v2033_v56 = vmax.f32 %v1914_v53, 0.0  ;;  %v1439_v59 = vadd.f32 %v3785_v8, %v1438_v15  ;;  %v1917_v9 = vadd.f32 %v3785_v8, %v1916_v13  ;;  %v2751_v3 = vpop.f32.mrb[155].mxu0  ;;  %v2867_v5 = vpop.f32.mrb[155].mxu1 }
 0x22a   :  { %v2082_v26 = vmax.f32 %v1555_v62, %v2033_v56  ;;  %v1556_v24 = vmax.f32 %v1439_v59, 0.0  ;;  %v2034_v19 = vmax.f32 %v1917_v9, 0.0 }
 0x22c   :  { %v2131_v63 = vmax.f32 %v3640_v32, %v2082_v26  ;;  %v2083_v6 = vmax.f32 %v1556_v24, %v2034_v19 }
 0x22d   :  { %v1443_v12 = vpop.f32.mrb[156].mxu0  ;;  %v1921_v57 = vpop.f32.mrb[156].mxu1 }
 0x22e   :  { %2180 = vst [vmem:[%s4128_s6 + $0xd0] sm:$0xff] %v2131_v63  ;;  %v2132_v18 = vmax.f32 %v3646_v39, %v2083_v6  ;;  %v1444_v33 = vadd.f32 %v3785_v8, %v1443_v12  ;;  %v1922_v48 = vadd.f32 %v3785_v8, %v1921_v57  ;;  %v2754_v61 = vpop.f32.mrb[157].mxu0  ;;  %v2870_v37 = vpop.f32.mrb[157].mxu1 }
 0x22f   :  { %v1446_v60 = vpop.f32.mrb[158].mxu0  ;;  %v1924_v51 = vpop.f32.mrb[158].mxu1 }
 0x230   :  { %2181 = vst [vmem:[%s4128_s6 + $0xd8] sm:$0xff] %v2132_v18  ;;  %v1557_v32 = vmax.f32 %v1444_v33, 0.0  ;;  %v2035_v17 = vmax.f32 %v1922_v48, 0.0  ;;  %v1447_v2 = vadd.f32 %v3785_v8, %v1446_v60  ;;  %v1925_v43 = vadd.f32 %v3785_v8, %v1924_v51  ;;  %v2755_v47 = vpop.f32.mrb[159].mxu0  ;;  %v2871_v39 = vpop.f32.mrb[159].mxu1 }
 0x232   :  { %v2084_v30 = vmax.f32 %v1557_v32, %v2035_v17  ;;  %v1558_v31 = vmax.f32 %v1447_v2, 0.0  ;;  %v2036_v40 = vmax.f32 %v1925_v43, 0.0 }
 0x234   :  { %v2133_v35 = vmax.f32 %v3658_v7, %v2084_v30  ;;  %v2085_v44 = vmax.f32 %v1558_v31, %v2036_v40 }
 0x235   :  { %v1451_v55 = vpop.f32.mrb[160].mxu0  ;;  %v1929_v34 = vpop.f32.mrb[160].mxu1 }
 0x236   :  { %2182 = vst [vmem:[%s4128_s6 + $0xe0] sm:$0xff] %v2133_v35  ;;  %v2134_v50 = vmax.f32 %v3664_v11, %v2085_v44  ;;  %v1452_v38 = vadd.f32 %v3785_v8, %v1451_v55  ;;  %v1930_v41 = vadd.f32 %v3785_v8, %v1929_v34  ;;  %v2758_v20 = vpop.f32.mrb[161].mxu0  ;;  %v2874_v27 = vpop.f32.mrb[161].mxu1 }
 0x237   :  { %v1454_v10 = vpop.f32.mrb[162].mxu0  ;;  %v1932_v14 = vpop.f32.mrb[162].mxu1 }
 0x238   :  { %2183 = vst [vmem:[%s4128_s6 + $0xe8] sm:$0xff] %v2134_v50  ;;  %v1559_v7 = vmax.f32 %v1452_v38, 0.0  ;;  %v2037_v42 = vmax.f32 %v1930_v41, 0.0  ;;  %v1455_v0 = vadd.f32 %v3785_v8, %v1454_v10  ;;  %v1933_v53 = vadd.f32 %v3785_v8, %v1932_v14  ;;  %v2759_v54 = vpop.f32.mrb[163].mxu0  ;;  %v2875_v11 = vpop.f32.mrb[163].mxu1 }
 0x23a   :  { %v2086_v23 = vmax.f32 %v1559_v7, %v2037_v42  ;;  %v1560_v15 = vmax.f32 %v1455_v0, 0.0  ;;  %v2038_v13 = vmax.f32 %v1933_v53, 0.0 }
 0x23c   :  { %v2135_v62 = vmax.f32 %v3676_v45, %v2086_v23  ;;  %v2087_v56 = vmax.f32 %v1560_v15, %v2038_v13 }
 0x23d   :  { %v1459_v59 = vpop.f32.mrb[164].mxu0  ;;  %v1937_v9 = vpop.f32.mrb[164].mxu1 }
 0x23e   :  { %2184 = vst [vmem:[%s4128_s6 + $0xf0] sm:$0xff] %v2135_v62  ;;  %v2136_v3 = vmax.f32 %v3682_v49, %v2087_v56  ;;  %v1460_v5 = vadd.f32 %v3785_v8, %v1459_v59  ;;  %v1938_v26 = vadd.f32 %v3785_v8, %v1937_v9  ;;  %v2762_v24 = vpop.f32.mrb[165].mxu0  ;;  %v2878_v19 = vpop.f32.mrb[165].mxu1 }
 0x23f   :  { %v1462_v63 = vpop.f32.mrb[166].mxu0  ;;  %v1940_v6 = vpop.f32.mrb[166].mxu1 }
 0x240   :  { %2185 = vst [vmem:[%s4128_s6 + $0xf8] sm:$0xff] %v2136_v3  ;;  %v1561_v45 = vmax.f32 %v1460_v5, 0.0  ;;  %v2039_v12 = vmax.f32 %v1938_v26, 0.0  ;;  %v1463_v57 = vadd.f32 %v3785_v8, %v1462_v63  ;;  %v1941_v18 = vadd.f32 %v3785_v8, %v1940_v6  ;;  %v2763_v33 = vpop.f32.mrb[167].mxu0  ;;  %v2879_v49 = vpop.f32.mrb[167].mxu1 }
 0x242   :  { %v2088_v48 = vmax.f32 %v1561_v45, %v2039_v12  ;;  %v1562_v61 = vmax.f32 %v1463_v57, 0.0  ;;  %v2040_v37 = vmax.f32 %v1941_v18, 0.0 }
 0x244   :  { %v2137_v60 = vmax.f32 %v3694_v21, %v2088_v48  ;;  %v2089_v51 = vmax.f32 %v1562_v61, %v2040_v37 }
 0x245   :  { %v1467_v32 = vpop.f32.mrb[168].mxu0  ;;  %v1945_v17 = vpop.f32.mrb[168].mxu1 }
 0x246   :  { %2186 = vst [vmem:[%s4128_s6 + $0x100] sm:$0xff] %v2137_v60  ;;  %v2138_v2 = vmax.f32 %v3700_v25, %v2089_v51  ;;  %v1468_v43 = vadd.f32 %v3785_v8, %v1467_v32  ;;  %v1946_v47 = vadd.f32 %v3785_v8, %v1945_v17  ;;  %v2766_v39 = vpop.f32.mrb[169].mxu0  ;;  %v2882_v30 = vpop.f32.mrb[169].mxu1 }
 0x247   :  { %v1470_v31 = vpop.f32.mrb[170].mxu0  ;;  %v1948_v40 = vpop.f32.mrb[170].mxu1 }
 0x248   :  { %2187 = vst [vmem:[%s4128_s6 + $0x108] sm:$0xff] %v2138_v2  ;;  %v1563_v21 = vmax.f32 %v1468_v43, 0.0  ;;  %v2041_v35 = vmax.f32 %v1946_v47, 0.0  ;;  %v1471_v44 = vadd.f32 %v3785_v8, %v1470_v31  ;;  %v1949_v55 = vadd.f32 %v3785_v8, %v1948_v40  ;;  %v2767_v34 = vpop.f32.mrb[171].mxu0  ;;  %v2883_v25 = vpop.f32.mrb[171].mxu1 }
 0x249   :  { %v4068_v34 = vld [vmem:[%s4127_s5] ss:$0 sm:$0xff] }
 0x24a   :  { %v2090_v50 = vmax.f32 %v1563_v21, %v2041_v35  ;;  %v1564_v38 = vmax.f32 %v1471_v44, 0.0  ;;  %v2042_v41 = vmax.f32 %v1949_v55, 0.0 }
 0x24c   :  { %v2139_v20 = vmax.f32 %v3712_v58, %v2090_v50  ;;  %v2091_v27 = vmax.f32 %v1564_v38, %v2042_v41 }
 0x24d   :  { %v1475_v10 = vpop.f32.mrb[172].mxu0  ;;  %v1953_v14 = vpop.f32.mrb[172].mxu1 }
 0x24e   :  { %2188 = vst [vmem:[%s4128_s6 + $0x110] sm:$0xff] %v2139_v20  ;;  %v2140_v7 = vmax.f32 %v3718_v4, %v2091_v27  ;;  %v1476_v42 = vadd.f32 %v3785_v8, %v1475_v10  ;;  %v1954_v0 = vadd.f32 %v3785_v8, %v1953_v14  ;;  %v2770_v53 = vpop.f32.mrb[173].mxu0  ;;  %v2886_v54 = vpop.f32.mrb[173].mxu1 }
 0x24f   :  { %v1478_v11 = vpop.f32.mrb[174].mxu0  ;;  %v1956_v23 = vpop.f32.mrb[174].mxu1 }
 0x250   :  { %2189 = vst [vmem:[%s4128_s6 + $0x118] sm:$0xff] %v2140_v7  ;;  %v1565_v58 = vmax.f32 %v1476_v42, 0.0  ;;  %v2043_v15 = vmax.f32 %v1954_v0, 0.0  ;;  %v1479_v13 = vadd.f32 %v3785_v8, %v1478_v11  ;;  %v1957_v62 = vadd.f32 %v3785_v8, %v1956_v23  ;;  %v2771_v56 = vpop.f32.mrb[175].mxu0  ;;  %v2887_v4 = vpop.f32.mrb[175].mxu1 }
 0x252   :  { %v2092_v59 = vmax.f32 %v1565_v58, %v2043_v15  ;;  %v1566_v9 = vmax.f32 %v1479_v13, 0.0  ;;  %v2044_v3 = vmax.f32 %v1957_v62, 0.0 }
 0x254   :  { %v2141_v5 = vmax.f32 %v3730_v46, %v2092_v59  ;;  %v2093_v26 = vmax.f32 %v1566_v9, %v2044_v3 }
 0x255   :  { %v1483_v24 = vpop.f32.mrb[176].mxu0  ;;  %v1961_v19 = vpop.f32.mrb[176].mxu1 }
 0x256   :  { %2190 = vst [vmem:[%s4128_s6 + $0x120] sm:$0xff] %v2141_v5  ;;  %v2142_v63 = vmax.f32 %v3736_v52, %v2093_v26  ;;  %v1484_v6 = vadd.f32 %v3785_v8, %v1483_v24  ;;  %v1962_v45 = vadd.f32 %v3785_v8, %v1961_v19  ;;  %v2774_v12 = vpop.f32.mrb[177].mxu0  ;;  %v2890_v57 = vpop.f32.mrb[177].mxu1  ;;  %v4134_v19 = vld [vmem:[#allocation2_spill] sm:$0xff] }
 0x257   :  { %v1486_v18 = vpop.f32.mrb[178].mxu0  ;;  %v1964_v33 = vpop.f32.mrb[178].mxu1 }
 0x258   :  { %2191 = vst [vmem:[%s4128_s6 + $0x128] sm:$0xff] %v2142_v63  ;;  %v1567_v46 = vmax.f32 %v1484_v6, 0.0  ;;  %v2045_v49 = vmax.f32 %v1962_v45, 0.0  ;;  %v1487_v48 = vadd.f32 %v3785_v8, %v1486_v18  ;;  %v1965_v61 = vadd.f32 %v3785_v8, %v1964_v33  ;;  %v2775_v37 = vpop.f32.mrb[179].mxu0  ;;  %v2891_v52 = vpop.f32.mrb[179].mxu1 }
 0x25a   :  { %v2094_v60 = vmax.f32 %v1567_v46, %v2045_v49  ;;  %v1568_v51 = vmax.f32 %v1487_v48, 0.0  ;;  %v2046_v32 = vmax.f32 %v1965_v61, 0.0 }
 0x25c   :  { %v2143_v17 = vmax.f32 %v3748_v29, %v2094_v60  ;;  %v2095_v2 = vmax.f32 %v1568_v51, %v2046_v32  ;;  %v4135_v32 = vld [vmem:[#allocation3_spill] sm:$0xff] }
 0x25d   :  { %v1491_v43 = vpop.f32.mrb[180].mxu0  ;;  %v1969_v47 = vpop.f32.mrb[180].mxu1 }
 0x25e   :  { %2192 = vst [vmem:[%s4128_s6 + $0x130] sm:$0xff] %v2143_v17  ;;  %v2144_v39 = vmax.f32 %v3754_v36, %v2095_v2  ;;  %v1492_v30 = vadd.f32 %v3785_v8, %v1491_v43  ;;  %v1970_v31 = vadd.f32 %v3785_v8, %v1969_v47  ;;  %v2778_v40 = vpop.f32.mrb[181].mxu0  ;;  %v2894_v21 = vpop.f32.mrb[181].mxu1 }
 0x25f   :  { %v1494_v35 = vpop.f32.mrb[182].mxu0  ;;  %v1972_v44 = vpop.f32.mrb[182].mxu1 }
 0x260   :  { %2193 = vst [vmem:[%s4128_s6 + $0x138] sm:$0xff] %v2144_v39  ;;  %v1569_v29 = vmax.f32 %v1492_v30, 0.0  ;;  %v2047_v55 = vmax.f32 %v1970_v31, 0.0  ;;  %v1495_v36 = vadd.f32 %v4068_v34, %v1494_v35  ;;  %v1973_v25 = vadd.f32 %v4068_v34, %v1972_v44  ;;  %v2779_v8 = vpop.f32.mrb[183].mxu0  ;;  %v2895_v50 = vpop.f32.mrb[183].mxu1  ;;  %v4136_v39 = vld [vmem:[#allocation4_spill] sm:$0xff] }
 0x262   :  { %v2096_v38 = vmax.f32 %v1569_v29, %v2047_v55  ;;  %v1570_v41 = vmax.f32 %v1495_v36, 0.0  ;;  %v2048_v20 = vmax.f32 %v1973_v25, 0.0 }
 0x264   :  { %v2145_v27 = vmax.f32 %v3766_v22, %v2096_v38  ;;  %v2097_v10 = vmax.f32 %v1570_v41, %v2048_v20 }
 0x265   :  { %v1499_v14 = vpop.f32.mrb[184].mxu0  ;;  %v1977_v7 = vpop.f32.mrb[184].mxu1 }
 0x266   :  { %2194 = vst [vmem:[%s4128_s6 + $0x140] sm:$0xff] %v2145_v27  ;;  %v2146_v42 = vmax.f32 %v3772_v28, %v2097_v10  ;;  %v1500_v0 = vadd.f32 %v4068_v34, %v1499_v14  ;;  %v1978_v53 = vadd.f32 %v4068_v34, %v1977_v7  ;;  %v2782_v54 = vpop.f32.mrb[185].mxu0  ;;  %v2898_v11 = vpop.f32.mrb[185].mxu1 }
 0x267   :  { %v1502_v23 = vpop.f32.mrb[186].mxu0  ;;  %v1980_v58 = vpop.f32.mrb[186].mxu1 }
 0x268   :  { %2195 = vst [vmem:[%s4128_s6 + $0x148] sm:$0xff] %v2146_v42  ;;  %v1571_v22 = vmax.f32 %v1500_v0, 0.0  ;;  %v2049_v15 = vmax.f32 %v1978_v53, 0.0  ;;  %v1503_v13 = vadd.f32 %v4068_v34, %v1502_v23  ;;  %v1981_v62 = vadd.f32 %v4068_v34, %v1980_v58  ;;  %v2783_v56 = vpop.f32.mrb[187].mxu0  ;;  %v2899_v28 = vpop.f32.mrb[187].mxu1  ;;  %v4137_v0 = vld [vmem:[#allocation5_spill] sm:$0xff] }
 0x26a   :  { %v2098_v4 = vmax.f32 %v1571_v22, %v2049_v15  ;;  %v1572_v59 = vmax.f32 %v1503_v13, 0.0  ;;  %v2050_v9 = vmax.f32 %v1981_v62, 0.0 }
 0x26c   :  { %v2147_v3 = vmax.f32 %v3789_v16, %v2098_v4  ;;  %v2099_v5 = vmax.f32 %v1572_v59, %v2050_v9  ;;  %v4138_v4 = vld [vmem:[#allocation6_spill] sm:$0xff] }
 0x26d   :  { %v1507_v26 = vpop.f32.mrb[188].mxu0  ;;  %v1985_v24 = vpop.f32.mrb[188].mxu1 }
 0x26e   :  { %2196 = vst [vmem:[%s4128_s6 + $0x150] sm:$0xff] %v2147_v3  ;;  %v2148_v63 = vmax.f32 %v4134_v19, %v2099_v5  ;;  %v1508_v6 = vadd.f32 %v4068_v34, %v1507_v26  ;;  %v1986_v45 = vadd.f32 %v4068_v34, %v1985_v24  ;;  %v2786_v12 = vpop.f32.mrb[189].mxu0  ;;  %v2902_v57 = vpop.f32.mrb[189].mxu1 }
 0x26f   :  { %v1510_v18 = vpop.f32.mrb[190].mxu0  ;;  %v1988_v33 = vpop.f32.mrb[190].mxu1 }
 0x270   :  { %2197 = vst [vmem:[%s4128_s6 + $0x158] sm:$0xff] %v2148_v63  ;;  %v1573_v16 = vmax.f32 %v1508_v6, 0.0  ;;  %v2051_v46 = vmax.f32 %v1986_v45, 0.0  ;;  %v1511_v49 = vadd.f32 %v4068_v34, %v1510_v18  ;;  %v1989_v48 = vadd.f32 %v4068_v34, %v1988_v33  ;;  %v2787_v61 = vpop.f32.mrb[191].mxu0  ;;  %v2903_v37 = vpop.f32.mrb[191].mxu1 }
 0x272   :  { %v2100_v52 = vmax.f32 %v1573_v16, %v2051_v46  ;;  %v1574_v60 = vmax.f32 %v1511_v49, 0.0  ;;  %v2052_v51 = vmax.f32 %v1989_v48, 0.0 }
 0x274   :  { %v2149_v17 = vmax.f32 %v4135_v32, %v2100_v52  ;;  %v2101_v2 = vmax.f32 %v1574_v60, %v2052_v51 }
 0x275   :  { %v1515_v43 = vpop.f32.mrb[192].mxu0  ;;  %v1993_v47 = vpop.f32.mrb[192].mxu1 }
 0x276   :  { %2198 = vst [vmem:[%s4128_s6 + $0x160] sm:$0xff] %v2149_v17  ;;  %v2150_v30 = vmax.f32 %v4136_v39, %v2101_v2  ;;  %v1516_v31 = vadd.f32 %v4068_v34, %v1515_v43  ;;  %v1994_v40 = vadd.f32 %v4068_v34, %v1993_v47  ;;  %v2790_v21 = vpop.f32.mrb[193].mxu0  ;;  %v2906_v35 = vpop.f32.mrb[193].mxu1 }
 0x277   :  { %v1518_v44 = vpop.f32.mrb[194].mxu0  ;;  %v1996_v29 = vpop.f32.mrb[194].mxu1 }
 0x278   :  { %2199 = vst [vmem:[%s4128_s6 + $0x168] sm:$0xff] %v2150_v30  ;;  %v1575_v55 = vmax.f32 %v1516_v31, 0.0  ;;  %v2053_v36 = vmax.f32 %v1994_v40, 0.0  ;;  %v1519_v25 = vadd.f32 %v4068_v34, %v1518_v44  ;;  %v1997_v8 = vadd.f32 %v4068_v34, %v1996_v29  ;;  %v2791_v50 = vpop.f32.mrb[195].mxu0  ;;  %v2907_v38 = vpop.f32.mrb[195].mxu1 }
 0x27a   :  { %v2102_v41 = vmax.f32 %v1575_v55, %v2053_v36  ;;  %v1576_v20 = vmax.f32 %v1519_v25, 0.0  ;;  %v2054_v27 = vmax.f32 %v1997_v8, 0.0 }
 0x27c   :  { %v2151_v10 = vmax.f32 %v3815_v1, %v2102_v41  ;;  %v2103_v14 = vmax.f32 %v1576_v20, %v2054_v27 }
 0x27d   :  { %v1523_v7 = vpop.f32.mrb[196].mxu0  ;;  %v2001_v42 = vpop.f32.mrb[196].mxu1 }
 0x27e   :  { %2200 = vst [vmem:[%s4128_s6 + $0x170] sm:$0xff] %v2151_v10  ;;  %v2152_v53 = vmax.f32 %v4137_v0, %v2103_v14  ;;  %v1524_v54 = vadd.f32 %v4068_v34, %v1523_v7  ;;  %v2002_v11 = vadd.f32 %v4068_v34, %v2001_v42  ;;  %v2794_v23 = vpop.f32.mrb[197].mxu0  ;;  %v2910_v58 = vpop.f32.mrb[197].mxu1 }
 0x27f   :  { %v1526_v22 = vpop.f32.mrb[198].mxu0  ;;  %v2004_v15 = vpop.f32.mrb[198].mxu1 }
 0x280   :  { %2201 = vst [vmem:[%s4128_s6 + $0x178] sm:$0xff] %v2152_v53  ;;  %v1577_v1 = vmax.f32 %v1524_v54, 0.0  ;;  %v2055_v13 = vmax.f32 %v2002_v11, 0.0  ;;  %v2795_v62 = vpop.f32.mrb[199].mxu0  ;;  %v2911_v56 = vpop.f32.mrb[199].mxu1 }
 0x282   :  { %v2104_v28 = vmax.f32 %v1577_v1, %v2055_v13 }
 0x284   :  { %v2153_v59 = vmax.f32 %v4138_v4, %v2104_v28 }
 0x286   :  { %2202 = vst [vmem:[%s4128_s6 + $0x180] sm:$0xff] %v2153_v59 }

// kernel: net_forward.4
= control target key start
LH: loop header
LB: loop body
LE: loop exit
PB: predicated region body
PF: predicated region fallthrough
CT: control target
= control target key end

     0   :  { %s1246_s4 = inlined_call_operand.vmem [shape: bf16[256,128], index: 4, kind: input, shape index: {}]   ;;  %s1247_s0 = inlined_call_operand.vmem [shape: bf16[56,256], index: 0, kind: input, shape index: {}]   ;;  %s1248_s1 = inlined_call_operand.vmem [shape: bf16[56,256], index: 1, kind: input, shape index: {}]   ;;  %s1249_s2 = inlined_call_operand.vmem [shape: bf16[56,256], index: 2, kind: input, shape index: {}]   ;;  %s1250_s3 = inlined_call_operand.vmem [shape: bf16[56,256], index: 3, kind: input, shape index: {}]   ;;  %s1251_s5 = inlined_call_operand.vmem [shape: f32[1,128], index: 5, kind: input, shape index: {}]   ;;  %s1252_s6 = inlined_call_operand.vmem [shape: f32[56,128], index: 6, kind: output, shape index: {}]  }
   0x1   :  { %v860_v0 = vld [vmem:[%s1246_s4 + $0x40] sm:$0xff]   ;;  %v862_v2 = vld [vmem:[%s1246_s4 + $0x48] sm:$0xff]   ;;  %v976_v4 = vld [vmem:[%s1246_s4 + $0x50] sm:$0xff]  }
   0x2   :  { %v961_v1 = vld [vmem:[%s1246_s4] sm:$0xff]   ;;  %700 = vmatprep.subr.bf16.mxu0 %v860_v0  ;;  %740 = vmatprep.subr.bf16.mxu1 %v860_v0  ;;  %v971_v3 = vld [vmem:[%s1246_s4 + $0x8] sm:$0xff]   ;;  %v983_v5 = vld [vmem:[%s1246_s4 + $0x10] sm:$0xff]  }
   0x3   :  { %701 = vmatpush3.bf16.msra.mxu0 %v961_v1  ;;  %741 = vmatpush3.bf16.msra.mxu1 %v961_v1  ;;  %v990_v6 = vld [vmem:[%s1246_s4 + $0x58] sm:$0xff]   ;;  %v1004_v8 = vld [vmem:[%s1246_s4 + $0x60] sm:$0xff]   ;;  %v1018_v10 = vld [vmem:[%s1246_s4 + $0x68] sm:$0xff]  }
   0x4   :  { %702 = vmatprep.subr.bf16.mxu0 %v862_v2  ;;  %742 = vmatprep.subr.bf16.mxu1 %v862_v2  ;;  %v997_v7 = vld [vmem:[%s1246_s4 + $0x18] sm:$0xff]   ;;  %v1011_v9 = vld [vmem:[%s1246_s4 + $0x20] sm:$0xff]   ;;  %v1031_v13 = vld [vmem:[%s1246_s4 + $0x28] sm:$0xff]  }
   0x5   :  { %v878_v11 = vld [vmem:[%s1247_s0 + $0x4] ss:$8 sps:$4 sm:$0xff]   ;;  %v1038_v14 = vld [vmem:[%s1246_s4 + $0x70] sm:$0xff]   ;;  %v1052_v16 = vld [vmem:[%s1246_s4 + $0x78] sm:$0xff]  }
   0x6   :  { %v881_v12 = vld [vmem:[%s1248_s1 + $0x4] ss:$8 sps:$4 sm:$0xff]   ;;  %235 = vmatprep.mubr.bf16.mxu0 %v878_v11  ;;  %v1045_v15 = vld [vmem:[%s1246_s4 + $0x30] sm:$0xff]   ;;  %v1059_v17 = vld [vmem:[%s1246_s4 + $0x38] sm:$0xff]  }
   0x7   :  { %703 = vmatpush3.bf16.msra.mxu0 %v971_v3  ;;  %743 = vmatpush3.bf16.msra.mxu1 %v971_v3  ;;  %v876_v18 = vld [vmem:[%s1247_s0] ss:$8 sps:$4 sm:$0xff]   ;;  %v882_v20 = vld [vmem:[%s1247_s0 + $0x14] ss:$8 sps:$4 sm:$0xff]   ;;  %v886_v22 = vld [vmem:[%s1247_s0 + $0x10] ss:$8 sps:$4 sm:$0xff]  }
   0x8   :  { %704 = vmatprep.subr.bf16.mxu0 %v976_v4  ;;  %744 = vmatprep.subr.bf16.mxu1 %v976_v4  ;;  %v879_v19 = vld [vmem:[%s1248_s1] ss:$8 sps:$4 sm:$0xff]   ;;  %v884_v21 = vld [vmem:[%s1248_s1 + $0x14] ss:$8 sps:$4 sm:$0xff]   ;;  %v887_v23 = vld [vmem:[%s1248_s1 + $0x10] ss:$8 sps:$4 sm:$0xff]  }
   0x9   :  { %350 = vmatprep.mubr.bf16.mxu1 %v881_v12  ;;  %v888_v24 = vld [vmem:[%s1247_s0 + $0x24] ss:$8 sps:$4 sm:$0xff]   ;;  %v892_v26 = vld [vmem:[%s1247_s0 + $0x20] ss:$8 sps:$4 sm:$0xff]   ;;  %v30_v28 = vld [vmem:[%s1247_s0 + $0x30] sm:$0xff] }
   0xa   :  { %v890_v25 = vld [vmem:[%s1248_s1 + $0x24] ss:$8 sps:$4 sm:$0xff]   ;;  %v893_v27 = vld [vmem:[%s1248_s1 + $0x20] ss:$8 sps:$4 sm:$0xff]   ;;  %v280_v29 = vld [vmem:[%s1248_s1 + $0x30] sm:$0xff]  ;;  %v659_v30 = vcombine.high %v30_v28, %v30_v28  ;;  %v658_v32 = vcombine.low %v30_v28, %v30_v28 }
   0xb   :  { %705 = vmatpush3.bf16.msra.mxu0 %v983_v5  ;;  %745 = vmatpush3.bf16.msra.mxu1 %v983_v5  ;;  %v683_v31 = vcombine.high %v280_v29, %v280_v29  ;;  %v682_v33 = vcombine.low %v280_v29, %v280_v29  ;;  %v900_v34 = vld [vmem:[%s1249_s2 + $0x4] ss:$8 sps:$4 sm:$0xff]   ;;  %v898_v36 = vld [vmem:[%s1249_s2] ss:$8 sps:$4 sm:$0xff]   ;;  %v904_v38 = vld [vmem:[%s1249_s2 + $0x14] ss:$8 sps:$4 sm:$0xff]  }
   0xc   :  { %706 = vmatprep.subr.bf16.mxu0 %v990_v6  ;;  %746 = vmatprep.subr.bf16.mxu1 %v990_v6  ;;  %v903_v35 = vld [vmem:[%s1250_s3 + $0x4] ss:$8 sps:$4 sm:$0xff]   ;;  %v901_v37 = vld [vmem:[%s1250_s3] ss:$8 sps:$4 sm:$0xff]   ;;  %v906_v39 = vld [vmem:[%s1250_s3 + $0x14] ss:$8 sps:$4 sm:$0xff]  }
   0xd   :  { %v908_v40 = vld [vmem:[%s1249_s2 + $0x10] ss:$8 sps:$4 sm:$0xff]   ;;  %v910_v42 = vld [vmem:[%s1249_s2 + $0x24] ss:$8 sps:$4 sm:$0xff]   ;;  %v914_v46 = vld [vmem:[%s1249_s2 + $0x20] ss:$8 sps:$4 sm:$0xff]  }
   0xe   :  { %v909_v41 = vld [vmem:[%s1250_s3 + $0x10] ss:$8 sps:$4 sm:$0xff]   ;;  %v912_v43 = vld [vmem:[%s1250_s3 + $0x24] ss:$8 sps:$4 sm:$0xff]   ;;  %v915_v47 = vld [vmem:[%s1250_s3 + $0x20] ss:$8 sps:$4 sm:$0xff]  }
   0xf   :  { %707 = vmatpush3.bf16.msra.mxu0 %v997_v7  ;;  %747 = vmatpush3.bf16.msra.mxu1 %v997_v7  ;;  %v402_v44 = vld [vmem:[%s1249_s2 + $0x30] sm:$0xff]  ;;  %v1174_v54 = vld [vmem:[%s1251_s5] ss:$0 sm:$0xff] }
  0x10   :  { %708 = vmatprep.subr.bf16.mxu0 %v1004_v8  ;;  %748 = vmatprep.subr.bf16.mxu1 %v1004_v8  ;;  %v517_v45 = vld [vmem:[%s1250_s3 + $0x30] sm:$0xff]  ;;  %v691_v48 = vcombine.high %v402_v44, %v402_v44  ;;  %v690_v50 = vcombine.low %v402_v44, %v402_v44 }
  0x11   :  { %v699_v49 = vcombine.high %v517_v45, %v517_v45  ;;  %v698_v51 = vcombine.low %v517_v45, %v517_v45 }
  0x13   :  { %709 = vmatpush3.bf16.msra.mxu0 %v1011_v9  ;;  %749 = vmatpush3.bf16.msra.mxu1 %v1011_v9 }
  0x14   :  { %710 = vmatprep.subr.bf16.mxu0 %v1018_v10  ;;  %750 = vmatprep.subr.bf16.mxu1 %v1018_v10 }
  0x17   :  { %711 = vmatpush3.bf16.msra.mxu0 %v1031_v13  ;;  %751 = vmatpush3.bf16.msra.mxu1 %v1031_v13 }
  0x18   :  { %712 = vmatprep.subr.bf16.mxu0 %v1038_v14  ;;  %752 = vmatprep.subr.bf16.mxu1 %v1038_v14 }
  0x1b   :  { %713 = vmatpush3.bf16.msra.mxu0 %v1045_v15  ;;  %753 = vmatpush3.bf16.msra.mxu1 %v1045_v15 }
  0x1c   :  { %714 = vmatprep.subr.bf16.mxu0 %v1052_v16  ;;  %754 = vmatprep.subr.bf16.mxu1 %v1052_v16 }
  0x1f   :  { %715 = vmatpush3.bf16.msra.mxu0 %v1059_v17  ;;  %755 = vmatpush3.bf16.msra.mxu1 %v1059_v17 }
  0x20   :  { %780 = vmatprep.subr.bf16.mxu0 %v860_v0  ;;  %820 = vmatprep.subr.bf16.mxu1 %v860_v0 }
  0x22   :  { %236 = vmatmul.mubr.bf16.vlgmr.msra.gmra.mrb[0].mxu0 %v876_v18  ;;  %351 = vmatmul.mubr.bf16.vlgmr.msra.gmra.mrb[0].mxu1 %v879_v19 }
  0x23   :  { %781 = vmatpush3.bf16.msra.mxu0 %v961_v1  ;;  %821 = vmatpush3.bf16.msra.mxu1 %v961_v1 }
  0x24   :  { %782 = vmatprep.subr.bf16.mxu0 %v862_v2  ;;  %822 = vmatprep.subr.bf16.mxu1 %v862_v2 }
  0x25   :  { %243 = vmatprep.mubr.bf16.mxu0 %v882_v20  ;;  %358 = vmatprep.mubr.bf16.mxu1 %v884_v21 }
  0x27   :  { %783 = vmatpush3.bf16.msra.mxu0 %v971_v3  ;;  %823 = vmatpush3.bf16.msra.mxu1 %v971_v3 }
  0x28   :  { %784 = vmatprep.subr.bf16.mxu0 %v976_v4  ;;  %824 = vmatprep.subr.bf16.mxu1 %v976_v4 }
  0x2a   :  { %244 = vmatmul.mubr.bf16.gmra.mrb[4].mxu0 %v886_v22  ;;  %359 = vmatmul.mubr.bf16.gmra.mrb[4].mxu1 %v887_v23 }
  0x2b   :  { %785 = vmatpush3.bf16.msra.mxu0 %v983_v5  ;;  %825 = vmatpush3.bf16.msra.mxu1 %v983_v5 }
  0x2c   :  { %786 = vmatprep.subr.bf16.mxu0 %v990_v6  ;;  %826 = vmatprep.subr.bf16.mxu1 %v990_v6 }
  0x2d   :  { %251 = vmatprep.mubr.bf16.mxu0 %v888_v24  ;;  %366 = vmatprep.mubr.bf16.mxu1 %v890_v25 }
  0x2f   :  { %787 = vmatpush3.bf16.msra.mxu0 %v997_v7  ;;  %827 = vmatpush3.bf16.msra.mxu1 %v997_v7 }
  0x30   :  { %788 = vmatprep.subr.bf16.mxu0 %v1004_v8  ;;  %828 = vmatprep.subr.bf16.mxu1 %v1004_v8 }
  0x32   :  { %252 = vmatmul.mubr.bf16.gmra.mrb[8].mxu0 %v892_v26  ;;  %367 = vmatmul.mubr.bf16.gmra.mrb[8].mxu1 %v893_v27 }
  0x33   :  { %789 = vmatpush3.bf16.msra.mxu0 %v1011_v9  ;;  %829 = vmatpush3.bf16.msra.mxu1 %v1011_v9 }
  0x34   :  { %790 = vmatprep.subr.bf16.mxu0 %v1018_v10  ;;  %830 = vmatprep.subr.bf16.mxu1 %v1018_v10 }
  0x35   :  { %259 = vmatprep.mubr.bf16.mxu0 %v659_v30  ;;  %374 = vmatprep.mubr.bf16.mxu1 %v683_v31 }
  0x37   :  { %791 = vmatpush3.bf16.msra.mxu0 %v1031_v13  ;;  %831 = vmatpush3.bf16.msra.mxu1 %v1031_v13 }
  0x38   :  { %792 = vmatprep.subr.bf16.mxu0 %v1038_v14  ;;  %832 = vmatprep.subr.bf16.mxu1 %v1038_v14 }
  0x3a   :  { %260 = vmatmul.mubr.bf16.gmra.mrb[12].mxu0 %v658_v32  ;;  %375 = vmatmul.mubr.bf16.gmra.mrb[12].mxu1 %v682_v33 }
  0x3b   :  { %793 = vmatpush3.bf16.msra.mxu0 %v1045_v15  ;;  %833 = vmatpush3.bf16.msra.mxu1 %v1045_v15 }
  0x3c   :  { %794 = vmatprep.subr.bf16.mxu0 %v1052_v16  ;;  %834 = vmatprep.subr.bf16.mxu1 %v1052_v16 }
  0x3d   :  { %472 = vmatprep.mubr.bf16.mxu0 %v900_v34  ;;  %587 = vmatprep.mubr.bf16.mxu1 %v903_v35 }
  0x3f   :  { %795 = vmatpush3.bf16.msra.mxu0 %v1059_v17  ;;  %835 = vmatpush3.bf16.msra.mxu1 %v1059_v17 }
  0x42   :  { %473 = vmatmul.mubr.bf16.vlgmr.msra.gmra.mrb[16].mxu0 %v898_v36  ;;  %588 = vmatmul.mubr.bf16.vlgmr.msra.gmra.mrb[16].mxu1 %v901_v37 }
  0x43   :  { %480 = vmatprep.mubr.bf16.mxu0 %v904_v38  ;;  %595 = vmatprep.mubr.bf16.mxu1 %v906_v39 }
  0x4a   :  { %481 = vmatmul.mubr.bf16.gmra.mrb[20].mxu0 %v908_v40  ;;  %596 = vmatmul.mubr.bf16.gmra.mrb[20].mxu1 %v909_v41 }
  0x4b   :  { %488 = vmatprep.mubr.bf16.mxu0 %v910_v42  ;;  %603 = vmatprep.mubr.bf16.mxu1 %v912_v43 }
  0x52   :  { %489 = vmatmul.mubr.bf16.gmra.mrb[24].mxu0 %v914_v46  ;;  %604 = vmatmul.mubr.bf16.gmra.mrb[24].mxu1 %v915_v47 }
  0x53   :  { %496 = vmatprep.mubr.bf16.mxu0 %v691_v48  ;;  %611 = vmatprep.mubr.bf16.mxu1 %v699_v49 }
  0x5a   :  { %497 = vmatmul.mubr.bf16.gmra.mrb[28].mxu0 %v690_v50  ;;  %612 = vmatmul.mubr.bf16.gmra.mrb[28].mxu1 %v698_v51 }
  0xf5   :  { %v716_v52 = vpop.f32.mrb[0].mxu0  ;;  %v756_v53 = vpop.f32.mrb[0].mxu1 }
  0xf6   :  { %v717_v55 = vpop.f32.mrb[1].mxu0  ;;  %v757_v56 = vpop.f32.mrb[1].mxu1 }
  0xf7   :  { %v718_v57 = vadd.f32 %v717_v55, %v716_v52  ;;  %v758_v58 = vadd.f32 %v757_v56, %v756_v53  ;;  %v719_v59 = vpop.f32.mrb[2].mxu0  ;;  %v759_v60 = vpop.f32.mrb[2].mxu1 }
  0xf8   :  { %v720_v61 = vpop.f32.mrb[3].mxu0  ;;  %v760_v62 = vpop.f32.mrb[3].mxu1 }
  0xf9   :  { %v238_v63 = vadd.f32 %v718_v57, %v1174_v54  ;;  %v353_v0 = vadd.f32 %v758_v58, %v1174_v54  ;;  %v721_v1 = vadd.f32 %v720_v61, %v719_v59  ;;  %v761_v2 = vadd.f32 %v760_v62, %v759_v60 }
  0xfb   :  { %v267_v3 = vmax.f32 %v238_v63, 0.0  ;;  %v382_v4 = vmax.f32 %v353_v0, 0.0  ;;  %v241_v5 = vadd.f32 %v721_v1, %v1174_v54  ;;  %v356_v6 = vadd.f32 %v761_v2, %v1174_v54 }
  0xfd   :  { %v1180_v7 = vmax.f32 %v267_v3, %v382_v4  ;;  %v268_v8 = vmax.f32 %v241_v5, 0.0  ;;  %v383_v9 = vmax.f32 %v356_v6, 0.0  ;;  %v722_v10 = vpop.f32.mrb[4].mxu0  ;;  %v762_v11 = vpop.f32.mrb[4].mxu1 }
  0xfe   :  { %v723_v12 = vpop.f32.mrb[5].mxu0  ;;  %v763_v13 = vpop.f32.mrb[5].mxu1 }
  0xff   :  { %v1182_v14 = vmax.f32 %v268_v8, %v383_v9  ;;  %v724_v15 = vadd.f32 %v723_v12, %v722_v10  ;;  %v764_v16 = vadd.f32 %v763_v13, %v762_v11  ;;  %v725_v17 = vpop.f32.mrb[6].mxu0  ;;  %v765_v18 = vpop.f32.mrb[6].mxu1 }
 0x100   :  { %v726_v19 = vpop.f32.mrb[7].mxu0  ;;  %v766_v20 = vpop.f32.mrb[7].mxu1 }
 0x101   :  { %v246_v21 = vadd.f32 %v724_v15, %v1174_v54  ;;  %v361_v22 = vadd.f32 %v764_v16, %v1174_v54  ;;  %v727_v23 = vadd.f32 %v726_v19, %v725_v17  ;;  %v767_v24 = vadd.f32 %v766_v20, %v765_v18 }
 0x103   :  { %v269_v25 = vmax.f32 %v246_v21, 0.0  ;;  %v384_v26 = vmax.f32 %v361_v22, 0.0  ;;  %v249_v27 = vadd.f32 %v727_v23, %v1174_v54  ;;  %v364_v28 = vadd.f32 %v767_v24, %v1174_v54 }
 0x105   :  { %v1188_v29 = vmax.f32 %v269_v25, %v384_v26  ;;  %v270_v30 = vmax.f32 %v249_v27, 0.0  ;;  %v385_v31 = vmax.f32 %v364_v28, 0.0  ;;  %v728_v32 = vpop.f32.mrb[8].mxu0  ;;  %v768_v33 = vpop.f32.mrb[8].mxu1 }
 0x106   :  { %v729_v34 = vpop.f32.mrb[9].mxu0  ;;  %v769_v35 = vpop.f32.mrb[9].mxu1 }
 0x107   :  { %v1190_v36 = vmax.f32 %v270_v30, %v385_v31  ;;  %v730_v37 = vadd.f32 %v729_v34, %v728_v32  ;;  %v770_v38 = vadd.f32 %v769_v35, %v768_v33  ;;  %v731_v39 = vpop.f32.mrb[10].mxu0  ;;  %v771_v40 = vpop.f32.mrb[10].mxu1 }
 0x108   :  { %v732_v41 = vpop.f32.mrb[11].mxu0  ;;  %v772_v42 = vpop.f32.mrb[11].mxu1 }
 0x109   :  { %v254_v43 = vadd.f32 %v730_v37, %v1174_v54  ;;  %v369_v44 = vadd.f32 %v770_v38, %v1174_v54  ;;  %v733_v45 = vadd.f32 %v732_v41, %v731_v39  ;;  %v773_v46 = vadd.f32 %v772_v42, %v771_v40 }
 0x10b   :  { %v271_v47 = vmax.f32 %v254_v43, 0.0  ;;  %v386_v48 = vmax.f32 %v369_v44, 0.0  ;;  %v257_v49 = vadd.f32 %v733_v45, %v1174_v54  ;;  %v372_v50 = vadd.f32 %v773_v46, %v1174_v54 }
 0x10d   :  { %v1196_v51 = vmax.f32 %v271_v47, %v386_v48  ;;  %v272_v52 = vmax.f32 %v257_v49, 0.0  ;;  %v387_v53 = vmax.f32 %v372_v50, 0.0  ;;  %v734_v55 = vpop.f32.mrb[12].mxu0  ;;  %v774_v56 = vpop.f32.mrb[12].mxu1 }
 0x10e   :  { %v735_v57 = vpop.f32.mrb[13].mxu0  ;;  %v775_v58 = vpop.f32.mrb[13].mxu1 }
 0x10f   :  { %v1198_v59 = vmax.f32 %v272_v52, %v387_v53  ;;  %v736_v60 = vadd.f32 %v735_v57, %v734_v55  ;;  %v776_v61 = vadd.f32 %v775_v58, %v774_v56  ;;  %v737_v62 = vpop.f32.mrb[14].mxu0  ;;  %v777_v63 = vpop.f32.mrb[14].mxu1 }
 0x110   :  { %v738_v0 = vpop.f32.mrb[15].mxu0  ;;  %v778_v1 = vpop.f32.mrb[15].mxu1 }
 0x111   :  { %v262_v2 = vadd.f32 %v736_v60, %v1174_v54  ;;  %v377_v3 = vadd.f32 %v776_v61, %v1174_v54 }
 0x113   :  { %v273_v4 = vmax.f32 %v262_v2, 0.0  ;;  %v388_v5 = vmax.f32 %v377_v3, 0.0 }
 0x115   :  { %v1202_v6 = vmax.f32 %v273_v4, %v388_v5  ;;  %v796_v8 = vpop.f32.mrb[16].mxu0  ;;  %v836_v9 = vpop.f32.mrb[16].mxu1 }
 0x116   :  { %v797_v10 = vpop.f32.mrb[17].mxu0  ;;  %v837_v11 = vpop.f32.mrb[17].mxu1 }
 0x117   :  { %v798_v12 = vadd.f32 %v797_v10, %v796_v8  ;;  %v838_v13 = vadd.f32 %v837_v11, %v836_v9  ;;  %v799_v15 = vpop.f32.mrb[18].mxu0  ;;  %v839_v16 = vpop.f32.mrb[18].mxu1 }
 0x118   :  { %v800_v17 = vpop.f32.mrb[19].mxu0  ;;  %v840_v18 = vpop.f32.mrb[19].mxu1 }
 0x119   :  { %v475_v19 = vadd.f32 %v798_v12, %v1174_v54  ;;  %v590_v20 = vadd.f32 %v838_v13, %v1174_v54  ;;  %v801_v21 = vadd.f32 %v800_v17, %v799_v15  ;;  %v841_v22 = vadd.f32 %v840_v18, %v839_v16 }
 0x11b   :  { %v504_v23 = vmax.f32 %v475_v19, 0.0  ;;  %v619_v24 = vmax.f32 %v590_v20, 0.0  ;;  %v478_v25 = vadd.f32 %v801_v21, %v1174_v54  ;;  %v593_v26 = vadd.f32 %v841_v22, %v1174_v54 }
 0x11d   :  { %v626_v27 = vmax.f32 %v504_v23, %v619_v24  ;;  %v505_v28 = vmax.f32 %v478_v25, 0.0  ;;  %v620_v30 = vmax.f32 %v593_v26, 0.0  ;;  %v802_v31 = vpop.f32.mrb[20].mxu0  ;;  %v842_v32 = vpop.f32.mrb[20].mxu1 }
 0x11e   :  { %v803_v33 = vpop.f32.mrb[21].mxu0  ;;  %v843_v34 = vpop.f32.mrb[21].mxu1 }
 0x11f   :  { %v633_v35 = vmax.f32 %v1180_v7, %v626_v27  ;;  %v627_v37 = vmax.f32 %v505_v28, %v620_v30  ;;  %v804_v38 = vadd.f32 %v803_v33, %v802_v31  ;;  %v844_v39 = vadd.f32 %v843_v34, %v842_v32  ;;  %v805_v40 = vpop.f32.mrb[22].mxu0  ;;  %v845_v41 = vpop.f32.mrb[22].mxu1 }
 0x120   :  { %v806_v42 = vpop.f32.mrb[23].mxu0  ;;  %v846_v43 = vpop.f32.mrb[23].mxu1 }
 0x121   :  { %640 = vst [vmem:[%s1252_s6] sm:$0xff] %v633_v35  ;;  %v634_v44 = vmax.f32 %v1182_v14, %v627_v37  ;;  %v483_v45 = vadd.f32 %v804_v38, %v1174_v54  ;;  %v598_v46 = vadd.f32 %v844_v39, %v1174_v54  ;;  %v807_v47 = vadd.f32 %v806_v42, %v805_v40 }
 0x122   :  { %v847_v48 = vadd.f32 %v846_v43, %v845_v41 }
 0x123   :  { %641 = vst [vmem:[%s1252_s6 + $0x8] sm:$0xff] %v634_v44  ;;  %v506_v7 = vmax.f32 %v483_v45, 0.0  ;;  %v621_v49 = vmax.f32 %v598_v46, 0.0  ;;  %v486_v50 = vadd.f32 %v807_v47, %v1174_v54 }
 0x124   :  { %v601_v52 = vadd.f32 %v847_v48, %v1174_v54 }
 0x125   :  { %v628_v53 = vmax.f32 %v506_v7, %v621_v49  ;;  %v507_v55 = vmax.f32 %v486_v50, 0.0  ;;  %v808_v56 = vpop.f32.mrb[24].mxu0  ;;  %v848_v14 = vpop.f32.mrb[24].mxu1 }
 0x126   :  { %v622_v57 = vmax.f32 %v601_v52, 0.0  ;;  %v809_v58 = vpop.f32.mrb[25].mxu0  ;;  %v849_v60 = vpop.f32.mrb[25].mxu1 }
 0x127   :  { %v635_v61 = vmax.f32 %v1188_v29, %v628_v53  ;;  %v810_v62 = vadd.f32 %v809_v58, %v808_v56  ;;  %v850_v63 = vadd.f32 %v849_v60, %v848_v14  ;;  %v811_v0 = vpop.f32.mrb[26].mxu0  ;;  %v851_v1 = vpop.f32.mrb[26].mxu1 }
 0x128   :  { %v629_v2 = vmax.f32 %v507_v55, %v622_v57  ;;  %v812_v3 = vpop.f32.mrb[27].mxu0  ;;  %v852_v4 = vpop.f32.mrb[27].mxu1 }
 0x129   :  { %642 = vst [vmem:[%s1252_s6 + $0x10] sm:$0xff] %v635_v61  ;;  %v491_v5 = vadd.f32 %v810_v62, %v1174_v54  ;;  %v606_v8 = vadd.f32 %v850_v63, %v1174_v54  ;;  %v813_v9 = vadd.f32 %v812_v3, %v811_v0  ;;  %v853_v10 = vadd.f32 %v852_v4, %v851_v1 }
 0x12a   :  { %v636_v11 = vmax.f32 %v1190_v36, %v629_v2 }
 0x12b   :  { %v508_v29 = vmax.f32 %v491_v5, 0.0  ;;  %v623_v12 = vmax.f32 %v606_v8, 0.0  ;;  %v494_v13 = vadd.f32 %v813_v9, %v1174_v54  ;;  %v609_v15 = vadd.f32 %v853_v10, %v1174_v54 }
 0x12c   :  { %643 = vst [vmem:[%s1252_s6 + $0x18] sm:$0xff] %v636_v11 }
 0x12d   :  { %v630_v16 = vmax.f32 %v508_v29, %v623_v12  ;;  %v509_v17 = vmax.f32 %v494_v13, 0.0  ;;  %v624_v18 = vmax.f32 %v609_v15, 0.0  ;;  %v814_v19 = vpop.f32.mrb[28].mxu0  ;;  %v854_v20 = vpop.f32.mrb[28].mxu1 }
 0x12e   :  { %v815_v21 = vpop.f32.mrb[29].mxu0  ;;  %v855_v22 = vpop.f32.mrb[29].mxu1 }
 0x12f   :  { %v637_v23 = vmax.f32 %v1196_v51, %v630_v16  ;;  %v631_v36 = vmax.f32 %v509_v17, %v624_v18  ;;  %v816_v24 = vadd.f32 %v815_v21, %v814_v19  ;;  %v856_v25 = vadd.f32 %v855_v22, %v854_v20  ;;  %v817_v26 = vpop.f32.mrb[30].mxu0  ;;  %v857_v27 = vpop.f32.mrb[30].mxu1 }
 0x130   :  { %v818_v28 = vpop.f32.mrb[31].mxu0  ;;  %v858_v30 = vpop.f32.mrb[31].mxu1 }
 0x131   :  { %644 = vst [vmem:[%s1252_s6 + $0x20] sm:$0xff] %v637_v23  ;;  %v638_v31 = vmax.f32 %v1198_v59, %v631_v36  ;;  %v499_v32 = vadd.f32 %v816_v24, %v1174_v54  ;;  %v614_v33 = vadd.f32 %v856_v25, %v1174_v54 }
 0x133   :  { %645 = vst [vmem:[%s1252_s6 + $0x28] sm:$0xff] %v638_v31  ;;  %v510_v51 = vmax.f32 %v499_v32, 0.0  ;;  %v625_v34 = vmax.f32 %v614_v33, 0.0 }
 0x135   :  { %v632_v35 = vmax.f32 %v510_v51, %v625_v34 }
 0x137   :  { %v639_v37 = vmax.f32 %v1202_v6, %v632_v35 }
 0x139   :  { %646 = vst [vmem:[%s1252_s6 + $0x30] sm:$0xff] %v639_v37 }

// kernel: net_forward.5
= control target key start
LH: loop header
LB: loop body
LE: loop exit
PB: predicated region body
PF: predicated region fallthrough
CT: control target
= control target key end

     0   :  { %v828_v39 = vmov 0.0   ;;  %vm829_vm0 = vmmov 0   ;;  %s1050_s1 = inlined_call_operand.vmem [shape: bf16[512,128], index: 1, kind: input, shape index: {}]   ;;  %s1051_s0 = inlined_call_operand.vmem [shape: bf16[8,512], index: 0, kind: input, shape index: {}]   ;;  %s1052_s3 = inlined_call_operand.vmem [shape: bf16[128,128], index: 3, kind: input, shape index: {}]   ;;  %s1053_s5 = inlined_call_operand.vmem [shape: bf16[128,128], index: 5, kind: input, shape index: {}]   ;;  %s1054_s2 = inlined_call_operand.vmem [shape: f32[1,128], index: 2, kind: input, shape index: {}]   ;;  %s1055_s4 = inlined_call_operand.vmem [shape: f32[1,128], index: 4, kind: input, shape index: {}]   ;;  %s1056_s6 = inlined_call_operand.vmem [shape: f32[1,128], index: 6, kind: input, shape index: {}]   ;;  %s1057_s7 = inlined_call_operand.vmem [shape: f32[8,128], index: 7, kind: output, shape index: {}]  }
   0x1   :  { %v776_v0 = vld [vmem:[%s1050_s1 + $0x40] sm:$0xff]   ;;  %v780_v4 = vld [vmem:[%s1050_s1 + $0x48] sm:$0xff]   ;;  %v784_v8 = vld [vmem:[%s1050_s1 + $0x50] sm:$0xff]  }
   0x2   :  { %v777_v1 = vld [vmem:[%s1050_s1 + $0xc0] sm:$0xff]   ;;  %672 = vmatprep.subr.bf16.mxu0 %v776_v0  ;;  %v781_v5 = vld [vmem:[%s1050_s1 + $0xc8] sm:$0xff]   ;;  %v785_v9 = vld [vmem:[%s1050_s1 + $0xd0] sm:$0xff]  }
   0x3   :  { %v778_v2 = vld [vmem:[%s1050_s1] sm:$0xff]   ;;  %694 = vmatprep.subr.bf16.mxu1 %v777_v1  ;;  %v782_v6 = vld [vmem:[%s1050_s1 + $0x8] sm:$0xff]   ;;  %v786_v10 = vld [vmem:[%s1050_s1 + $0x10] sm:$0xff]  }
   0x4   :  { %v779_v3 = vld [vmem:[%s1050_s1 + $0x80] sm:$0xff]   ;;  %673 = vmatpush3.bf16.msra.mxu0 %v778_v2  ;;  %v783_v7 = vld [vmem:[%s1050_s1 + $0x88] sm:$0xff]   ;;  %v787_v11 = vld [vmem:[%s1050_s1 + $0x90] sm:$0xff]  }
   0x5   :  { %695 = vmatpush3.bf16.msra.mxu1 %v779_v3  ;;  %674 = vmatprep.subr.bf16.mxu0 %v780_v4  ;;  %v788_v12 = vld [vmem:[%s1050_s1 + $0x58] sm:$0xff]   ;;  %v792_v16 = vld [vmem:[%s1050_s1 + $0x60] sm:$0xff]   ;;  %v796_v20 = vld [vmem:[%s1050_s1 + $0x68] sm:$0xff]  }
   0x6   :  { %696 = vmatprep.subr.bf16.mxu1 %v781_v5  ;;  %v789_v13 = vld [vmem:[%s1050_s1 + $0xd8] sm:$0xff]   ;;  %v793_v17 = vld [vmem:[%s1050_s1 + $0xe0] sm:$0xff]   ;;  %v797_v21 = vld [vmem:[%s1050_s1 + $0xe8] sm:$0xff]  }
   0x7   :  { %v790_v14 = vld [vmem:[%s1050_s1 + $0x18] sm:$0xff]   ;;  %v794_v18 = vld [vmem:[%s1050_s1 + $0x20] sm:$0xff]   ;;  %v798_v22 = vld [vmem:[%s1050_s1 + $0x28] sm:$0xff]  }
   0x8   :  { %675 = vmatpush3.bf16.msra.mxu0 %v782_v6  ;;  %v791_v15 = vld [vmem:[%s1050_s1 + $0x98] sm:$0xff]   ;;  %v795_v19 = vld [vmem:[%s1050_s1 + $0xa0] sm:$0xff]   ;;  %v799_v23 = vld [vmem:[%s1050_s1 + $0xa8] sm:$0xff]  }
   0x9   :  { %697 = vmatpush3.bf16.msra.mxu1 %v783_v7  ;;  %676 = vmatprep.subr.bf16.mxu0 %v784_v8  ;;  %v800_v24 = vld [vmem:[%s1050_s1 + $0x70] sm:$0xff]   ;;  %v804_v28 = vld [vmem:[%s1050_s1 + $0x78] sm:$0xff]   ;;  %v27_v32 = vld [vmem:[%s1051_s0] sm:$0xff] }
   0xa   :  { %698 = vmatprep.subr.bf16.mxu1 %v785_v9  ;;  %v801_v25 = vld [vmem:[%s1050_s1 + $0xf0] sm:$0xff]   ;;  %v805_v29 = vld [vmem:[%s1050_s1 + $0xf8] sm:$0xff]   ;;  %v28_v33 = vld [vmem:[%s1051_s0 + $0x8] sm:$0xff]  ;;  %v618_v34 = vcombine.low %v27_v32, %v27_v32  ;;  %v619_v35 = vcombine.high %v27_v32, %v27_v32 }
   0xb   :  { %v802_v26 = vld [vmem:[%s1050_s1 + $0x30] sm:$0xff]   ;;  %v806_v30 = vld [vmem:[%s1050_s1 + $0x38] sm:$0xff]   ;;  %v620_v36 = vcombine.low %v28_v33, %v28_v33  ;;  %v621_v37 = vcombine.high %v28_v33, %v28_v33  ;;  %v812_v38 = vld [vmem:[%s1052_s3] sm:$0xff]  }
   0xc   :  { %677 = vmatpush3.bf16.msra.mxu0 %v786_v10  ;;  %v803_v27 = vld [vmem:[%s1050_s1 + $0xb0] sm:$0xff]   ;;  %v807_v31 = vld [vmem:[%s1050_s1 + $0xb8] sm:$0xff]   ;;  %338 = vmatprep.mubr.bf16.mxu0 %v619_v35  ;;  %v813_v40 = vld [vmem:[%s1052_s3 + $0x8] sm:$0xff]  }
   0xd   :  { %699 = vmatpush3.bf16.msra.mxu1 %v787_v11  ;;  %678 = vmatprep.subr.bf16.mxu0 %v788_v12  ;;  %v814_v41 = vld [vmem:[%s1052_s3 + $0x10] sm:$0xff]   ;;  %v815_v42 = vld [vmem:[%s1052_s3 + $0x18] sm:$0xff]   ;;  %v816_v43 = vld [vmem:[%s1052_s3 + $0x20] sm:$0xff]  }
   0xe   :  { %700 = vmatprep.subr.bf16.mxu1 %v789_v13  ;;  %378 = vmatprep.mubr.bf16.mxu1 %v621_v37  ;;  %v817_v44 = vld [vmem:[%s1052_s3 + $0x28] sm:$0xff]   ;;  %v818_v45 = vld [vmem:[%s1052_s3 + $0x30] sm:$0xff]   ;;  %v819_v46 = vld [vmem:[%s1052_s3 + $0x38] sm:$0xff]  }
   0xf   :  { %v820_v47 = vld [vmem:[%s1053_s5] sm:$0xff]   ;;  %v821_v48 = vld [vmem:[%s1053_s5 + $0x8] sm:$0xff]   ;;  %v822_v49 = vld [vmem:[%s1053_s5 + $0x10] sm:$0xff]  }
  0x10   :  { %679 = vmatpush3.bf16.msra.mxu0 %v790_v14  ;;  %v823_v50 = vld [vmem:[%s1053_s5 + $0x18] sm:$0xff]   ;;  %v824_v51 = vld [vmem:[%s1053_s5 + $0x20] sm:$0xff]   ;;  %v825_v52 = vld [vmem:[%s1053_s5 + $0x28] sm:$0xff]  }
  0x11   :  { %701 = vmatpush3.bf16.msra.mxu1 %v791_v15  ;;  %680 = vmatprep.subr.bf16.mxu0 %v792_v16  ;;  %v617_v55 = vld [vmem:[%s1054_s2] ss:$0 sm:$0xff]  ;;  %v826_v4 = vld [vmem:[%s1053_s5 + $0x30] sm:$0xff]   ;;  %v827_v5 = vld [vmem:[%s1053_s5 + $0x38] sm:$0xff]  }
  0x12   :  { %702 = vmatprep.subr.bf16.mxu1 %v793_v17  ;;  %v654_v6 = vld [vmem:[%s1055_s4] ss:$0 sm:$0xff] }
  0x13   :  { %v663_v14 = vld [vmem:[%s1056_s6] ss:$0 sm:$0xff] }
  0x14   :  { %681 = vmatpush3.bf16.msra.mxu0 %v794_v18 }
  0x15   :  { %703 = vmatpush3.bf16.msra.mxu1 %v795_v19  ;;  %682 = vmatprep.subr.bf16.mxu0 %v796_v20 }
  0x16   :  { %704 = vmatprep.subr.bf16.mxu1 %v797_v21 }
  0x18   :  { %683 = vmatpush3.bf16.msra.mxu0 %v798_v22 }
  0x19   :  { %705 = vmatpush3.bf16.msra.mxu1 %v799_v23  ;;  %684 = vmatprep.subr.bf16.mxu0 %v800_v24 }
  0x1a   :  { %706 = vmatprep.subr.bf16.mxu1 %v801_v25 }
  0x1c   :  { %685 = vmatpush3.bf16.msra.mxu0 %v802_v26 }
  0x1d   :  { %707 = vmatpush3.bf16.msra.mxu1 %v803_v27  ;;  %686 = vmatprep.subr.bf16.mxu0 %v804_v28 }
  0x1e   :  { %708 = vmatprep.subr.bf16.mxu1 %v805_v29 }
  0x20   :  { %687 = vmatpush3.bf16.msra.mxu0 %v806_v30 }
  0x21   :  { %709 = vmatpush3.bf16.msra.mxu1 %v807_v31  ;;  %734 = vmatprep.subr.bf16.mxu0 %v828_v39 }
  0x22   :  { %754 = vmatprep.subr.bf16.mxu1 %v828_v39 }
  0x23   :  { %339 = vmatmul.mubr.bf16.vlgmr.msra.gmra.mrb[0].mxu0 %v618_v34 }
  0x24   :  { %379 = vmatmul.mubr.bf16.vlgmr.msra.gmra.mrb[0].mxu1 %v620_v36  ;;  %735 = vmatpush3.bf16.msra.mxu0 %v812_v38 }
  0x25   :  { %736 = vmatprep.subr.bf16.mxu0 %v828_v39  ;;  %750 = vmatprep.mubr.msk.bf16.mxu0 %vm829_vm0, %v828_v39 }
  0x26   :  { %770 = vmatprep.mubr.msk.bf16.mxu1 %vm829_vm0, %v828_v39  ;;  %755 = vmatpush3.bf16.msra.mxu1 %v820_v47 }
  0x27   :  { %756 = vmatprep.subr.bf16.mxu1 %v828_v39 }
  0x28   :  { %737 = vmatpush3.bf16.msra.mxu0 %v813_v40 }
  0x29   :  { %738 = vmatprep.subr.bf16.mxu0 %v828_v39 }
  0x2a   :  { %757 = vmatpush3.bf16.msra.mxu1 %v821_v48 }
  0x2b   :  { %758 = vmatprep.subr.bf16.mxu1 %v828_v39 }
  0x2c   :  { %739 = vmatpush3.bf16.msra.mxu0 %v814_v41 }
  0x2d   :  { %740 = vmatprep.subr.bf16.mxu0 %v828_v39 }
  0x2e   :  { %759 = vmatpush3.bf16.msra.mxu1 %v822_v49 }
  0x2f   :  { %760 = vmatprep.subr.bf16.mxu1 %v828_v39 }
  0x30   :  { %741 = vmatpush3.bf16.msra.mxu0 %v815_v42 }
  0x31   :  { %742 = vmatprep.subr.bf16.mxu0 %v828_v39 }
  0x32   :  { %761 = vmatpush3.bf16.msra.mxu1 %v823_v50 }
  0x33   :  { %762 = vmatprep.subr.bf16.mxu1 %v828_v39 }
  0x34   :  { %743 = vmatpush3.bf16.msra.mxu0 %v816_v43 }
  0x35   :  { %744 = vmatprep.subr.bf16.mxu0 %v828_v39 }
  0x36   :  { %763 = vmatpush3.bf16.msra.mxu1 %v824_v51 }
  0x37   :  { %764 = vmatprep.subr.bf16.mxu1 %v828_v39 }
  0x38   :  { %745 = vmatpush3.bf16.msra.mxu0 %v817_v44 }
  0x39   :  { %746 = vmatprep.subr.bf16.mxu0 %v828_v39 }
  0x3a   :  { %765 = vmatpush3.bf16.msra.mxu1 %v825_v52 }
  0x3b   :  { %766 = vmatprep.subr.bf16.mxu1 %v828_v39 }
  0x3c   :  { %747 = vmatpush3.bf16.msra.mxu0 %v818_v45 }
  0x3d   :  { %748 = vmatprep.subr.bf16.mxu0 %v828_v39 }
  0x3e   :  { %767 = vmatpush3.bf16.msra.mxu1 %v826_v4 }
  0x3f   :  { %768 = vmatprep.subr.bf16.mxu1 %v828_v39 }
  0x40   :  { %749 = vmatpush3.bf16.msra.mxu0 %v819_v46 }
  0x42   :  { %769 = vmatpush3.bf16.msra.mxu1 %v827_v5 }
  0xf6   :  { %v688_v53 = vpop.f32.mrb[0].mxu0 }
  0xf7   :  { %v710_v54 = vpop.f32.mrb[0].mxu1  ;;  %v689_v56 = vpop.f32.mrb[1].mxu0 }
  0xf8   :  { %v711_v57 = vpop.f32.mrb[1].mxu1  ;;  %v690_v58 = vadd.f32 %v689_v56, %v688_v53  ;;  %v691_v60 = vpop.f32.mrb[2].mxu0 }
  0xf9   :  { %v712_v59 = vadd.f32 %v711_v57, %v710_v54  ;;  %v713_v61 = vpop.f32.mrb[2].mxu1  ;;  %v692_v62 = vpop.f32.mrb[3].mxu0 }
  0xfa   :  { %v714_v63 = vpop.f32.mrb[3].mxu1  ;;  %v341_v0 = vadd.f32 %v690_v58, %v617_v55 }
  0xfc   :  { %v381_v1 = vadd.f32 %v712_v59, %v341_v0 }
  0xfe   :  { %v386_v2 = vmax.f32 %v381_v1, 0.0 }
 0x100   :  { %v387_v3 = vpack.c.bf16 %v386_v2, %v386_v2 }
 0x102   :  { %751 = vmatmul.mubr.bf16.vlgmr.msra.gmra.mrb[4].mxu0 %v387_v3 }
 0x1d5   :  { %v493_v7 = vpop.f32.mrb[4].mxu0 }
 0x1d6   :  { %v494_v8 = vadd.f32 %v654_v6, %v493_v7  ;;  %v752_v9 = vpop.f32.mrb[5].mxu0 }
 0x1d7   :  { %v496_v10 = vpop.f32.mrb[6].mxu0 }
 0x1d8   :  { %v499_v11 = vmax.f32 %v494_v8, 0.0  ;;  %v753_v12 = vpop.f32.mrb[7].mxu0 }
 0x1da   :  { %v500_v13 = vpack.c.bf16 %v499_v11, %v499_v11 }
 0x1dc   :  { %771 = vmatmul.mubr.bf16.vlgmr.msra.gmra.mrb[4].mxu1 %v500_v13 }
 0x2af   :  { %v606_v15 = vpop.f32.mrb[4].mxu1 }
 0x2b0   :  { %v607_v16 = vadd.f32 %v663_v14, %v606_v15  ;;  %v772_v17 = vpop.f32.mrb[5].mxu1 }
 0x2b1   :  { %v609_v18 = vpop.f32.mrb[6].mxu1 }
 0x2b2   :  { %612 = vst [vmem:[%s1057_s7] sm:$0xff] %v607_v16  ;;  %v773_v19 = vpop.f32.mrb[7].mxu1 }

</bundles_post_ra>
